<compile_context>
chip_gen: v7x
topology: tpu7x:2x2x1
jax: 0.10.0
libtpu: 0.0.40
codegen_flags: <defaults>
</compile_context>

<pallas_src>
import jax
import jax.numpy as jnp
from jax.experimental import pallas as pl
from jax.experimental.pallas import tpu as pltpu


def _round_up(x, m):
    return (x + m - 1) // m * m


def _vmem_capacity_bytes():
    try:
        return int(pltpu.get_tpu_info().vmem_capacity_bytes)
    except Exception:
        return 64 << 20          # conservative fallback (v7x per-core VMEM)


def _conv_step_bytes(t_h, w_p, cin, cout):
    """Rough per-grid-step VMEM use for the conv kernel (double buffers + temps)."""
    t = t_h * w_p
    halo = (t_h + 2) * w_p
    in_b = 2 * cin * halo * 2                       # double-buffered bf16 band + halos
    out_b = 2 * (cout * t * 2 + cout * 128 * 4)     # double-buffered bf16 out + f32 psum
    temps = cin * (halo + 256) * 2 + cout * t * 6 + t * 8
    consts = 9 * cout * cin * 2 + cout * 4 + (8 << 10)
    return in_b + out_b + temps + consts


def _make_plan(h, w, cin, cout):
    w_p = _round_up(w + 2, 128)
    cap = _vmem_capacity_bytes()
    budget = int(0.40 * cap)
    max_th = max(1, min(-(-h // 2), 256))           # >=2 bands when possible (v7x 2 TCs)
    t_h = 1
    for cand in range(max_th, 0, -1):
        if _conv_step_bytes(cand, w_p, cin, cout) <= budget:
            t_h = cand
            break
    nb = -(-h // t_h)
    hb = nb * t_h
    hp = hb + 2 * t_h                               # valid rows start at stored row tH
    vmem_limit = int(min(int(0.9 * cap),
                         max(_conv_step_bytes(t_h, w_p, cin, cout) + (8 << 20), 32 << 20)))
    return dict(H=h, W=w, Wp=w_p, tH=t_h, nb=nb, Hb=hb, Hp=hp,
                Lp=hp * w_p, T=t_h * w_p, vmem_limit=vmem_limit)


# ----------------------------------------------------------------------------
# Kernel 1: 3x3 conv over one row band (+ optional fused PReLUs and fused
# global-average-pool partial sums).  Inputs/outputs use the canonical layout.
# ----------------------------------------------------------------------------
def _conv3x3(x_flat, w9, bias, alphas, colmask, plan, *, cin, cout,
             prelu_in, prelu_out, with_pool):
    n = x_flat.shape[0]
    t_h, w_p, nb, lp, t = plan["tH"], plan["Wp"], plan["nb"], plan["Lp"], plan["T"]
    img_h = plan["H"]
    halo_l = (t_h + 2) * w_p

    def kernel(mid_ref, top_ref, bot_ref, w_ref, b_ref, cm_ref, a_ref, o_ref, *rest):
        if with_pool:
            pool_ref, xbuf = rest
        else:
            (xbuf,) = rest
        r = pl.program_id(1)
        dt = mid_ref.dtype

        # Halo rows just above/below this band.  At the image borders they are the
        # conv zero padding; a select (not a multiply) keeps never-written HBM
        # garbage (possibly NaN) from leaking in.
        top_v = top_ref[0]
        bot_v = bot_ref[0]
        top_v = jnp.where(r > 0, top_v, jnp.zeros_like(top_v))
        bot_v = jnp.where(r < nb - 1, bot_v, jnp.zeros_like(bot_v))
        mid_v = mid_ref[0]
        if prelu_in:                       # PReLU once on the band, not per tap (9x less VPU)
            a0 = a_ref[0].astype(dt)
            top_v = jnp.where(top_v >= 0, top_v, a0 * top_v)
            mid_v = jnp.where(mid_v >= 0, mid_v, a0 * mid_v)
            bot_v = jnp.where(bot_v >= 0, bot_v, a0 * bot_v)

        # Assemble the flattened halo band in VMEM (all stores 128-lane aligned).
        # Guard pads on both sides keep the +-1-lane tap windows in bounds; they
        # only ever feed masked output lanes, and are zeroed for determinism.
        zpad = jnp.zeros((cin, 128), dt)
        xbuf[:, 0:128] = zpad
        xbuf[:, 128 + halo_l:256 + halo_l] = zpad
        xbuf[:, 128:128 + w_p] = top_v
        xbuf[:, 128 + w_p:128 + w_p + t] = mid_v
        xbuf[:, 128 + w_p + t:128 + halo_l] = bot_v

        # Nine channel-mixing matmuls; tap (ky,kx) is a (ky rows, kx-1 lanes)
        # shifted window of the flattened band.  Output stays (Cout, tH*Wp):
        # Cout in sublanes, spatial in lanes (lane-dense stores).
        w = w_ref[...]
        acc = None
        for ky in range(3):
            for kx in range(3):
                start = 128 + ky * w_p + (kx - 1)
                tap = xbuf[:, start:start + t]
                d = jnp.dot(w[ky * 3 + kx], tap, preferred_element_type=jnp.float32)
                acc = d if acc is None else acc + d
        acc = acc + b_ref[...]
        if prelu_out:
            a1 = a_ref[1]
            acc = jnp.where(acc >= 0, acc, a1 * acc)

        # Zero everything outside the valid HxW region so the canonical-layout
        # invariant (zeros in all halo/pad positions) holds for the next conv and
        # so the fused pooling sums only valid pixels.
        lane = jax.lax.broadcasted_iota(jnp.int32, (1, t), 1)
        row_ok = lane < (img_h - r * t_h) * w_p
        ok = jnp.logical_and(row_ok, cm_ref[...] > 0.5)
        res = jnp.where(ok, acc, 0.0)
        o_ref[0] = res.astype(o_ref.dtype)

        if with_pool:
            band_sum = jnp.sum(res, axis=-1, keepdims=True)      # (Cout, 1) f32
            pool_ref[0] = jnp.broadcast_to(band_sum, (cout, 128))

    in_specs = [
        pl.BlockSpec((1, cin, t), lambda i, r: (i, 0, r + 1)),                  # band rows
        pl.BlockSpec((1, cin, w_p), lambda i, r: (i, 0, (r + 1) * t_h - 1)),    # top halo row
        pl.BlockSpec((1, cin, w_p), lambda i, r: (i, 0, (r + 2) * t_h)),        # bottom halo row
        pl.BlockSpec((9, cout, cin), lambda i, r: (0, 0, 0)),                   # taps (resident)
        pl.BlockSpec((cout, 1), lambda i, r: (0, 0)),                           # bias
        pl.BlockSpec((1, t), lambda i, r: (0, 0)),                              # column mask
        pl.BlockSpec(memory_space=pltpu.MemorySpace.SMEM),                      # PReLU alphas
    ]
    out_spec_main = pl.BlockSpec((1, cout, t), lambda i, r: (i, 0, r + 1))
    if with_pool:
        out_shape = (jax.ShapeDtypeStruct((n, cout, lp), jnp.bfloat16),
                     jax.ShapeDtypeStruct((n, cout, nb * 128), jnp.float32))
        out_specs = [out_spec_main,
                     pl.BlockSpec((1, cout, 128), lambda i, r: (i, 0, r))]
    else:
        out_shape = jax.ShapeDtypeStruct((n, cout, lp), jnp.bfloat16)
        out_specs = out_spec_main

    return pl.pallas_call(
        kernel,
        out_shape=out_shape,
        grid_spec=pltpu.PrefetchScalarGridSpec(
            num_scalar_prefetch=0,
            grid=(n, nb),
            in_specs=in_specs,
            out_specs=out_specs,
            scratch_shapes=[pltpu.VMEM((cin, halo_l + 256), jnp.bfloat16)]),
        compiler_params=pltpu.CompilerParams(
            dimension_semantics=("parallel", "parallel"),
            vmem_limit_bytes=plan["vmem_limit"]),
    )(x_flat, x_flat, x_flat, w9, bias, colmask, alphas)


# ----------------------------------------------------------------------------
# Kernel 2: channel rescale (CALayer pass 2) + residual add, with the 1x1
# shortcut conv fused in when in_planes != out_planes.
# ----------------------------------------------------------------------------
def _scale_residual(h2, s, x_flat, wsc, bsc, plan, *, cin, cout, shortcut_conv):
    n = h2.shape[0]
    w_p, nb, lp, t = plan["Wp"], plan["nb"], plan["Lp"], plan["T"]
    del w_p

    def kernel(y_ref, s_ref, x_ref, w_ref, b_ref, o_ref):
        y = y_ref[0].astype(jnp.float32)                       # (Cout, T)
        sv = s_ref[0]                                          # (Cout, 1) f32
        if shortcut_conv:
            sc = jnp.dot(w_ref[...], x_ref[0],
                         preferred_element_type=jnp.float32) + b_ref[...]
        else:
            sc = x_ref[0].astype(jnp.float32)
        o_ref[0] = (y * sv + sc).astype(o_ref.dtype)

    in_specs = [
        pl.BlockSpec((1, cout, t), lambda i, r: (i, 0, r + 1)),
        pl.BlockSpec((1, cout, 1), lambda i, r: (i, 0, 0)),
        pl.BlockSpec((1, cin, t), lambda i, r: (i, 0, r + 1)),
        pl.BlockSpec((cout, cin), lambda i, r: (0, 0)),
        pl.BlockSpec((cout, 1), lambda i, r: (0, 0)),
    ]
    return pl.pallas_call(
        kernel,
        out_shape=jax.ShapeDtypeStruct((n, cout, lp), jnp.float32),
        grid_spec=pltpu.PrefetchScalarGridSpec(
            num_scalar_prefetch=0,
            grid=(n, nb),
            in_specs=in_specs,
            out_specs=pl.BlockSpec((1, cout, t), lambda i, r: (i, 0, r + 1))),
        compiler_params=pltpu.CompilerParams(
            dimension_semantics=("parallel", "parallel"),
            vmem_limit_bytes=plan["vmem_limit"]),
    )(h2, s, x_flat, wsc, bsc)


# ----------------------------------------------------------------------------
# Wrapper: full ResBlock forward (kernel=3, stride=1, residual, attention).
# ----------------------------------------------------------------------------
def res_block_forward(x, params):
    if isinstance(x, (list, tuple)):
        x = jnp.concatenate(x, axis=1)
    # TODO(synk): bilinear upsample2d_as path (upsample=True) and stride != 1 not implemented.
    n, cin, h, w = x.shape
    cout = params["w1"].shape[0]
    plan = _make_plan(h, w, cin, cout)
    t_h, w_p, hp, lp, t = plan["tH"], plan["Wp"], plan["Hp"], plan["Lp"], plan["T"]
    cdt = jnp.bfloat16

    # Canonical zero-padded, lane-dense layout: (N, C, Hp, Wp) flattened to
    # (N, C, Hp*Wp); image row r at stored row tH+r, image col c at lane c+1.
    xc = jnp.zeros((n, cin, hp, w_p), cdt)
    xc = xc.at[:, :, t_h:t_h + h, 1:1 + w].set(x.astype(cdt))
    x_flat = xc.reshape(n, cin, lp)

    col = jnp.arange(w_p, dtype=jnp.int32)
    col_ok = ((col >= 1) & (col <= w)).astype(jnp.float32)
    colmask = jnp.tile(col_ok, t_h).reshape(1, t)

    def taps(wgt):  # (O, I, 3, 3) -> (9, O, I), tap index ky*3+kx
        o, i = wgt.shape[0], wgt.shape[1]
        return jnp.transpose(wgt, (2, 3, 0, 1)).reshape(9, o, i).astype(cdt)

    # Main branch: PReLU -> conv3x3 + PReLU -> conv3x3 (PReLUs fused into conv1,
    # global average pool fused into conv2 as per-band partial sums).
    alphas1 = jnp.stack([params["a0"], params["a1"]]).astype(jnp.float32)
    h1 = _conv3x3(x_flat, taps(params["w1"]),
                  params["b1"].reshape(cout, 1).astype(jnp.float32),
                  alphas1, colmask, plan, cin=cin, cout=cout,
                  prelu_in=True, prelu_out=True, with_pool=False)
    h2, psum = _conv3x3(h1, taps(params["w2"]),
                        params["b2"].reshape(cout, 1).astype(jnp.float32),
                        jnp.zeros((2,), jnp.float32), colmask, plan,
                        cin=cout, cout=cout,
                        prelu_in=False, prelu_out=False, with_pool=True)

    # CALayer squeeze/excite: tiny per-(N, C) matvecs -> plain XLA.
    pooled = psum.reshape(n, cout, plan["nb"], 128)[..., 0].sum(axis=-1) / float(h * w)
    z = jnp.maximum(pooled @ params["wdu1"].T + params["bdu1"], 0.0)
    s = jax.nn.sigmoid(z @ params["wdu2"].T + params["bdu2"]).astype(jnp.float32)

    if cin != cout:
        wsc = params["wsc"].reshape(cout, cin).astype(cdt)
        bsc = params["bsc"].reshape(cout, 1).astype(jnp.float32)
        y = _scale_residual(h2, s.reshape(n, cout, 1), x_flat, wsc, bsc, plan,
                            cin=cin, cout=cout, shortcut_conv=True)
    else:
        y = _scale_residual(h2, s.reshape(n, cout, 1), x_flat,
                            jnp.zeros((cout, cin), cdt),
                            jnp.zeros((cout, 1), jnp.float32), plan,
                            cin=cin, cout=cout, shortcut_conv=False)

    # Single slice back to (N, C, H, W) at the very end.
    return y.reshape(n, cout, hp, w_p)[:, :, t_h:t_h + h, 1:1 + w]


# ----------------------------------------------------------------------------
# Pure-JAX reference for correctness checking.
# ----------------------------------------------------------------------------
def _conv2d_ref(x, wgt, b, pad):
    y = jax.lax.conv_general_dilated(
        x, wgt, window_strides=(1, 1), padding=[(pad, pad), (pad, pad)],
        dimension_numbers=("NCHW", "OIHW", "NCHW"),
        precision=jax.lax.Precision.HIGHEST)
    return y + b[None, :, None, None]


def _prelu_ref(v, a):
    return jnp.where(v >= 0, v, a * v)


def _res_block_reference(x, p):
    cin, cout = x.shape[1], p["w1"].shape[0]
    hh = _prelu_ref(x, p["a0"])
    hh = _prelu_ref(_conv2d_ref(hh, p["w1"], p["b1"], 1), p["a1"])
    hh = _conv2d_ref(hh, p["w2"], p["b2"], 1)
    pooled = jnp.mean(hh, axis=(2, 3))
    z = jnp.maximum(pooled @ p["wdu1"].T + p["bdu1"], 0.0)
    s = jax.nn.sigmoid(z @ p["wdu2"].T + p["bdu2"])
    y = hh * s[:, :, None, None]
    sc = _conv2d_ref(x, p["wsc"], p["bsc"], 0) if cin != cout else x
    return y + sc


if __name__ == "__main__":
    # Small shapes consistent with the module (out_planes divisible by reduction=16,
    # in_planes != out_planes so the fused 1x1 shortcut conv is exercised).
    N, Cin, Cout = 2, 8, 32
    reduction = 16
    Cr = Cout // reduction

    key = jax.random.PRNGKey(0)
    ks = jax.random.split(key, 12)

    def uni(k, shape, fan_in):
        bound = 1.0 / jnp.sqrt(jnp.float32(fan_in))
        return jax.random.uniform(k, shape, jnp.float32, -bound, bound)

    params = {
        "a0": jnp.float32(0.25),                     # nn.PReLU() default init
        "w1": uni(ks[0], (Cout, Cin, 3, 3), Cin * 9),
        "b1": uni(ks[1], (Cout,), Cin * 9),
        "a1": jnp.float32(0.25),
        "w2": uni(ks[2], (Cout, Cout, 3, 3), Cout * 9),
        "b2": uni(ks[3], (Cout,), Cout * 9),
        "wdu1": uni(ks[4], (Cr, Cout), Cout),
        "bdu1": uni(ks[5], (Cr,), Cout),
        "wdu2": uni(ks[6], (Cout, Cr), Cr),
        "bdu2": uni(ks[7], (Cout,), Cr),
        "wsc": uni(ks[8], (Cout, Cin, 1, 1), Cin),
        "bsc": uni(ks[9], (Cout,), Cin),
    }

    fwd = jax.jit(res_block_forward)

    # Second (awkward) spatial shape exercises the ragged row band + row masking.
    for (H, W), kx in (((16, 16), ks[10]), ((13, 20), ks[11])):
        x = jax.random.normal(kx, (N, Cin, H, W), dtype=jnp.float32)
        out = jax.block_until_ready(fwd(x, params))
        ref = _res_block_reference(x, params)
        assert out.shape == (N, Cout, H, W)
        max_err = float(jnp.max(jnp.abs(out - ref)))
        # bf16 matmul inputs (f32 accumulation) -> relaxed tolerance vs the f32 reference.
        assert jnp.allclose(out, ref, atol=5e-2, rtol=5e-2), (
            f"mismatch vs reference at {H}x{W} (max abs err {max_err})")

    print("KERNEL_OK")
</pallas_src>

<mosaic_0001>
module attributes {stable_mosaic.version = 11 : i64} {
  func.func @kernel(%arg0: i32, %arg1: i32, %arg2: memref<1x8x1024xbf16, #tpu.memory_space<vmem>>, %arg3: memref<1x8x128xbf16, #tpu.memory_space<vmem>>, %arg4: memref<1x8x128xbf16, #tpu.memory_space<vmem>>, %arg5: memref<9x32x8xbf16, #tpu.memory_space<vmem>>, %arg6: memref<32x1xf32, #tpu.memory_space<vmem>>, %arg7: memref<1x1024xf32, #tpu.memory_space<vmem>>, %arg8: memref<2xf32, #tpu.memory_space<smem>>, %arg9: memref<1x32x1024xbf16, #tpu.memory_space<vmem>>, %arg10: memref<8x1536xbf16, #tpu.memory_space<vmem>>) attributes {dimension_semantics = [#tpu.dimension_semantics<parallel>, #tpu.dimension_semantics<parallel>], iteration_bounds = array<i64: 2, 2>, scalar_prefetch = 0 : i64, scratch_operands = 1 : i64, tpu.core_type = #tpu.core_type<tc>, window_params = [{transform_indices = @transform_0, window_bounds = array<i64: 1, 8, 1024>}, {transform_indices = @transform_1, window_bounds = array<i64: 1, 8, 128>}, {transform_indices = @transform_2, window_bounds = array<i64: 1, 8, 128>}, {pipeline_mode = #tpu.pipeline_mode<synchronous>, transform_indices = @transform_3, window_bounds = array<i64: 9, 32, 8>}, {pipeline_mode = #tpu.pipeline_mode<synchronous>, transform_indices = @transform_4, window_bounds = array<i64: 32, 1>}, {pipeline_mode = #tpu.pipeline_mode<synchronous>, transform_indices = @transform_5, window_bounds = array<i64: 1, 1024>}, {transform_indices = @transform_6, window_bounds = array<i64: 2>}, {transform_indices = @transform_7, window_bounds = array<i64: 1, 32, 1024>}]} {
    %c0 = arith.constant 0 : index
    %c0_0 = arith.constant 0 : index
    %c0_1 = arith.constant 0 : index
    %0 = vector.load %arg3[%c0, %c0_0, %c0_1] : memref<1x8x128xbf16, #tpu.memory_space<vmem>>, vector<1x8x128xbf16>
    %1 = vector.shape_cast %0 : vector<1x8x128xbf16> to vector<8x128xbf16>
    %c0_2 = arith.constant 0 : index
    %c0_3 = arith.constant 0 : index
    %c0_4 = arith.constant 0 : index
    %2 = vector.load %arg4[%c0_2, %c0_3, %c0_4] : memref<1x8x128xbf16, #tpu.memory_space<vmem>>, vector<1x8x128xbf16>
    %3 = vector.shape_cast %2 : vector<1x8x128xbf16> to vector<8x128xbf16>
    %c0_i32 = arith.constant 0 : i32
    %4 = arith.cmpi sgt, %arg1, %c0_i32 : i32
    %cst = arith.constant 0.000000e+00 : bf16
    %5 = vector.broadcast %cst : bf16 to vector<8x128xbf16>
    %6 = arith.select %4, %1, %5 : vector<8x128xbf16>
    %c1_i32 = arith.constant 1 : i32
    %7 = arith.cmpi slt, %arg1, %c1_i32 : i32
    %cst_5 = arith.constant 0.000000e+00 : bf16
    %8 = vector.broadcast %cst_5 : bf16 to vector<8x128xbf16>
    %9 = arith.select %7, %3, %8 : vector<8x128xbf16>
    %c0_6 = arith.constant 0 : index
    %c0_7 = arith.constant 0 : index
    %c0_8 = arith.constant 0 : index
    %10 = vector.load %arg2[%c0_6, %c0_7, %c0_8] : memref<1x8x1024xbf16, #tpu.memory_space<vmem>>, vector<1x8x1024xbf16>
    %11 = vector.shape_cast %10 : vector<1x8x1024xbf16> to vector<8x1024xbf16>
    %c0_9 = arith.constant 0 : index
    %12 = memref.load %arg8[%c0_9] : memref<2xf32, #tpu.memory_space<smem>>
    %13 = arith.truncf %12 : f32 to bf16
    %cst_10 = arith.constant 0.000000e+00 : bf16
    %14 = vector.broadcast %cst_10 : bf16 to vector<8x128xbf16>
    %15 = arith.cmpf oge, %6, %14 : vector<8x128xbf16>
    %16 = vector.broadcast %13 : bf16 to vector<8x128xbf16>
    %17 = arith.mulf %16, %6 : vector<8x128xbf16>
    %18 = arith.select %15, %6, %17 : vector<8x128xi1>, vector<8x128xbf16>
    %cst_11 = arith.constant 0.000000e+00 : bf16
    %19 = vector.broadcast %cst_11 : bf16 to vector<8x1024xbf16>
    %20 = arith.cmpf oge, %11, %19 : vector<8x1024xbf16>
    %21 = vector.broadcast %13 : bf16 to vector<8x1024xbf16>
    %22 = arith.mulf %21, %11 : vector<8x1024xbf16>
    %23 = arith.select %20, %11, %22 : vector<8x1024xi1>, vector<8x1024xbf16>
    %cst_12 = arith.constant 0.000000e+00 : bf16
    %24 = vector.broadcast %cst_12 : bf16 to vector<8x128xbf16>
    %25 = arith.cmpf oge, %9, %24 : vector<8x128xbf16>
    %26 = vector.broadcast %13 : bf16 to vector<8x128xbf16>
    %27 = arith.mulf %26, %9 : vector<8x128xbf16>
    %28 = arith.select %25, %9, %27 : vector<8x128xi1>, vector<8x128xbf16>
    %cst_13 = arith.constant 0.000000e+00 : bf16
    %29 = vector.broadcast %cst_13 : bf16 to vector<8x128xbf16>
    %c0_14 = arith.constant 0 : index
    %c0_15 = arith.constant 0 : index
    %30 = vector.load %arg10[%c0_14, %c0_15] : memref<8x1536xbf16, #tpu.memory_space<vmem>>, vector<8x128xbf16>
    tpu.vector_store %arg10[%c0_14, %c0_15], %29 {strides = array<i32>} : memref<8x1536xbf16, #tpu.memory_space<vmem>>, vector<8x128xbf16>,
    %c0_16 = arith.constant 0 : index
    %c1408 = arith.constant 1408 : index
    %31 = vector.load %arg10[%c0_16, %c1408] : memref<8x1536xbf16, #tpu.memory_space<vmem>>, vector<8x128xbf16>
    tpu.vector_store %arg10[%c0_16, %c1408], %29 {strides = array<i32>} : memref<8x1536xbf16, #tpu.memory_space<vmem>>, vector<8x128xbf16>,
    %c0_17 = arith.constant 0 : index
    %c128 = arith.constant 128 : index
    %32 = vector.load %arg10[%c0_17, %c128] : memref<8x1536xbf16, #tpu.memory_space<vmem>>, vector<8x128xbf16>
    tpu.vector_store %arg10[%c0_17, %c128], %18 {strides = array<i32>} : memref<8x1536xbf16, #tpu.memory_space<vmem>>, vector<8x128xbf16>,
    %c0_18 = arith.constant 0 : index
    %c256 = arith.constant 256 : index
    %33 = vector.load %arg10[%c0_18, %c256] : memref<8x1536xbf16, #tpu.memory_space<vmem>>, vector<8x1024xbf16>
    tpu.vector_store %arg10[%c0_18, %c256], %23 {strides = array<i32>} : memref<8x1536xbf16, #tpu.memory_space<vmem>>, vector<8x1024xbf16>,
    %c0_19 = arith.constant 0 : index
    %c1280 = arith.constant 1280 : index
    %34 = vector.load %arg10[%c0_19, %c1280] : memref<8x1536xbf16, #tpu.memory_space<vmem>>, vector<8x128xbf16>
    tpu.vector_store %arg10[%c0_19, %c1280], %28 {strides = array<i32>} : memref<8x1536xbf16, #tpu.memory_space<vmem>>, vector<8x128xbf16>,
    %c0_20 = arith.constant 0 : index
    %c0_21 = arith.constant 0 : index
    %c0_22 = arith.constant 0 : index
    %35 = vector.load %arg5[%c0_20, %c0_21, %c0_22] : memref<9x32x8xbf16, #tpu.memory_space<vmem>>, vector<9x32x8xbf16>
    %c0_23 = arith.constant 0 : index
    %c127 = arith.constant 127 : index
    %36 = vector.load %arg10[%c0_23, %c127] : memref<8x1536xbf16, #tpu.memory_space<vmem>>, vector<8x1024xbf16>
    %37 = vector.extract_strided_slice %35 {offsets = [0, 0, 0], sizes = [1, 32, 8], strides = [1, 1, 1]} : vector<9x32x8xbf16> to vector<1x32x8xbf16>
    %38 = vector.shape_cast %37 : vector<1x32x8xbf16> to vector<32x8xbf16>
    %cst_24 = arith.constant dense<0.000000e+00> : vector<32x1024xf32>
    %39 = tpu.matmul %38, %36, %cst_24 {dimension_numbers = #tpu.dot_dimension_numbers<[1], [0], [0], [1], [0, 0, 1, 1], [], []>} : vector<32x8xbf16>, vector<8x1024xbf16>, vector<32x1024xf32> -> vector<32x1024xf32>
    %c0_25 = arith.constant 0 : index
    %c128_26 = arith.constant 128 : index
    %40 = vector.load %arg10[%c0_25, %c128_26] : memref<8x1536xbf16, #tpu.memory_space<vmem>>, vector<8x1024xbf16>
    %41 = vector.extract_strided_slice %35 {offsets = [1, 0, 0], sizes = [1, 32, 8], strides = [1, 1, 1]} : vector<9x32x8xbf16> to vector<1x32x8xbf16>
    %42 = vector.shape_cast %41 : vector<1x32x8xbf16> to vector<32x8xbf16>
    %cst_27 = arith.constant dense<0.000000e+00> : vector<32x1024xf32>
    %43 = tpu.matmul %42, %40, %cst_27 {dimension_numbers = #tpu.dot_dimension_numbers<[1], [0], [0], [1], [0, 0, 1, 1], [], []>} : vector<32x8xbf16>, vector<8x1024xbf16>, vector<32x1024xf32> -> vector<32x1024xf32>
    %44 = arith.addf %39, %43 : vector<32x1024xf32>
    %c0_28 = arith.constant 0 : index
    %c129 = arith.constant 129 : index
    %45 = vector.load %arg10[%c0_28, %c129] : memref<8x1536xbf16, #tpu.memory_space<vmem>>, vector<8x1024xbf16>
    %46 = vector.extract_strided_slice %35 {offsets = [2, 0, 0], sizes = [1, 32, 8], strides = [1, 1, 1]} : vector<9x32x8xbf16> to vector<1x32x8xbf16>
    %47 = vector.shape_cast %46 : vector<1x32x8xbf16> to vector<32x8xbf16>
    %cst_29 = arith.constant dense<0.000000e+00> : vector<32x1024xf32>
    %48 = tpu.matmul %47, %45, %cst_29 {dimension_numbers = #tpu.dot_dimension_numbers<[1], [0], [0], [1], [0, 0, 1, 1], [], []>} : vector<32x8xbf16>, vector<8x1024xbf16>, vector<32x1024xf32> -> vector<32x1024xf32>
    %49 = arith.addf %44, %48 : vector<32x1024xf32>
    %c0_30 = arith.constant 0 : index
    %c255 = arith.constant 255 : index
    %50 = vector.load %arg10[%c0_30, %c255] : memref<8x1536xbf16, #tpu.memory_space<vmem>>, vector<8x1024xbf16>
    %51 = vector.extract_strided_slice %35 {offsets = [3, 0, 0], sizes = [1, 32, 8], strides = [1, 1, 1]} : vector<9x32x8xbf16> to vector<1x32x8xbf16>
    %52 = vector.shape_cast %51 : vector<1x32x8xbf16> to vector<32x8xbf16>
    %cst_31 = arith.constant dense<0.000000e+00> : vector<32x1024xf32>
    %53 = tpu.matmul %52, %50, %cst_31 {dimension_numbers = #tpu.dot_dimension_numbers<[1], [0], [0], [1], [0, 0, 1, 1], [], []>} : vector<32x8xbf16>, vector<8x1024xbf16>, vector<32x1024xf32> -> vector<32x1024xf32>
    %54 = arith.addf %49, %53 : vector<32x1024xf32>
    %c0_32 = arith.constant 0 : index
    %c256_33 = arith.constant 256 : index
    %55 = vector.load %arg10[%c0_32, %c256_33] : memref<8x1536xbf16, #tpu.memory_space<vmem>>, vector<8x1024xbf16>
    %56 = vector.extract_strided_slice %35 {offsets = [4, 0, 0], sizes = [1, 32, 8], strides = [1, 1, 1]} : vector<9x32x8xbf16> to vector<1x32x8xbf16>
    %57 = vector.shape_cast %56 : vector<1x32x8xbf16> to vector<32x8xbf16>
    %cst_34 = arith.constant dense<0.000000e+00> : vector<32x1024xf32>
    %58 = tpu.matmul %57, %55, %cst_34 {dimension_numbers = #tpu.dot_dimension_numbers<[1], [0], [0], [1], [0, 0, 1, 1], [], []>} : vector<32x8xbf16>, vector<8x1024xbf16>, vector<32x1024xf32> -> vector<32x1024xf32>
    %59 = arith.addf %54, %58 : vector<32x1024xf32>
    %c0_35 = arith.constant 0 : index
    %c257 = arith.constant 257 : index
    %60 = vector.load %arg10[%c0_35, %c257] : memref<8x1536xbf16, #tpu.memory_space<vmem>>, vector<8x1024xbf16>
    %61 = vector.extract_strided_slice %35 {offsets = [5, 0, 0], sizes = [1, 32, 8], strides = [1, 1, 1]} : vector<9x32x8xbf16> to vector<1x32x8xbf16>
    %62 = vector.shape_cast %61 : vector<1x32x8xbf16> to vector<32x8xbf16>
    %cst_36 = arith.constant dense<0.000000e+00> : vector<32x1024xf32>
    %63 = tpu.matmul %62, %60, %cst_36 {dimension_numbers = #tpu.dot_dimension_numbers<[1], [0], [0], [1], [0, 0, 1, 1], [], []>} : vector<32x8xbf16>, vector<8x1024xbf16>, vector<32x1024xf32> -> vector<32x1024xf32>
    %64 = arith.addf %59, %63 : vector<32x1024xf32>
    %c0_37 = arith.constant 0 : index
    %c383 = arith.constant 383 : index
    %65 = vector.load %arg10[%c0_37, %c383] : memref<8x1536xbf16, #tpu.memory_space<vmem>>, vector<8x1024xbf16>
    %66 = vector.extract_strided_slice %35 {offsets = [6, 0, 0], sizes = [1, 32, 8], strides = [1, 1, 1]} : vector<9x32x8xbf16> to vector<1x32x8xbf16>
    %67 = vector.shape_cast %66 : vector<1x32x8xbf16> to vector<32x8xbf16>
    %cst_38 = arith.constant dense<0.000000e+00> : vector<32x1024xf32>
    %68 = tpu.matmul %67, %65, %cst_38 {dimension_numbers = #tpu.dot_dimension_numbers<[1], [0], [0], [1], [0, 0, 1, 1], [], []>} : vector<32x8xbf16>, vector<8x1024xbf16>, vector<32x1024xf32> -> vector<32x1024xf32>
    %69 = arith.addf %64, %68 : vector<32x1024xf32>
    %c0_39 = arith.constant 0 : index
    %c384 = arith.constant 384 : index
    %70 = vector.load %arg10[%c0_39, %c384] : memref<8x1536xbf16, #tpu.memory_space<vmem>>, vector<8x1024xbf16>
    %71 = vector.extract_strided_slice %35 {offsets = [7, 0, 0], sizes = [1, 32, 8], strides = [1, 1, 1]} : vector<9x32x8xbf16> to vector<1x32x8xbf16>
    %72 = vector.shape_cast %71 : vector<1x32x8xbf16> to vector<32x8xbf16>
    %cst_40 = arith.constant dense<0.000000e+00> : vector<32x1024xf32>
    %73 = tpu.matmul %72, %70, %cst_40 {dimension_numbers = #tpu.dot_dimension_numbers<[1], [0], [0], [1], [0, 0, 1, 1], [], []>} : vector<32x8xbf16>, vector<8x1024xbf16>, vector<32x1024xf32> -> vector<32x1024xf32>
    %74 = arith.addf %69, %73 : vector<32x1024xf32>
    %c0_41 = arith.constant 0 : index
    %c385 = arith.constant 385 : index
    %75 = vector.load %arg10[%c0_41, %c385] : memref<8x1536xbf16, #tpu.memory_space<vmem>>, vector<8x1024xbf16>
    %76 = vector.extract_strided_slice %35 {offsets = [8, 0, 0], sizes = [1, 32, 8], strides = [1, 1, 1]} : vector<9x32x8xbf16> to vector<1x32x8xbf16>
    %77 = vector.shape_cast %76 : vector<1x32x8xbf16> to vector<32x8xbf16>
    %cst_42 = arith.constant dense<0.000000e+00> : vector<32x1024xf32>
    %78 = tpu.matmul %77, %75, %cst_42 {dimension_numbers = #tpu.dot_dimension_numbers<[1], [0], [0], [1], [0, 0, 1, 1], [], []>} : vector<32x8xbf16>, vector<8x1024xbf16>, vector<32x1024xf32> -> vector<32x1024xf32>
    %79 = arith.addf %74, %78 : vector<32x1024xf32>
    %c0_43 = arith.constant 0 : index
    %c0_44 = arith.constant 0 : index
    %80 = vector.load %arg6[%c0_43, %c0_44] : memref<32x1xf32, #tpu.memory_space<vmem>>, vector<32x1xf32>
    %81 = vector.broadcast %80 : vector<32x1xf32> to vector<32x1024xf32>
    %82 = arith.addf %79, %81 : vector<32x1024xf32>
    %c1 = arith.constant 1 : index
    %83 = memref.load %arg8[%c1] : memref<2xf32, #tpu.memory_space<smem>>
    %cst_45 = arith.constant 0.000000e+00 : f32
    %84 = vector.broadcast %cst_45 : f32 to vector<32x1024xf32>
    %85 = arith.cmpf oge, %82, %84 : vector<32x1024xf32>
    %86 = vector.broadcast %83 : f32 to vector<32x1024xf32>
    %87 = arith.mulf %86, %82 : vector<32x1024xf32>
    %88 = arith.select %85, %82, %87 : vector<32x1024xi1>, vector<32x1024xf32>
    %89 = tpu.iota {dimensions = array<i32: 1>} : vector<1x1024xi32>
    %c8_i32 = arith.constant 8 : i32
    %90 = arith.muli %arg1, %c8_i32 : i32
    %c16_i32 = arith.constant 16 : i32
    %91 = arith.subi %c16_i32, %90 : i32
    %c128_i32 = arith.constant 128 : i32
    %92 = arith.muli %91, %c128_i32 : i32
    %93 = vector.broadcast %92 : i32 to vector<1x1024xi32>
    %94 = arith.cmpi slt, %89, %93 : vector<1x1024xi32>
    %c0_46 = arith.constant 0 : index
    %c0_47 = arith.constant 0 : index
    %95 = vector.load %arg7[%c0_46, %c0_47] : memref<1x1024xf32, #tpu.memory_space<vmem>>, vector<1x1024xf32>
    %cst_48 = arith.constant 5.000000e-01 : f32
    %96 = vector.broadcast %cst_48 : f32 to vector<1x1024xf32>
    %97 = arith.cmpf ogt, %95, %96 : vector<1x1024xf32>
    %98 = arith.andi %94, %97 : vector<1x1024xi1>
    %cst_49 = arith.constant 0.000000e+00 : f32
    %99 = vector.shape_cast %98 : vector<1x1024xi1> to vector<1x1024xi1>
    %100 = vector.broadcast %99 : vector<1x1024xi1> to vector<32x1024xi1>
    %101 = vector.broadcast %cst_49 : f32 to vector<32x1024xf32>
    %102 = arith.select %100, %88, %101 : vector<32x1024xi1>, vector<32x1024xf32>
    %103 = arith.truncf %102 : vector<32x1024xf32> to vector<32x1024xbf16>
    %c0_50 = arith.constant 0 : index
    %c0_51 = arith.constant 0 : index
    %c0_52 = arith.constant 0 : index
    %104 = vector.load %arg9[%c0_50, %c0_51, %c0_52] : memref<1x32x1024xbf16, #tpu.memory_space<vmem>>, vector<1x32x1024xbf16>
    %105 = vector.shape_cast %104 : vector<1x32x1024xbf16> to vector<32x1024xbf16>
    %106 = vector.shape_cast %103 : vector<32x1024xbf16> to vector<1x32x1024xbf16>
    tpu.vector_store %arg9[%c0_50, %c0_51, %c0_52], %106 {strides = array<i32>} : memref<1x32x1024xbf16, #tpu.memory_space<vmem>>, vector<1x32x1024xbf16>,
    return
  }
  func.func @transform_0(%arg0: i32, %arg1: i32) -> (i32, i32, i32) {
    %c1_i32 = arith.constant 1 : i32
    %0 = arith.addi %arg1, %c1_i32 : i32
    %c0_i32 = arith.constant 0 : i32
    %c0_i32_0 = arith.constant 0 : i32
    return %arg0, %c0_i32, %0 : i32, i32, i32
  }
  func.func @transform_1(%arg0: i32, %arg1: i32) -> (i32, i32, i32) {
    %c1_i32 = arith.constant 1 : i32
    %0 = arith.addi %arg1, %c1_i32 : i32
    %c8_i32 = arith.constant 8 : i32
    %1 = arith.muli %0, %c8_i32 : i32
    %c1_i32_0 = arith.constant 1 : i32
    %2 = arith.subi %1, %c1_i32_0 : i32
    %c0_i32 = arith.constant 0 : i32
    %c0_i32_1 = arith.constant 0 : i32
    return %arg0, %c0_i32, %2 : i32, i32, i32
  }
  func.func @transform_2(%arg0: i32, %arg1: i32) -> (i32, i32, i32) {
    %c2_i32 = arith.constant 2 : i32
    %0 = arith.addi %arg1, %c2_i32 : i32
    %c8_i32 = arith.constant 8 : i32
    %1 = arith.muli %0, %c8_i32 : i32
    %c0_i32 = arith.constant 0 : i32
    %c0_i32_0 = arith.constant 0 : i32
    return %arg0, %c0_i32, %1 : i32, i32, i32
  }
  func.func @transform_3(%arg0: i32, %arg1: i32) -> (i32, i32, i32) {
    %c0_i32 = arith.constant 0 : i32
    %c0_i32_0 = arith.constant 0 : i32
    %c0_i32_1 = arith.constant 0 : i32
    %c0_i32_2 = arith.constant 0 : i32
    return %c0_i32, %c0_i32_0, %c0_i32_1 : i32, i32, i32
  }
  func.func @transform_4(%arg0: i32, %arg1: i32) -> (i32, i32) {
    %c0_i32 = arith.constant 0 : i32
    %c0_i32_0 = arith.constant 0 : i32
    %c0_i32_1 = arith.constant 0 : i32
    return %c0_i32, %c0_i32_0 : i32, i32
  }
  func.func @transform_5(%arg0: i32, %arg1: i32) -> (i32, i32) {
    %c0_i32 = arith.constant 0 : i32
    %c0_i32_0 = arith.constant 0 : i32
    %c0_i32_1 = arith.constant 0 : i32
    return %c0_i32, %c0_i32_0 : i32, i32
  }
  func.func @transform_6(%arg0: i32, %arg1: i32) -> i32 {
    %c0_i32 = arith.constant 0 : i32
    %c0_i32_0 = arith.constant 0 : i32
    return %c0_i32 : i32
  }
  func.func @transform_7(%arg0: i32, %arg1: i32) -> (i32, i32, i32) {
    %c1_i32 = arith.constant 1 : i32
    %0 = arith.addi %arg1, %c1_i32 : i32
    %c0_i32 = arith.constant 0 : i32
    %c0_i32_0 = arith.constant 0 : i32
    return %arg0, %c0_i32, %0 : i32, i32, i32
  }
}

module attributes {stable_mosaic.version = 11 : i64} {
  func.func @kernel(%arg0: i32, %arg1: i32, %arg2: memref<1x32x1024xbf16, #tpu.memory_space<vmem>>, %arg3: memref<1x32x128xbf16, #tpu.memory_space<vmem>>, %arg4: memref<1x32x128xbf16, #tpu.memory_space<vmem>>, %arg5: memref<9x32x32xbf16, #tpu.memory_space<vmem>>, %arg6: memref<32x1xf32, #tpu.memory_space<vmem>>, %arg7: memref<1x1024xf32, #tpu.memory_space<vmem>>, %arg8: memref<2xf32, #tpu.memory_space<smem>>, %arg9: memref<1x32x1024xbf16, #tpu.memory_space<vmem>>, %arg10: memref<1x32x128xf32, #tpu.memory_space<vmem>>, %arg11: memref<32x1536xbf16, #tpu.memory_space<vmem>>) attributes {dimension_semantics = [#tpu.dimension_semantics<parallel>, #tpu.dimension_semantics<parallel>], iteration_bounds = array<i64: 2, 2>, scalar_prefetch = 0 : i64, scratch_operands = 1 : i64, tpu.core_type = #tpu.core_type<tc>, window_params = [{transform_indices = @transform_0, window_bounds = array<i64: 1, 32, 1024>}, {transform_indices = @transform_1, window_bounds = array<i64: 1, 32, 128>}, {transform_indices = @transform_2, window_bounds = array<i64: 1, 32, 128>}, {pipeline_mode = #tpu.pipeline_mode<synchronous>, transform_indices = @transform_3, window_bounds = array<i64: 9, 32, 32>}, {pipeline_mode = #tpu.pipeline_mode<synchronous>, transform_indices = @transform_4, window_bounds = array<i64: 32, 1>}, {pipeline_mode = #tpu.pipeline_mode<synchronous>, transform_indices = @transform_5, window_bounds = array<i64: 1, 1024>}, {transform_indices = @transform_6, window_bounds = array<i64: 2>}, {transform_indices = @transform_7, window_bounds = array<i64: 1, 32, 1024>}, {transform_indices = @transform_8, window_bounds = array<i64: 1, 32, 128>}]} {
    %c0 = arith.constant 0 : index
    %c0_0 = arith.constant 0 : index
    %c0_1 = arith.constant 0 : index
    %0 = vector.load %arg3[%c0, %c0_0, %c0_1] : memref<1x32x128xbf16, #tpu.memory_space<vmem>>, vector<1x32x128xbf16>
    %1 = vector.shape_cast %0 : vector<1x32x128xbf16> to vector<32x128xbf16>
    %c0_2 = arith.constant 0 : index
    %c0_3 = arith.constant 0 : index
    %c0_4 = arith.constant 0 : index
    %2 = vector.load %arg4[%c0_2, %c0_3, %c0_4] : memref<1x32x128xbf16, #tpu.memory_space<vmem>>, vector<1x32x128xbf16>
    %3 = vector.shape_cast %2 : vector<1x32x128xbf16> to vector<32x128xbf16>
    %c0_i32 = arith.constant 0 : i32
    %4 = arith.cmpi sgt, %arg1, %c0_i32 : i32
    %cst = arith.constant 0.000000e+00 : bf16
    %5 = vector.broadcast %cst : bf16 to vector<32x128xbf16>
    %6 = arith.select %4, %1, %5 : vector<32x128xbf16>
    %c1_i32 = arith.constant 1 : i32
    %7 = arith.cmpi slt, %arg1, %c1_i32 : i32
    %cst_5 = arith.constant 0.000000e+00 : bf16
    %8 = vector.broadcast %cst_5 : bf16 to vector<32x128xbf16>
    %9 = arith.select %7, %3, %8 : vector<32x128xbf16>
    %c0_6 = arith.constant 0 : index
    %c0_7 = arith.constant 0 : index
    %c0_8 = arith.constant 0 : index
    %10 = vector.load %arg2[%c0_6, %c0_7, %c0_8] : memref<1x32x1024xbf16, #tpu.memory_space<vmem>>, vector<1x32x1024xbf16>
    %11 = vector.shape_cast %10 : vector<1x32x1024xbf16> to vector<32x1024xbf16>
    %cst_9 = arith.constant 0.000000e+00 : bf16
    %12 = vector.broadcast %cst_9 : bf16 to vector<32x128xbf16>
    %c0_10 = arith.constant 0 : index
    %c0_11 = arith.constant 0 : index
    %13 = vector.load %arg11[%c0_10, %c0_11] : memref<32x1536xbf16, #tpu.memory_space<vmem>>, vector<32x128xbf16>
    tpu.vector_store %arg11[%c0_10, %c0_11], %12 {strides = array<i32>} : memref<32x1536xbf16, #tpu.memory_space<vmem>>, vector<32x128xbf16>,
    %c0_12 = arith.constant 0 : index
    %c1408 = arith.constant 1408 : index
    %14 = vector.load %arg11[%c0_12, %c1408] : memref<32x1536xbf16, #tpu.memory_space<vmem>>, vector<32x128xbf16>
    tpu.vector_store %arg11[%c0_12, %c1408], %12 {strides = array<i32>} : memref<32x1536xbf16, #tpu.memory_space<vmem>>, vector<32x128xbf16>,
    %c0_13 = arith.constant 0 : index
    %c128 = arith.constant 128 : index
    %15 = vector.load %arg11[%c0_13, %c128] : memref<32x1536xbf16, #tpu.memory_space<vmem>>, vector<32x128xbf16>
    tpu.vector_store %arg11[%c0_13, %c128], %6 {strides = array<i32>} : memref<32x1536xbf16, #tpu.memory_space<vmem>>, vector<32x128xbf16>,
    %c0_14 = arith.constant 0 : index
    %c256 = arith.constant 256 : index
    %16 = vector.load %arg11[%c0_14, %c256] : memref<32x1536xbf16, #tpu.memory_space<vmem>>, vector<32x1024xbf16>
    tpu.vector_store %arg11[%c0_14, %c256], %11 {strides = array<i32>} : memref<32x1536xbf16, #tpu.memory_space<vmem>>, vector<32x1024xbf16>,
    %c0_15 = arith.constant 0 : index
    %c1280 = arith.constant 1280 : index
    %17 = vector.load %arg11[%c0_15, %c1280] : memref<32x1536xbf16, #tpu.memory_space<vmem>>, vector<32x128xbf16>
    tpu.vector_store %arg11[%c0_15, %c1280], %9 {strides = array<i32>} : memref<32x1536xbf16, #tpu.memory_space<vmem>>, vector<32x128xbf16>,
    %c0_16 = arith.constant 0 : index
    %c0_17 = arith.constant 0 : index
    %c0_18 = arith.constant 0 : index
    %18 = vector.load %arg5[%c0_16, %c0_17, %c0_18] : memref<9x32x32xbf16, #tpu.memory_space<vmem>>, vector<9x32x32xbf16>
    %c0_19 = arith.constant 0 : index
    %c127 = arith.constant 127 : index
    %19 = vector.load %arg11[%c0_19, %c127] : memref<32x1536xbf16, #tpu.memory_space<vmem>>, vector<32x1024xbf16>
    %20 = vector.extract_strided_slice %18 {offsets = [0, 0, 0], sizes = [1, 32, 32], strides = [1, 1, 1]} : vector<9x32x32xbf16> to vector<1x32x32xbf16>
    %21 = vector.shape_cast %20 : vector<1x32x32xbf16> to vector<32x32xbf16>
    %cst_20 = arith.constant dense<0.000000e+00> : vector<32x1024xf32>
    %22 = tpu.matmul %21, %19, %cst_20 {dimension_numbers = #tpu.dot_dimension_numbers<[1], [0], [0], [1], [0, 0, 1, 1], [], []>} : vector<32x32xbf16>, vector<32x1024xbf16>, vector<32x1024xf32> -> vector<32x1024xf32>
    %c0_21 = arith.constant 0 : index
    %c128_22 = arith.constant 128 : index
    %23 = vector.load %arg11[%c0_21, %c128_22] : memref<32x1536xbf16, #tpu.memory_space<vmem>>, vector<32x1024xbf16>
    %24 = vector.extract_strided_slice %18 {offsets = [1, 0, 0], sizes = [1, 32, 32], strides = [1, 1, 1]} : vector<9x32x32xbf16> to vector<1x32x32xbf16>
    %25 = vector.shape_cast %24 : vector<1x32x32xbf16> to vector<32x32xbf16>
    %cst_23 = arith.constant dense<0.000000e+00> : vector<32x1024xf32>
    %26 = tpu.matmul %25, %23, %cst_23 {dimension_numbers = #tpu.dot_dimension_numbers<[1], [0], [0], [1], [0, 0, 1, 1], [], []>} : vector<32x32xbf16>, vector<32x1024xbf16>, vector<32x1024xf32> -> vector<32x1024xf32>
    %27 = arith.addf %22, %26 : vector<32x1024xf32>
    %c0_24 = arith.constant 0 : index
    %c129 = arith.constant 129 : index
    %28 = vector.load %arg11[%c0_24, %c129] : memref<32x1536xbf16, #tpu.memory_space<vmem>>, vector<32x1024xbf16>
    %29 = vector.extract_strided_slice %18 {offsets = [2, 0, 0], sizes = [1, 32, 32], strides = [1, 1, 1]} : vector<9x32x32xbf16> to vector<1x32x32xbf16>
    %30 = vector.shape_cast %29 : vector<1x32x32xbf16> to vector<32x32xbf16>
    %cst_25 = arith.constant dense<0.000000e+00> : vector<32x1024xf32>
    %31 = tpu.matmul %30, %28, %cst_25 {dimension_numbers = #tpu.dot_dimension_numbers<[1], [0], [0], [1], [0, 0, 1, 1], [], []>} : vector<32x32xbf16>, vector<32x1024xbf16>, vector<32x1024xf32> -> vector<32x1024xf32>
    %32 = arith.addf %27, %31 : vector<32x1024xf32>
    %c0_26 = arith.constant 0 : index
    %c255 = arith.constant 255 : index
    %33 = vector.load %arg11[%c0_26, %c255] : memref<32x1536xbf16, #tpu.memory_space<vmem>>, vector<32x1024xbf16>
    %34 = vector.extract_strided_slice %18 {offsets = [3, 0, 0], sizes = [1, 32, 32], strides = [1, 1, 1]} : vector<9x32x32xbf16> to vector<1x32x32xbf16>
    %35 = vector.shape_cast %34 : vector<1x32x32xbf16> to vector<32x32xbf16>
    %cst_27 = arith.constant dense<0.000000e+00> : vector<32x1024xf32>
    %36 = tpu.matmul %35, %33, %cst_27 {dimension_numbers = #tpu.dot_dimension_numbers<[1], [0], [0], [1], [0, 0, 1, 1], [], []>} : vector<32x32xbf16>, vector<32x1024xbf16>, vector<32x1024xf32> -> vector<32x1024xf32>
    %37 = arith.addf %32, %36 : vector<32x1024xf32>
    %c0_28 = arith.constant 0 : index
    %c256_29 = arith.constant 256 : index
    %38 = vector.load %arg11[%c0_28, %c256_29] : memref<32x1536xbf16, #tpu.memory_space<vmem>>, vector<32x1024xbf16>
    %39 = vector.extract_strided_slice %18 {offsets = [4, 0, 0], sizes = [1, 32, 32], strides = [1, 1, 1]} : vector<9x32x32xbf16> to vector<1x32x32xbf16>
    %40 = vector.shape_cast %39 : vector<1x32x32xbf16> to vector<32x32xbf16>
    %cst_30 = arith.constant dense<0.000000e+00> : vector<32x1024xf32>
    %41 = tpu.matmul %40, %38, %cst_30 {dimension_numbers = #tpu.dot_dimension_numbers<[1], [0], [0], [1], [0, 0, 1, 1], [], []>} : vector<32x32xbf16>, vector<32x1024xbf16>, vector<32x1024xf32> -> vector<32x1024xf32>
    %42 = arith.addf %37, %41 : vector<32x1024xf32>
    %c0_31 = arith.constant 0 : index
    %c257 = arith.constant 257 : index
    %43 = vector.load %arg11[%c0_31, %c257] : memref<32x1536xbf16, #tpu.memory_space<vmem>>, vector<32x1024xbf16>
    %44 = vector.extract_strided_slice %18 {offsets = [5, 0, 0], sizes = [1, 32, 32], strides = [1, 1, 1]} : vector<9x32x32xbf16> to vector<1x32x32xbf16>
    %45 = vector.shape_cast %44 : vector<1x32x32xbf16> to vector<32x32xbf16>
    %cst_32 = arith.constant dense<0.000000e+00> : vector<32x1024xf32>
    %46 = tpu.matmul %45, %43, %cst_32 {dimension_numbers = #tpu.dot_dimension_numbers<[1], [0], [0], [1], [0, 0, 1, 1], [], []>} : vector<32x32xbf16>, vector<32x1024xbf16>, vector<32x1024xf32> -> vector<32x1024xf32>
    %47 = arith.addf %42, %46 : vector<32x1024xf32>
    %c0_33 = arith.constant 0 : index
    %c383 = arith.constant 383 : index
    %48 = vector.load %arg11[%c0_33, %c383] : memref<32x1536xbf16, #tpu.memory_space<vmem>>, vector<32x1024xbf16>
    %49 = vector.extract_strided_slice %18 {offsets = [6, 0, 0], sizes = [1, 32, 32], strides = [1, 1, 1]} : vector<9x32x32xbf16> to vector<1x32x32xbf16>
    %50 = vector.shape_cast %49 : vector<1x32x32xbf16> to vector<32x32xbf16>
    %cst_34 = arith.constant dense<0.000000e+00> : vector<32x1024xf32>
    %51 = tpu.matmul %50, %48, %cst_34 {dimension_numbers = #tpu.dot_dimension_numbers<[1], [0], [0], [1], [0, 0, 1, 1], [], []>} : vector<32x32xbf16>, vector<32x1024xbf16>, vector<32x1024xf32> -> vector<32x1024xf32>
    %52 = arith.addf %47, %51 : vector<32x1024xf32>
    %c0_35 = arith.constant 0 : index
    %c384 = arith.constant 384 : index
    %53 = vector.load %arg11[%c0_35, %c384] : memref<32x1536xbf16, #tpu.memory_space<vmem>>, vector<32x1024xbf16>
    %54 = vector.extract_strided_slice %18 {offsets = [7, 0, 0], sizes = [1, 32, 32], strides = [1, 1, 1]} : vector<9x32x32xbf16> to vector<1x32x32xbf16>
    %55 = vector.shape_cast %54 : vector<1x32x32xbf16> to vector<32x32xbf16>
    %cst_36 = arith.constant dense<0.000000e+00> : vector<32x1024xf32>
    %56 = tpu.matmul %55, %53, %cst_36 {dimension_numbers = #tpu.dot_dimension_numbers<[1], [0], [0], [1], [0, 0, 1, 1], [], []>} : vector<32x32xbf16>, vector<32x1024xbf16>, vector<32x1024xf32> -> vector<32x1024xf32>
    %57 = arith.addf %52, %56 : vector<32x1024xf32>
    %c0_37 = arith.constant 0 : index
    %c385 = arith.constant 385 : index
    %58 = vector.load %arg11[%c0_37, %c385] : memref<32x1536xbf16, #tpu.memory_space<vmem>>, vector<32x1024xbf16>
    %59 = vector.extract_strided_slice %18 {offsets = [8, 0, 0], sizes = [1, 32, 32], strides = [1, 1, 1]} : vector<9x32x32xbf16> to vector<1x32x32xbf16>
    %60 = vector.shape_cast %59 : vector<1x32x32xbf16> to vector<32x32xbf16>
    %cst_38 = arith.constant dense<0.000000e+00> : vector<32x1024xf32>
    %61 = tpu.matmul %60, %58, %cst_38 {dimension_numbers = #tpu.dot_dimension_numbers<[1], [0], [0], [1], [0, 0, 1, 1], [], []>} : vector<32x32xbf16>, vector<32x1024xbf16>, vector<32x1024xf32> -> vector<32x1024xf32>
    %62 = arith.addf %57, %61 : vector<32x1024xf32>
    %c0_39 = arith.constant 0 : index
    %c0_40 = arith.constant 0 : index
    %63 = vector.load %arg6[%c0_39, %c0_40] : memref<32x1xf32, #tpu.memory_space<vmem>>, vector<32x1xf32>
    %64 = vector.broadcast %63 : vector<32x1xf32> to vector<32x1024xf32>
    %65 = arith.addf %62, %64 : vector<32x1024xf32>
    %66 = tpu.iota {dimensions = array<i32: 1>} : vector<1x1024xi32>
    %c8_i32 = arith.constant 8 : i32
    %67 = arith.muli %arg1, %c8_i32 : i32
    %c16_i32 = arith.constant 16 : i32
    %68 = arith.subi %c16_i32, %67 : i32
    %c128_i32 = arith.constant 128 : i32
    %69 = arith.muli %68, %c128_i32 : i32
    %70 = vector.broadcast %69 : i32 to vector<1x1024xi32>
    %71 = arith.cmpi slt, %66, %70 : vector<1x1024xi32>
    %c0_41 = arith.constant 0 : index
    %c0_42 = arith.constant 0 : index
    %72 = vector.load %arg7[%c0_41, %c0_42] : memref<1x1024xf32, #tpu.memory_space<vmem>>, vector<1x1024xf32>
    %cst_43 = arith.constant 5.000000e-01 : f32
    %73 = vector.broadcast %cst_43 : f32 to vector<1x1024xf32>
    %74 = arith.cmpf ogt, %72, %73 : vector<1x1024xf32>
    %75 = arith.andi %71, %74 : vector<1x1024xi1>
    %cst_44 = arith.constant 0.000000e+00 : f32
    %76 = vector.shape_cast %75 : vector<1x1024xi1> to vector<1x1024xi1>
    %77 = vector.broadcast %76 : vector<1x1024xi1> to vector<32x1024xi1>
    %78 = vector.broadcast %cst_44 : f32 to vector<32x1024xf32>
    %79 = arith.select %77, %65, %78 : vector<32x1024xi1>, vector<32x1024xf32>
    %80 = arith.truncf %79 : vector<32x1024xf32> to vector<32x1024xbf16>
    %c0_45 = arith.constant 0 : index
    %c0_46 = arith.constant 0 : index
    %c0_47 = arith.constant 0 : index
    %81 = vector.load %arg9[%c0_45, %c0_46, %c0_47] : memref<1x32x1024xbf16, #tpu.memory_space<vmem>>, vector<1x32x1024xbf16>
    %82 = vector.shape_cast %81 : vector<1x32x1024xbf16> to vector<32x1024xbf16>
    %83 = vector.shape_cast %80 : vector<32x1024xbf16> to vector<1x32x1024xbf16>
    tpu.vector_store %arg9[%c0_45, %c0_46, %c0_47], %83 {strides = array<i32>} : memref<1x32x1024xbf16, #tpu.memory_space<vmem>>, vector<1x32x1024xbf16>,
    %cst_48 = arith.constant dense<0.000000e+00> : vector<32xf32>
    %84 = vector.multi_reduction <add>, %79, %cst_48 [1] : vector<32x1024xf32> to vector<32xf32>
    %85 = vector.shape_cast %84 : vector<32xf32> to vector<32x1xf32>
    %86 = vector.shape_cast %85 : vector<32x1xf32> to vector<32x1xf32>
    %87 = vector.broadcast %86 : vector<32x1xf32> to vector<32x128xf32>
    %c0_49 = arith.constant 0 : index
    %c0_50 = arith.constant 0 : index
    %c0_51 = arith.constant 0 : index
    %88 = vector.load %arg10[%c0_49, %c0_50, %c0_51] : memref<1x32x128xf32, #tpu.memory_space<vmem>>, vector<1x32x128xf32>
    %89 = vector.shape_cast %88 : vector<1x32x128xf32> to vector<32x128xf32>
    %90 = vector.shape_cast %87 : vector<32x128xf32> to vector<1x32x128xf32>
    tpu.vector_store %arg10[%c0_49, %c0_50, %c0_51], %90 {strides = array<i32>} : memref<1x32x128xf32, #tpu.memory_space<vmem>>, vector<1x32x128xf32>,
    return
  }
  func.func @transform_0(%arg0: i32, %arg1: i32) -> (i32, i32, i32) {
    %c1_i32 = arith.constant 1 : i32
    %0 = arith.addi %arg1, %c1_i32 : i32
    %c0_i32 = arith.constant 0 : i32
    %c0_i32_0 = arith.constant 0 : i32
    return %arg0, %c0_i32, %0 : i32, i32, i32
  }
  func.func @transform_1(%arg0: i32, %arg1: i32) -> (i32, i32, i32) {
    %c1_i32 = arith.constant 1 : i32
    %0 = arith.addi %arg1, %c1_i32 : i32
    %c8_i32 = arith.constant 8 : i32
    %1 = arith.muli %0, %c8_i32 : i32
    %c1_i32_0 = arith.constant 1 : i32
    %2 = arith.subi %1, %c1_i32_0 : i32
    %c0_i32 = arith.constant 0 : i32
    %c0_i32_1 = arith.constant 0 : i32
    return %arg0, %c0_i32, %2 : i32, i32, i32
  }
  func.func @transform_2(%arg0: i32, %arg1: i32) -> (i32, i32, i32) {
    %c2_i32 = arith.constant 2 : i32
    %0 = arith.addi %arg1, %c2_i32 : i32
    %c8_i32 = arith.constant 8 : i32
    %1 = arith.muli %0, %c8_i32 : i32
    %c0_i32 = arith.constant 0 : i32
    %c0_i32_0 = arith.constant 0 : i32
    return %arg0, %c0_i32, %1 : i32, i32, i32
  }
  func.func @transform_3(%arg0: i32, %arg1: i32) -> (i32, i32, i32) {
    %c0_i32 = arith.constant 0 : i32
    %c0_i32_0 = arith.constant 0 : i32
    %c0_i32_1 = arith.constant 0 : i32
    %c0_i32_2 = arith.constant 0 : i32
    return %c0_i32, %c0_i32_0, %c0_i32_1 : i32, i32, i32
  }
  func.func @transform_4(%arg0: i32, %arg1: i32) -> (i32, i32) {
    %c0_i32 = arith.constant 0 : i32
    %c0_i32_0 = arith.constant 0 : i32
    %c0_i32_1 = arith.constant 0 : i32
    return %c0_i32, %c0_i32_0 : i32, i32
  }
  func.func @transform_5(%arg0: i32, %arg1: i32) -> (i32, i32) {
    %c0_i32 = arith.constant 0 : i32
    %c0_i32_0 = arith.constant 0 : i32
    %c0_i32_1 = arith.constant 0 : i32
    return %c0_i32, %c0_i32_0 : i32, i32
  }
  func.func @transform_6(%arg0: i32, %arg1: i32) -> i32 {
    %c0_i32 = arith.constant 0 : i32
    %c0_i32_0 = arith.constant 0 : i32
    return %c0_i32 : i32
  }
  func.func @transform_7(%arg0: i32, %arg1: i32) -> (i32, i32, i32) {
    %c1_i32 = arith.constant 1 : i32
    %0 = arith.addi %arg1, %c1_i32 : i32
    %c0_i32 = arith.constant 0 : i32
    %c0_i32_0 = arith.constant 0 : i32
    return %arg0, %c0_i32, %0 : i32, i32, i32
  }
  func.func @transform_8(%arg0: i32, %arg1: i32) -> (i32, i32, i32) {
    %c0_i32 = arith.constant 0 : i32
    %c0_i32_0 = arith.constant 0 : i32
    return %arg0, %c0_i32, %arg1 : i32, i32, i32
  }
}

module attributes {stable_mosaic.version = 11 : i64} {
  func.func @kernel(%arg0: i32, %arg1: i32, %arg2: memref<1x32x1024xbf16, #tpu.memory_space<vmem>>, %arg3: memref<1x32x1xf32, #tpu.memory_space<vmem>>, %arg4: memref<1x8x1024xbf16, #tpu.memory_space<vmem>>, %arg5: memref<32x8xbf16, #tpu.memory_space<vmem>>, %arg6: memref<32x1xf32, #tpu.memory_space<vmem>>, %arg7: memref<1x32x1024xf32, #tpu.memory_space<vmem>>) attributes {dimension_semantics = [#tpu.dimension_semantics<parallel>, #tpu.dimension_semantics<parallel>], iteration_bounds = array<i64: 2, 2>, scalar_prefetch = 0 : i64, scratch_operands = 0 : i64, tpu.core_type = #tpu.core_type<tc>, window_params = [{transform_indices = @transform_0, window_bounds = array<i64: 1, 32, 1024>}, {transform_indices = @transform_1, window_bounds = array<i64: 1, 32, 1>}, {transform_indices = @transform_2, window_bounds = array<i64: 1, 8, 1024>}, {pipeline_mode = #tpu.pipeline_mode<synchronous>, transform_indices = @transform_3, window_bounds = array<i64: 32, 8>}, {pipeline_mode = #tpu.pipeline_mode<synchronous>, transform_indices = @transform_4, window_bounds = array<i64: 32, 1>}, {transform_indices = @transform_5, window_bounds = array<i64: 1, 32, 1024>}]} {
    %c0 = arith.constant 0 : index
    %c0_0 = arith.constant 0 : index
    %c0_1 = arith.constant 0 : index
    %0 = vector.load %arg2[%c0, %c0_0, %c0_1] : memref<1x32x1024xbf16, #tpu.memory_space<vmem>>, vector<1x32x1024xbf16>
    %1 = vector.shape_cast %0 : vector<1x32x1024xbf16> to vector<32x1024xbf16>
    %2 = arith.extf %1 : vector<32x1024xbf16> to vector<32x1024xf32>
    %c0_2 = arith.constant 0 : index
    %c0_3 = arith.constant 0 : index
    %c0_4 = arith.constant 0 : index
    %3 = vector.load %arg3[%c0_2, %c0_3, %c0_4] : memref<1x32x1xf32, #tpu.memory_space<vmem>>, vector<1x32x1xf32>
    %4 = vector.shape_cast %3 : vector<1x32x1xf32> to vector<32x1xf32>
    %c0_5 = arith.constant 0 : index
    %c0_6 = arith.constant 0 : index
    %5 = vector.load %arg5[%c0_5, %c0_6] : memref<32x8xbf16, #tpu.memory_space<vmem>>, vector<32x8xbf16>
    %c0_7 = arith.constant 0 : index
    %c0_8 = arith.constant 0 : index
    %c0_9 = arith.constant 0 : index
    %6 = vector.load %arg4[%c0_7, %c0_8, %c0_9] : memref<1x8x1024xbf16, #tpu.memory_space<vmem>>, vector<1x8x1024xbf16>
    %7 = vector.shape_cast %6 : vector<1x8x1024xbf16> to vector<8x1024xbf16>
    %cst = arith.constant dense<0.000000e+00> : vector<32x1024xf32>
    %8 = tpu.matmul %5, %7, %cst {dimension_numbers = #tpu.dot_dimension_numbers<[1], [0], [0], [1], [0, 0, 1, 1], [], []>} : vector<32x8xbf16>, vector<8x1024xbf16>, vector<32x1024xf32> -> vector<32x1024xf32>
    %c0_10 = arith.constant 0 : index
    %c0_11 = arith.constant 0 : index
    %9 = vector.load %arg6[%c0_10, %c0_11] : memref<32x1xf32, #tpu.memory_space<vmem>>, vector<32x1xf32>
    %10 = vector.broadcast %9 : vector<32x1xf32> to vector<32x1024xf32>
    %11 = arith.addf %8, %10 : vector<32x1024xf32>
    %12 = vector.broadcast %4 : vector<32x1xf32> to vector<32x1024xf32>
    %13 = arith.mulf %2, %12 : vector<32x1024xf32>
    %14 = arith.addf %13, %11 : vector<32x1024xf32>
    %c0_12 = arith.constant 0 : index
    %c0_13 = arith.constant 0 : index
    %c0_14 = arith.constant 0 : index
    %15 = vector.load %arg7[%c0_12, %c0_13, %c0_14] : memref<1x32x1024xf32, #tpu.memory_space<vmem>>, vector<1x32x1024xf32>
    %16 = vector.shape_cast %15 : vector<1x32x1024xf32> to vector<32x1024xf32>
    %17 = vector.shape_cast %14 : vector<32x1024xf32> to vector<1x32x1024xf32>
    tpu.vector_store %arg7[%c0_12, %c0_13, %c0_14], %17 {strides = array<i32>} : memref<1x32x1024xf32, #tpu.memory_space<vmem>>, vector<1x32x1024xf32>,
    return
  }
  func.func @transform_0(%arg0: i32, %arg1: i32) -> (i32, i32, i32) {
    %c1_i32 = arith.constant 1 : i32
    %0 = arith.addi %arg1, %c1_i32 : i32
    %c0_i32 = arith.constant 0 : i32
    %c0_i32_0 = arith.constant 0 : i32
    return %arg0, %c0_i32, %0 : i32, i32, i32
  }
  func.func @transform_1(%arg0: i32, %arg1: i32) -> (i32, i32, i32) {
    %c0_i32 = arith.constant 0 : i32
    %c0_i32_0 = arith.constant 0 : i32
    %c0_i32_1 = arith.constant 0 : i32
    return %arg0, %c0_i32, %c0_i32_0 : i32, i32, i32
  }
  func.func @transform_2(%arg0: i32, %arg1: i32) -> (i32, i32, i32) {
    %c1_i32 = arith.constant 1 : i32
    %0 = arith.addi %arg1, %c1_i32 : i32
    %c0_i32 = arith.constant 0 : i32
    %c0_i32_0 = arith.constant 0 : i32
    return %arg0, %c0_i32, %0 : i32, i32, i32
  }
  func.func @transform_3(%arg0: i32, %arg1: i32) -> (i32, i32) {
    %c0_i32 = arith.constant 0 : i32
    %c0_i32_0 = arith.constant 0 : i32
    %c0_i32_1 = arith.constant 0 : i32
    return %c0_i32, %c0_i32_0 : i32, i32
  }
  func.func @transform_4(%arg0: i32, %arg1: i32) -> (i32, i32) {
    %c0_i32 = arith.constant 0 : i32
    %c0_i32_0 = arith.constant 0 : i32
    %c0_i32_1 = arith.constant 0 : i32
    return %c0_i32, %c0_i32_0 : i32, i32
  }
  func.func @transform_5(%arg0: i32, %arg1: i32) -> (i32, i32, i32) {
    %c1_i32 = arith.constant 1 : i32
    %0 = arith.addi %arg1, %c1_i32 : i32
    %c0_i32 = arith.constant 0 : i32
    %c0_i32_0 = arith.constant 0 : i32
    return %arg0, %c0_i32, %0 : i32, i32, i32
  }
}

</mosaic_0001>

<bundles_post_ra>
// kernel: tile.8
= control target key start
LH: loop header
LB: loop body
LE: loop exit
PB: predicated region body
PF: predicated region fallthrough
CT: control target
= control target key end

     0   :  { %s22_s0 = inlined_call_operand.vmem [shape: f32[128], index: 0, kind: input, shape index: {}]   ;;  %s23_s1 = inlined_call_operand.vmem [shape: f32[8,128], index: 1, kind: output, shape index: {}]  }
   0x1   :  { %v4_v0 = vld [vmem:[%s22_s0] ss:$0 sm:$0xff] }
   0x2   :  { %5 = vst [vmem:[%s23_s1] sm:$0xff] %v4_v0 }

// kernel: res_block_forward.5
= control target key start
LH: loop header
LB: loop body
LE: loop exit
PB: predicated region body
PF: predicated region fallthrough
CT: control target
= control target key end

     0   :  { %s1283_s18 = smov 0   ;;  %s1285_s19 = smov 0   ;;  %s1677_s0 = inlined_call_operand.vmem [shape: bf16[2,32,4096], index: 0, kind: input, shape index: {}]   ;;  %s1678_s1 = inlined_call_operand.vmem [shape: f32[2,32,1], index: 1, kind: input, shape index: {}]   ;;  %s1679_s2 = inlined_call_operand.vmem [shape: bf16[2,8,4096], index: 2, kind: input, shape index: {}]   ;;  %s1680_s3 = inlined_call_operand.vmem [shape: bf16[32,8], index: 3, kind: input, shape index: {}]   ;;  %s1681_s4 = inlined_call_operand.vmem [shape: f32[32,1], index: 4, kind: input, shape index: {}]   ;;  %s1682_s5 = inlined_call_operand.vmem [shape: f32[2,32,4096], index: 5, kind: output, shape index: {}]  }
   0x1   :  { %s1287_s20 = smov 0   ;;  %s1289_s21 = smov 0  }
   0x2   :  { %s1291_s22 = smov 0   ;;  %s1293_s23 = smov 0  }
   0x3   :  { %s1295_s24 = smov 0  }
   0x4 LB: > { %s24_s25 = sadd.s32 1, %s1242_s22  ;;  %s27_s26 = sadd.s32 1, %s1246_s23  ;;  %s1250_s24 = sphi %s1295_s24, %s15_s24   ;;  %s1246_s23 = sphi %s1293_s23, %s1691_s23   ;;  %s1242_s22 = sphi %s1291_s22, %s1690_s22   ;;  %s1238_s21 = sphi %s1289_s21, %s1689_s21   ;;  %s1234_s20 = sphi %s1287_s20, %s1688_s20   ;;  %s1230_s19 = sphi %s1285_s19, %s1687_s19   ;;  %s1226_s18 = sphi %s1283_s18, %s1686_s18  }
   0x5   : > { %p25_p0 = scmp.ge.s32.totalorder %s24_s25, 2  ;;  %s1032_s27 = sadd.s32 4294967295, %s1250_s24  }
   0x6   : > { %p45_p1 = scmp.ne.s32.totalorder %s1230_s19, %s1226_s18  ;;  %p46_p2 = scmp.eq.s32.totalorder %s1250_s24, 0 }
   0x7   : > { %s1323_s28 = scalar_select %p25_p0, 0, %s24_s25  }
   0x8   : > { %s1693_s26 = smov (!%p25_p0, %s27_s26), %s1246_s23  ;;  %p47_p4 = por %p46_p2, %p45_p1 }
   0x9   : > { %s32_s29 = sadd.s32 1, %s1323_s28  ;;  %p29_p3 = scmp.ge.s32.totalorder %s1693_s26, 2 }
   0xa   : > { %s34_s30 = ssub.s32 %s24_s25, %s32_s29  ;;  %p177_p5 = scmp.eq.s32.totalorder %s1032_s27, 3 }
   0xb   : > { %s1695_s26 = smov (%p29_p3, %s1693_s26), 0  ;;  %s38_s9 = sadd.s32 1, %s1230_s19 }
   0xc   : > { %p1330_p6 = por %p177_p5, %p45_p1  ;;  %s33_s7 = ssub.s32 %s1246_s23, %s1695_s26 }
   0xd   : > { %s35_s8 = sor.u32 %s34_s30, %s33_s7  ;;  %p1035_p8 = scmp.ge.s32.totalorder %s1250_s24, 4 }
   0xe   : > { %p36_p7 = scmp.eq.s32.totalorder %s35_s8, 0 }
   0xf   : > { %205 = sbr.rel (%p1035_p8) target bundleno = 37 (0x25), region = 24 }
  0x10   : > { %s1338_s10 = scalar_select %p36_p7, %s1230_s19, %s38_s9  }
  0x16   : > { %208 = sbr.rel (!%p47_p4) target bundleno = 37 (0x25), region = 28  ;;  %s210_s11 = sand.u32 (%p47_p4), 1, %s1230_s19  }
  0x17   : > { %s1037_s12 = sshll.u32 (%p47_p4), %s1242_s22, 3  ;;  %s1036_s13 = sshll.u32 (%p47_p4), %s210_s11, 7 }
  0x18   : > { %s1038_s14 = sshll.u32 (%p47_p4), %s1246_s23, 7  ;;  %s212_s29 = scalar_lea.vmem (%p47_p4), [#allocation2], %s1036_s13 }
  0x19   : > { %s942_s15 = sadd.s32 (%p47_p4), %s1038_s14, %s1037_s12 }
  0x1a   : > { %s1039_s16 = sshll.u32 (%p47_p4), %s942_s15, 2 }
  0x1b   : > { %s1347_s27 = scalar_lea.vmem (%p47_p4), %s1677_s0, %s1039_s16 }
  0x1c   : > { %v1040_v0 = vld [vmem:[%s1347_s27 + $0x20] sm:$0xff] (%p47_p4)  ;;  %v1041_v1 = vld [vmem:[%s1347_s27 + $0x28] sm:$0xff] (%p47_p4)  ;;  %v1042_v2 = vld [vmem:[%s1347_s27 + $0x30] sm:$0xff] (%p47_p4) }
  0x1d   : > { %232 = vst [vmem:[%s212_s29] sm:$0xff] %v1040_v0  ;;  %234 = vst [vmem:[%s212_s29 + $0x8] sm:$0xff] %v1041_v1  ;;  %v1043_v3 = vld [vmem:[%s1347_s27 + $0x38] sm:$0xff]  ;;  %v1044_v4 = vld [vmem:[%s1347_s27 + $0xa0] sm:$0xff] }
  0x1e   : > { %236 = vst [vmem:[%s212_s29 + $0x10] sm:$0xff] %v1042_v2  ;;  %v1045_v5 = vld [vmem:[%s1347_s27 + $0xa8] sm:$0xff]  ;;  %238 = vst [vmem:[%s212_s29 + $0x18] sm:$0xff] %v1043_v3  ;;  %v1046_v6 = vld [vmem:[%s1347_s27 + $0xb0] sm:$0xff] }
  0x1f   : > { %240 = vst [vmem:[%s212_s29 + $0x20] sm:$0xff] %v1044_v4  ;;  %242 = vst [vmem:[%s212_s29 + $0x28] sm:$0xff] %v1045_v5  ;;  %v1047_v7 = vld [vmem:[%s1347_s27 + $0xb8] sm:$0xff]  ;;  %v1048_v8 = vld [vmem:[%s1347_s27 + $0x120] sm:$0xff] }
  0x20   : > { %244 = vst [vmem:[%s212_s29 + $0x30] sm:$0xff] %v1046_v6  ;;  %246 = vst [vmem:[%s212_s29 + $0x38] sm:$0xff] %v1047_v7  ;;  %v1049_v9 = vld [vmem:[%s1347_s27 + $0x128] sm:$0xff]  ;;  %v1050_v10 = vld [vmem:[%s1347_s27 + $0x130] sm:$0xff] }
  0x21   : > { %248 = vst [vmem:[%s212_s29 + $0x40] sm:$0xff] %v1048_v8  ;;  %v1051_v11 = vld [vmem:[%s1347_s27 + $0x138] sm:$0xff]  ;;  %250 = vst [vmem:[%s212_s29 + $0x48] sm:$0xff] %v1049_v9  ;;  %v1052_v12 = vld [vmem:[%s1347_s27 + $0x1a0] sm:$0xff] }
  0x22   : > { %252 = vst [vmem:[%s212_s29 + $0x50] sm:$0xff] %v1050_v10  ;;  %254 = vst [vmem:[%s212_s29 + $0x58] sm:$0xff] %v1051_v11  ;;  %v1053_v13 = vld [vmem:[%s1347_s27 + $0x1a8] sm:$0xff]  ;;  %v1054_v14 = vld [vmem:[%s1347_s27 + $0x1b0] sm:$0xff] }
  0x23   : > { %256 = vst [vmem:[%s212_s29 + $0x60] sm:$0xff] %v1052_v12  ;;  %258 = vst [vmem:[%s212_s29 + $0x68] sm:$0xff] %v1053_v13  ;;  %v1055_v15 = vld [vmem:[%s1347_s27 + $0x1b8] sm:$0xff] }
  0x24   : > { %260 = vst [vmem:[%s212_s29 + $0x70] sm:$0xff] %v1054_v14  ;;  %262 = vst [vmem:[%s212_s29 + $0x78] sm:$0xff] %v1055_v15 }
  0x25 PF: > { %p1056_p9 = scmp.ge.s32.totalorder %s1250_s24, 1  ;;  %p290_p10 = scmp.lt.s32.totalorder %s1250_s24, 5 }
  0x27   : > { %p291_p11 = pnand %p1056_p9, %p290_p10 }
  0x28   : > { %p340_p12 = scmp.lt.s32.totalorder (!%p291_p11), %s1238_s21, 1  ;;  %s1683_s30 = sshll.u32 (!%p291_p11), %s1234_s20, 3  ;;  %v1252_v16 = vmov (!%p291_p11), 0   ;;  %v420_v17 = vld [vmem:[%s1681_s4] sm:$0xff] (!%p291_p11)  ;;  %v422_v18 = vld [vmem:[%s1681_s4 + $0x10] sm:$0xff] (!%p291_p11)  ;;  %v421_v19 = vld [vmem:[%s1681_s4 + $0x8] sm:$0xff] (!%p291_p11) }
  0x29   : > { %294 = sbr.rel (%p291_p11) target bundleno = 317 (0x13d), region = 59  ;;  %s1126_s7 = sadd.s32 (!%p291_p11), 8, %s1683_s30  ;;  %538 = vmatprep.mubr.bf16.mxu0 (!%p291_p11), %v1252_v16  ;;  %591 = vmatprep.mubr.bf16.mxu1 (!%p291_p11), %v1252_v16  ;;  %v423_v20 = vld [vmem:[%s1681_s4 + $0x18] sm:$0xff] (!%p291_p11)  ;;  %vm481_vm0 = vcmask (!%p291_p11), 1043456   ;;  %v1190_v37 = vld [vmem:[%s1680_s3] sm:$0xff] (!%p291_p11)   ;;  %vm474_vm1 = vcmask (!%p291_p11), 64512  }
  0x2a   : > { %1184 = vset.pattern.permute.xlu0 (!%p291_p11), %v1252_v16  ;;  %1185 = vset.pattern.permute.xlu1 (!%p291_p11), %v1252_v16  ;;  %p349_p13 = scmp.lt.s32.totalorder (!%p291_p11), %s1126_s7, 31  ;;  %v1195_v42 = vld [vmem:[%s1680_s3 + $0x8] sm:$0xff] (!%p291_p11)   ;;  %s297_s16 = sand.u32 (!%p291_p11), 1, %s1226_s18  }
  0x2b   : > { %426 = vperm.xlu0 (!%p291_p11), %1184, %v420_v17   ;;  %436 = vperm.xlu1 (!%p291_p11), %1185, %v422_v18   ;;  %s1057_s17 = sshll.u32 (!%p291_p11), %s297_s16, 7  ;;  %s1447_s18 = sshll.u32 (!%p291_p11), %s297_s16, 8 }
  0x2c   : > { %s1431_s25 = scalar_lea.vmem (!%p291_p11), [#allocation2], %s1057_s17  ;;  %s1480_s27 = scalar_lea.vmem (!%p291_p11), [#allocation3], %s1447_s18 }
  0x2d   : > { %v360_v47 = vld [vmem:[%s1431_s25] sm:$0xff] (!%p291_p11)  ;;  %v361_v48 = vld [vmem:[%s1431_s25 + $0x8] sm:$0xff] (!%p291_p11) }
  0x2e   : > { %v364_v49 = vld [vmem:[%s1431_s25 + $0x20] sm:$0xff] (!%p291_p11)  ;;  %v365_v50 = vld [vmem:[%s1431_s25 + $0x28] sm:$0xff] (!%p291_p11)  ;;  %v376_v51 = vunpack.c.l.bf16 (!%p291_p11), %v360_v47  ;;  %v378_v52 = vunpack.c.l.bf16 (!%p291_p11), %v361_v48  ;;  %v377_v54 = vunpack.c.h.bf16 (!%p291_p11), %v360_v47  ;;  %v379_v55 = vunpack.c.h.bf16 (!%p291_p11), %v361_v48 }
  0x2f   : > { %431 = vperm.xlu0 (!%p291_p11), %1184, %v421_v19   ;;  %441 = vperm.xlu1 (!%p291_p11), %1185, %v423_v20   ;;  %v1440_v56 = vld [vmem:[%s1431_s25 + $0x40] sm:$0xff] (!%p291_p11)  ;;  %v1443_v57 = vld [vmem:[%s1431_s25 + $0x48] sm:$0xff] (!%p291_p11)  ;;  %v384_v58 = vunpack.c.l.bf16 (!%p291_p11), %v364_v49  ;;  %v386_v59 = vunpack.c.l.bf16 (!%p291_p11), %v365_v50  ;;  %v385_v61 = vunpack.c.h.bf16 (!%p291_p11), %v364_v49  ;;  %v387_v62 = vunpack.c.h.bf16 (!%p291_p11), %v365_v50 }
  0x30   : > { %s341_s8 = scalar_select %p340_p12, %s1238_s21, 1  ;;  %v392_v1 = vunpack.c.l.bf16 %v1440_v56  ;;  %v394_v2 = vunpack.c.l.bf16 %v1443_v57  ;;  %v393_v7 = vunpack.c.h.bf16 %v1440_v56  ;;  %v395_v8 = vunpack.c.h.bf16 %v1443_v57 }
  0x31   : > { %s1697_s7 = smov (!%p349_p13, %s1126_s7), 31  ;;  %s1088_s29 = sshll.u32 (%p1330_p6), %s1238_s21, 7 }
  0x32   : > { %s1124_s14 = sshll.u32 %s341_s8, 5  ;;  %s1685_s6 = sshll.u32 (%p1330_p6), %s1234_s20, 3 }
  0x33   : > { %s344_s9 = scalar_lea.vmem %s1678_s1, %s1124_s14  ;;  %s352_s11 = sadd.s32 %s1124_s14, %s1697_s7 }
  0x34   : > { %s1063_s30 = sshll.u32 %s352_s11, 2  ;;  %v408_v21 = vld [vmem:[%s344_s9] sm:$0xff]  ;;  %v409_v22 = vld [vmem:[%s344_s9 + $0x8] sm:$0xff]  ;;  %v410_v38 = vld [vmem:[%s344_s9 + $0x10] sm:$0xff] }
  0x35   : > { %s354_s13 = scalar_lea.vmem %s1679_s2, %s1063_s30  ;;  %720 = vperm.xlu0 %1184, %v408_v21   ;;  %725 = vperm.xlu1 %1185, %v409_v22   ;;  %v411_v39 = vld [vmem:[%s344_s9 + $0x18] sm:$0xff]  ;;  %v372_v21 = vld [vmem:[%s1431_s25 + $0x60] sm:$0xff]  ;;  %v373_v22 = vld [vmem:[%s1431_s25 + $0x68] sm:$0xff]  ;;  %s974_s9 = sadd.s32 (%p1330_p6), %s1685_s6, %s1088_s29 }
  0x36   : > { %v416_v23 = vld [vmem:[%s354_s13] sm:$0xff]  ;;  %v417_v24 = vld [vmem:[%s354_s13 + $0x8] sm:$0xff]  ;;  %v418_v25 = vld [vmem:[%s354_s13 + $0x10] sm:$0xff]  ;;  %v401_v47 = vunpack.c.h.bf16 %v372_v21  ;;  %v403_v48 = vunpack.c.h.bf16 %v373_v22  ;;  %s1089_s11 = sshll.u32 (%p1330_p6), %s974_s9, 3 }
  0x37   : > { %v1067_v26 = vcombine.high %v416_v23, %v416_v23  ;;  %v1069_v27 = vcombine.high %v417_v24, %v417_v24  ;;  %v1066_v28 = vcombine.low %v416_v23, %v416_v23  ;;  %v1068_v29 = vcombine.low %v417_v24, %v417_v24  ;;  %v419_v30 = vld [vmem:[%s354_s13 + $0x18] sm:$0xff]  ;;  %s1599_s13 = scalar_lea.vmem (%p1330_p6), %s1682_s5, %s1089_s11 }
  0x38   : > { %v1071_v31 = vcombine.high %v418_v25, %v418_v25  ;;  %v1073_v32 = vcombine.high %v419_v30, %v419_v30  ;;  %v1070_v33 = vcombine.low %v418_v25, %v418_v25  ;;  %v1072_v34 = vcombine.low %v419_v30, %v419_v30 }
  0x39   : > { %1074 = vmatprep.subr.msk.bf16.mxu0 %vm481_vm0, %v1067_v26  ;;  %1077 = vmatprep.subr.msk.bf16.mxu1 %vm481_vm0, %v1069_v27  ;;  %v483_v35 = vsel %vm481_vm0, %v1066_v28, 0  ;;  %v489_v36 = vsel %vm481_vm0, %v1068_v29, 0 }
  0x3a   : > { %507 = vmatpush1.bf16.msra.mxu0 %v483_v35  ;;  %560 = vmatpush1.bf16.msra.mxu1 %v489_v36  ;;  %v495_v40 = vsel %vm481_vm0, %v1070_v33, 0  ;;  %v501_v41 = vsel %vm481_vm0, %v1072_v34, 0  ;;  %v1474_v34 = vld [vmem:[%s1431_s25 + $0x10] sm:$0xff]  ;;  %v1477_v35 = vld [vmem:[%s1431_s25 + $0x18] sm:$0xff] }
  0x3b   : > { %1080 = vmatprep.subr.msk.bf16.mxu0 %vm481_vm0, %v1071_v31  ;;  %1083 = vmatprep.subr.msk.bf16.mxu1 %vm481_vm0, %v1073_v32 }
  0x3c   : > { %730 = vperm.xlu0 %1184, %v410_v38   ;;  %735 = vperm.xlu1 %1185, %v411_v39   ;;  %v400_v38 = vunpack.c.l.bf16 %v372_v21  ;;  %v402_v39 = vunpack.c.l.bf16 %v373_v22  ;;  %v1515_v21 = vld [vmem:[%s1431_s25 + $0x50] sm:$0xff]  ;;  %v1518_v22 = vld [vmem:[%s1431_s25 + $0x58] sm:$0xff] }
  0x3d   : > { %1075 = vmatmul.mubr.msk.bf16.vlgmr.msra.gmra.mrb[0].mxu0 %vm474_vm1, %v1190_v37  ;;  %1078 = vmatmul.mubr.msk.bf16.vlgmr.msra.gmra.mrb[0].mxu1 %vm474_vm1, %v1190_v37 }
  0x3e   : > { %613 = vmatpush1.bf16.msra.mxu0 %v495_v40  ;;  %666 = vmatpush1.bf16.msra.mxu1 %v501_v41 }
  0x3f   : > { %548 = vmatprep.mubr.bf16.mxu0 %v1252_v16  ;;  %601 = vmatprep.mubr.bf16.mxu1 %v1252_v16 }
  0x45   : > { %1076 = vmatmul.mubr.msk.bf16.gmra.mrb[4].mxu0 %vm474_vm1, %v1195_v42  ;;  %1079 = vmatmul.mubr.msk.bf16.gmra.mrb[4].mxu1 %vm474_vm1, %v1195_v42 }
  0x46   : > { %644 = vmatprep.mubr.bf16.mxu0 %v1252_v16  ;;  %697 = vmatprep.mubr.bf16.mxu1 %v1252_v16 }
  0x4d   : > { %1081 = vmatmul.mubr.msk.bf16.vlgmr.msra.gmra.mrb[8].mxu0 %vm474_vm1, %v1190_v37  ;;  %1084 = vmatmul.mubr.msk.bf16.vlgmr.msra.gmra.mrb[8].mxu1 %vm474_vm1, %v1190_v37 }
  0x4e   : > { %654 = vmatprep.mubr.bf16.mxu0 %v1252_v16  ;;  %707 = vmatprep.mubr.bf16.mxu1 %v1252_v16 }
  0x55   : > { %1082 = vmatmul.mubr.msk.bf16.gmra.mrb[12].mxu0 %vm474_vm1, %v1195_v42  ;;  %1085 = vmatmul.mubr.msk.bf16.gmra.mrb[12].mxu1 %vm474_vm1, %v1195_v42 }
  0xaa   : > { %v1423_v43 = vpop.permute.xlu0 %426  ;;  %v1425_v44 = vpop.permute.xlu1 %436 }
  0xae   : > { %v1427_v45 = vpop.permute.xlu0 %431  ;;  %v1429_v46 = vpop.permute.xlu1 %441 }
  0xb4   : > { %v1437_v53 = vpop.permute.xlu0 %720  ;;  %v1445_v60 = vpop.permute.xlu1 %725 }
  0xb5   : > { %v738_v63 = vmul.f32 %v1437_v53, %v376_v51  ;;  %v740_v0 = vmul.f32 %v1437_v53, %v378_v52  ;;  %v739_v5 = vmul.f32 %v1437_v53, %v377_v54  ;;  %v741_v6 = vmul.f32 %v1437_v53, %v379_v55 }
  0xb6   : > { %v746_v13 = vmul.f32 %v1445_v60, %v384_v58  ;;  %v748_v14 = vmul.f32 %v1445_v60, %v386_v59  ;;  %v747_v19 = vmul.f32 %v1445_v60, %v385_v61  ;;  %v749_v20 = vmul.f32 %v1445_v60, %v387_v62 }
  0xb7   : > { %v380_v51 = vunpack.c.l.bf16 %v1474_v34  ;;  %v382_v52 = vunpack.c.l.bf16 %v1477_v35  ;;  %v381_v58 = vunpack.c.h.bf16 %v1474_v34  ;;  %v383_v59 = vunpack.c.h.bf16 %v1477_v35 }
  0xb8   : > { %v396_v34 = vunpack.c.l.bf16 %v1515_v21  ;;  %v398_v35 = vunpack.c.l.bf16 %v1518_v22 }
  0xbb   : > { %v1471_v33 = vpop.permute.xlu0 %730  ;;  %v1486_v42 = vpop.permute.xlu1 %735 }
  0xbc   : > { %v754_v49 = vmul.f32 %v1471_v33, %v392_v1  ;;  %v756_v50 = vmul.f32 %v1471_v33, %v394_v2  ;;  %v755_v56 = vmul.f32 %v1471_v33, %v393_v7  ;;  %v757_v57 = vmul.f32 %v1471_v33, %v395_v8 }
  0xbd   : > { %v762_v1 = vmul.f32 %v1486_v42, %v400_v38  ;;  %v764_v2 = vmul.f32 %v1486_v42, %v402_v39  ;;  %v763_v7 = vmul.f32 %v1486_v42, %v401_v47  ;;  %v765_v8 = vmul.f32 %v1486_v42, %v403_v48 }
  0xbe   : > { %v743_v38 = vmul.f32 %v1437_v53, %v381_v58  ;;  %v745_v39 = vmul.f32 %v1437_v53, %v383_v59  ;;  %v374_v59 = vld [vmem:[%s1431_s25 + $0x70] sm:$0xff] }
 0x110   : > { %v540_v3 = vpop.f32.mrb[0].mxu0  ;;  %v593_v4 = vpop.f32.mrb[0].mxu1 }
 0x111   : > { %v541_v9 = vadd.f32 %v540_v3, %v1423_v43  ;;  %v594_v10 = vadd.f32 %v593_v4, %v1423_v43  ;;  %v542_v11 = vpop.f32.mrb[1].mxu0  ;;  %v595_v12 = vpop.f32.mrb[1].mxu1 }
 0x112   : > { %v543_v15 = vadd.f32 %v542_v11, %v1423_v43  ;;  %v596_v16 = vadd.f32 %v595_v12, %v1423_v43  ;;  %v544_v17 = vpop.f32.mrb[2].mxu0  ;;  %v597_v18 = vpop.f32.mrb[2].mxu1 }
 0x113   : > { %v770_v23 = vadd.f32 %v738_v63, %v541_v9  ;;  %v772_v24 = vadd.f32 %v740_v0, %v594_v10  ;;  %v545_v25 = vadd.f32 %v544_v17, %v1427_v45  ;;  %v598_v26 = vadd.f32 %v597_v18, %v1427_v45  ;;  %v546_v27 = vpop.f32.mrb[3].mxu0  ;;  %v599_v28 = vpop.f32.mrb[3].mxu1  ;;  %v366_v9 = vld [vmem:[%s1431_s25 + $0x30] sm:$0xff]  ;;  %v367_v10 = vld [vmem:[%s1431_s25 + $0x38] sm:$0xff] }
 0x114   : > { %v771_v29 = vadd.f32 %v739_v5, %v543_v15  ;;  %v773_v30 = vadd.f32 %v741_v6, %v596_v16  ;;  %v547_v31 = vadd.f32 %v546_v27, %v1427_v45  ;;  %v600_v32 = vadd.f32 %v599_v28, %v1427_v45 }
 0x115   : > { %802 = vst [vmem:[%s1480_s27] sm:$0xff] %v770_v23  ;;  %804 = vst [vmem:[%s1480_s27 + $0x10] sm:$0xff] %v772_v24  ;;  %v778_v36 = vadd.f32 %v746_v13, %v545_v25  ;;  %v780_v37 = vadd.f32 %v748_v14, %v598_v26  ;;  %v388_v25 = vunpack.c.l.bf16 %v366_v9  ;;  %v390_v26 = vunpack.c.l.bf16 %v367_v10 }
 0x116   : > { %803 = vst [vmem:[%s1480_s27 + $0x8] sm:$0xff] %v771_v29  ;;  %805 = vst [vmem:[%s1480_s27 + $0x18] sm:$0xff] %v773_v30  ;;  %v779_v40 = vadd.f32 %v747_v19, %v547_v31  ;;  %v781_v41 = vadd.f32 %v749_v20, %v600_v32  ;;  %v389_v29 = vunpack.c.h.bf16 %v366_v9  ;;  %v391_v30 = vunpack.c.h.bf16 %v367_v10 }
 0x117   : > { %810 = vst [vmem:[%s1480_s27 + $0x40] sm:$0xff] %v778_v36  ;;  %812 = vst [vmem:[%s1480_s27 + $0x50] sm:$0xff] %v780_v37  ;;  %v742_v31 = vmul.f32 %v1437_v53, %v380_v51  ;;  %v744_v32 = vmul.f32 %v1437_v53, %v382_v52  ;;  %v750_v51 = vmul.f32 %v1445_v60, %v388_v25 }
 0x118   : > { %811 = vst [vmem:[%s1480_s27 + $0x48] sm:$0xff] %v779_v40  ;;  %813 = vst [vmem:[%s1480_s27 + $0x58] sm:$0xff] %v781_v41  ;;  %v550_v54 = vpop.f32.mrb[4].mxu0  ;;  %v603_v55 = vpop.f32.mrb[4].mxu1  ;;  %v397_v40 = vunpack.c.h.bf16 %v1515_v21  ;;  %v399_v41 = vunpack.c.h.bf16 %v1518_v22  ;;  %v752_v52 = vmul.f32 %v1445_v60, %v390_v26  ;;  %v753_v58 = vmul.f32 %v1445_v60, %v391_v30 }
 0x119   : > { %v551_v61 = vadd.f32 %v550_v54, %v1425_v44  ;;  %v604_v62 = vadd.f32 %v603_v55, %v1425_v44  ;;  %v552_v63 = vpop.f32.mrb[5].mxu0  ;;  %v605_v0 = vpop.f32.mrb[5].mxu1 }
 0x11a   : > { %v553_v3 = vadd.f32 %v552_v63, %v1425_v44  ;;  %v606_v4 = vadd.f32 %v605_v0, %v1425_v44  ;;  %v554_v5 = vpop.f32.mrb[6].mxu0  ;;  %v607_v6 = vpop.f32.mrb[6].mxu1 }
 0x11b   : > { %v786_v11 = vadd.f32 %v754_v49, %v551_v61  ;;  %v788_v12 = vadd.f32 %v756_v50, %v604_v62  ;;  %v555_v13 = vadd.f32 %v554_v5, %v1429_v46  ;;  %v608_v14 = vadd.f32 %v607_v6, %v1429_v46  ;;  %v556_v15 = vpop.f32.mrb[7].mxu0  ;;  %v609_v16 = vpop.f32.mrb[7].mxu1  ;;  %v375_v61 = vld [vmem:[%s1431_s25 + $0x78] sm:$0xff] }
 0x11c   : > { %v787_v17 = vadd.f32 %v755_v56, %v553_v3  ;;  %v789_v18 = vadd.f32 %v757_v57, %v606_v4  ;;  %v557_v19 = vadd.f32 %v556_v15, %v1429_v46  ;;  %v610_v20 = vadd.f32 %v609_v16, %v1429_v46 }
 0x11d   : > { %818 = vst [vmem:[%s1480_s27 + $0x80] sm:$0xff] %v786_v11  ;;  %820 = vst [vmem:[%s1480_s27 + $0x90] sm:$0xff] %v788_v12  ;;  %v794_v23 = vadd.f32 %v762_v1, %v555_v13  ;;  %v796_v24 = vadd.f32 %v764_v2, %v608_v14  ;;  %v751_v57 = vmul.f32 %v1445_v60, %v389_v29  ;;  %v406_v9 = vunpack.c.l.bf16 %v375_v61 }
 0x11e   : > { %819 = vst [vmem:[%s1480_s27 + $0x88] sm:$0xff] %v787_v17  ;;  %821 = vst [vmem:[%s1480_s27 + $0x98] sm:$0xff] %v789_v18  ;;  %v795_v27 = vadd.f32 %v763_v7, %v557_v19  ;;  %v797_v28 = vadd.f32 %v765_v8, %v610_v20  ;;  %v404_v8 = vunpack.c.l.bf16 %v374_v59  ;;  %v405_v12 = vunpack.c.h.bf16 %v374_v59 }
 0x11f   : > { %826 = vst [vmem:[%s1480_s27 + $0xc0] sm:$0xff] %v794_v23  ;;  %828 = vst [vmem:[%s1480_s27 + $0xd0] sm:$0xff] %v796_v24  ;;  %v407_v13 = vunpack.c.h.bf16 %v375_v61  ;;  %v760_v16 = vmul.f32 %v1471_v33, %v398_v35  ;;  %v759_v17 = vmul.f32 %v1471_v33, %v397_v40  ;;  %v761_v18 = vmul.f32 %v1471_v33, %v399_v41 }
 0x120   : > { %827 = vst [vmem:[%s1480_s27 + $0xc8] sm:$0xff] %v795_v27  ;;  %829 = vst [vmem:[%s1480_s27 + $0xd8] sm:$0xff] %v797_v28  ;;  %v646_v36 = vpop.f32.mrb[8].mxu0  ;;  %v699_v37 = vpop.f32.mrb[8].mxu1  ;;  %v766_v23 = vmul.f32 %v1486_v42, %v404_v8  ;;  %v768_v24 = vmul.f32 %v1486_v42, %v406_v9 }
 0x121   : > { %v647_v47 = vadd.f32 %v646_v36, %v1423_v43  ;;  %v700_v48 = vadd.f32 %v699_v37, %v1423_v43  ;;  %v648_v49 = vpop.f32.mrb[9].mxu0  ;;  %v701_v50 = vpop.f32.mrb[9].mxu1  ;;  %v769_v29 = vmul.f32 %v1486_v42, %v407_v13 }
 0x122   : > { %v649_v54 = vadd.f32 %v648_v49, %v1423_v43  ;;  %v702_v55 = vadd.f32 %v701_v50, %v1423_v43  ;;  %v650_v53 = vpop.f32.mrb[10].mxu0  ;;  %v703_v56 = vpop.f32.mrb[10].mxu1  ;;  %v863_v49 = vld [vmem:[%s1480_s27 + $0x10] sm:$0xff] (%p1330_p6)  ;;  %v865_v50 = vld [vmem:[%s1480_s27 + $0x18] sm:$0xff] (%p1330_p6) }
 0x123   : > { %v774_v62 = vadd.f32 %v742_v31, %v647_v47  ;;  %v776_v63 = vadd.f32 %v744_v32, %v700_v48  ;;  %v651_v0 = vadd.f32 %v650_v53, %v1427_v45  ;;  %v704_v1 = vadd.f32 %v703_v56, %v1427_v45  ;;  %v652_v2 = vpop.f32.mrb[11].mxu0  ;;  %v705_v43 = vpop.f32.mrb[11].mxu1  ;;  %v861_v48 = vld [vmem:[%s1480_s27 + $0x8] sm:$0xff] (%p1330_p6)  ;;  %v875_v53 = vld [vmem:[%s1480_s27 + $0x40] sm:$0xff] (%p1330_p6)  ;;  %1092 = vst [vmem:[%s1599_s13 + $0x50] sm:$0xff] (%p1330_p6), %v863_v49 }
 0x124   : > { %v775_v3 = vadd.f32 %v743_v38, %v649_v54  ;;  %v777_v4 = vadd.f32 %v745_v39, %v702_v55  ;;  %v653_v5 = vadd.f32 %v652_v2, %v1427_v45  ;;  %v706_v60 = vadd.f32 %v705_v43, %v1427_v45  ;;  %v877_v56 = vld [vmem:[%s1480_s27 + $0x48] sm:$0xff] (%p1330_p6)  ;;  %1091 = vst [vmem:[%s1599_s13 + $0x48] sm:$0xff] (%p1330_p6), %v861_v48  ;;  %v895_v2 = vld [vmem:[%s1480_s27 + $0x90] sm:$0xff] (%p1330_p6) }
 0x125   : > { %806 = vst [vmem:[%s1480_s27 + $0x20] sm:$0xff] %v774_v62  ;;  %808 = vst [vmem:[%s1480_s27 + $0x30] sm:$0xff] %v776_v63  ;;  %v782_v6 = vadd.f32 %v750_v51, %v651_v0  ;;  %v784_v7 = vadd.f32 %v752_v52, %v704_v1  ;;  %v758_v45 = vmul.f32 %v1471_v33, %v396_v34  ;;  %v891_v0 = vld [vmem:[%s1480_s27 + $0x80] sm:$0xff] (%p1330_p6)  ;;  %v893_v1 = vld [vmem:[%s1480_s27 + $0x88] sm:$0xff] (%p1330_p6) }
 0x126   : > { %807 = vst [vmem:[%s1480_s27 + $0x28] sm:$0xff] %v775_v3  ;;  %809 = vst [vmem:[%s1480_s27 + $0x38] sm:$0xff] %v777_v4  ;;  %v783_v10 = vadd.f32 %v751_v57, %v653_v5  ;;  %v785_v11 = vadd.f32 %v753_v58, %v706_v60  ;;  %v767_v33 = vmul.f32 %v1486_v42, %v405_v12  ;;  %v879_v57 = vld [vmem:[%s1480_s27 + $0x50] sm:$0xff] (%p1330_p6)  ;;  %v881_v58 = vld [vmem:[%s1480_s27 + $0x58] sm:$0xff] (%p1330_p6) }
 0x127   : > { %814 = vst [vmem:[%s1480_s27 + $0x60] sm:$0xff] %v782_v6  ;;  %816 = vst [vmem:[%s1480_s27 + $0x70] sm:$0xff] %v784_v7  ;;  %v897_v43 = vld [vmem:[%s1480_s27 + $0x98] sm:$0xff] (%p1330_p6)  ;;  %v907_v6 = vld [vmem:[%s1480_s27 + $0xc0] sm:$0xff] (%p1330_p6) }
 0x128   : > { %815 = vst [vmem:[%s1480_s27 + $0x68] sm:$0xff] %v783_v10  ;;  %817 = vst [vmem:[%s1480_s27 + $0x78] sm:$0xff] %v785_v11  ;;  %v656_v14 = vpop.f32.mrb[12].mxu0  ;;  %v709_v15 = vpop.f32.mrb[12].mxu1  ;;  %v909_v7 = vld [vmem:[%s1480_s27 + $0xc8] sm:$0xff] (%p1330_p6)  ;;  %v911_v8 = vld [vmem:[%s1480_s27 + $0xd0] sm:$0xff] (%p1330_p6) }
 0x129   : > { %v657_v19 = vadd.f32 %v656_v14, %v1425_v44  ;;  %v710_v20 = vadd.f32 %v709_v15, %v1425_v44  ;;  %v658_v21 = vpop.f32.mrb[13].mxu0  ;;  %v711_v22 = vpop.f32.mrb[13].mxu1  ;;  %1093 = vst [vmem:[%s1599_s13 + $0x58] sm:$0xff] (%p1330_p6), %v865_v50  ;;  %1098 = vst [vmem:[%s1599_s13 + $0x140] sm:$0xff] (%p1330_p6), %v875_v53  ;;  %v913_v9 = vld [vmem:[%s1480_s27 + $0xd8] sm:$0xff] (%p1330_p6) }
 0x12a   : > { %v659_v25 = vadd.f32 %v658_v21, %v1425_v44  ;;  %v712_v26 = vadd.f32 %v711_v22, %v1425_v44  ;;  %v660_v27 = vpop.f32.mrb[14].mxu0  ;;  %v713_v28 = vpop.f32.mrb[14].mxu1  ;;  %840 = sbr.rel (!%p1330_p6) target bundleno = 317 (0x13d), region = 67  ;;  %1099 = vst [vmem:[%s1599_s13 + $0x148] sm:$0xff] (%p1330_p6), %v877_v56  ;;  %1100 = vst [vmem:[%s1599_s13 + $0x150] sm:$0xff] (%p1330_p6), %v879_v57 }
 0x12b   : > { %v790_v30 = vadd.f32 %v758_v45, %v657_v19  ;;  %v792_v31 = vadd.f32 %v760_v16, %v710_v20  ;;  %v661_v32 = vadd.f32 %v660_v27, %v1429_v46  ;;  %v714_v34 = vadd.f32 %v713_v28, %v1429_v46  ;;  %v662_v35 = vpop.f32.mrb[15].mxu0  ;;  %v715_v44 = vpop.f32.mrb[15].mxu1  ;;  %1101 = vst [vmem:[%s1599_s13 + $0x158] sm:$0xff] (%p1330_p6), %v881_v58 }
 0x12c   : > { %v791_v36 = vadd.f32 %v759_v17, %v659_v25  ;;  %v793_v37 = vadd.f32 %v761_v18, %v712_v26  ;;  %v663_v38 = vadd.f32 %v662_v35, %v1429_v46  ;;  %v716_v39 = vadd.f32 %v715_v44, %v1429_v46  ;;  %v859_v46 = vld [vmem:[%s1480_s27] sm:$0xff] (%p1330_p6)  ;;  %v871_v54 = vld [vmem:[%s1480_s27 + $0x30] sm:$0xff] (%p1330_p6)  ;;  %1106 = vst [vmem:[%s1599_s13 + $0x240] sm:$0xff] (%p1330_p6), %v891_v0 }
 0x12d   : > { %822 = vst [vmem:[%s1480_s27 + $0xa0] sm:$0xff] %v790_v30  ;;  %824 = vst [vmem:[%s1480_s27 + $0xb0] sm:$0xff] %v792_v31  ;;  %v798_v42 = vadd.f32 %v766_v23, %v661_v32  ;;  %v800_v40 = vadd.f32 %v768_v24, %v714_v34  ;;  %v867_v51 = vld [vmem:[%s1480_s27 + $0x20] sm:$0xff] (%p1330_p6)  ;;  %v869_v52 = vld [vmem:[%s1480_s27 + $0x28] sm:$0xff] (%p1330_p6) }
 0x12e   : > { %823 = vst [vmem:[%s1480_s27 + $0xa8] sm:$0xff] %v791_v36  ;;  %825 = vst [vmem:[%s1480_s27 + $0xb8] sm:$0xff] %v793_v37  ;;  %v799_v41 = vadd.f32 %v767_v33, %v663_v38  ;;  %v801_v47 = vadd.f32 %v769_v29, %v716_v39  ;;  %v873_v55 = vld [vmem:[%s1480_s27 + $0x38] sm:$0xff] (%p1330_p6)  ;;  %v883_v59 = vld [vmem:[%s1480_s27 + $0x60] sm:$0xff] (%p1330_p6) }
 0x12f   : > { %830 = vst [vmem:[%s1480_s27 + $0xe0] sm:$0xff] %v798_v42  ;;  %832 = vst [vmem:[%s1480_s27 + $0xf0] sm:$0xff] %v800_v40  ;;  %v885_v61 = vld [vmem:[%s1480_s27 + $0x68] sm:$0xff] (%p1330_p6)  ;;  %v887_v62 = vld [vmem:[%s1480_s27 + $0x70] sm:$0xff] (%p1330_p6) }
 0x130   : > { %831 = vst [vmem:[%s1480_s27 + $0xe8] sm:$0xff] %v799_v41  ;;  %833 = vst [vmem:[%s1480_s27 + $0xf8] sm:$0xff] %v801_v47  ;;  %v889_v63 = vld [vmem:[%s1480_s27 + $0x78] sm:$0xff] (%p1330_p6) }
 0x131   : > { %1090 = vst [vmem:[%s1599_s13 + $0x40] sm:$0xff] %v859_v46  ;;  %1094 = vst [vmem:[%s1599_s13 + $0x60] sm:$0xff] %v867_v51 }
 0x132   : > { %1095 = vst [vmem:[%s1599_s13 + $0x68] sm:$0xff] %v869_v52  ;;  %1096 = vst [vmem:[%s1599_s13 + $0x70] sm:$0xff] %v871_v54 }
 0x133   : > { %1097 = vst [vmem:[%s1599_s13 + $0x78] sm:$0xff] %v873_v55  ;;  %1102 = vst [vmem:[%s1599_s13 + $0x160] sm:$0xff] %v883_v59 }
 0x134   : > { %1103 = vst [vmem:[%s1599_s13 + $0x168] sm:$0xff] %v885_v61  ;;  %1104 = vst [vmem:[%s1599_s13 + $0x170] sm:$0xff] %v887_v62  ;;  %v899_v3 = vld [vmem:[%s1480_s27 + $0xa0] sm:$0xff]  ;;  %v903_v5 = vld [vmem:[%s1480_s27 + $0xb0] sm:$0xff] }
 0x135   : > { %1105 = vst [vmem:[%s1599_s13 + $0x178] sm:$0xff] %v889_v63  ;;  %1107 = vst [vmem:[%s1599_s13 + $0x248] sm:$0xff] %v893_v1  ;;  %v901_v4 = vld [vmem:[%s1480_s27 + $0xa8] sm:$0xff]  ;;  %v905_v60 = vld [vmem:[%s1480_s27 + $0xb8] sm:$0xff] }
 0x136   : > { %1108 = vst [vmem:[%s1599_s13 + $0x250] sm:$0xff] %v895_v2  ;;  %1109 = vst [vmem:[%s1599_s13 + $0x258] sm:$0xff] %v897_v43  ;;  %v915_v10 = vld [vmem:[%s1480_s27 + $0xe0] sm:$0xff]  ;;  %v919_v12 = vld [vmem:[%s1480_s27 + $0xf0] sm:$0xff] }
 0x137   : > { %1110 = vst [vmem:[%s1599_s13 + $0x260] sm:$0xff] %v899_v3  ;;  %1111 = vst [vmem:[%s1599_s13 + $0x268] sm:$0xff] %v901_v4  ;;  %v917_v11 = vld [vmem:[%s1480_s27 + $0xe8] sm:$0xff]  ;;  %v921_v13 = vld [vmem:[%s1480_s27 + $0xf8] sm:$0xff] }
 0x138   : > { %1112 = vst [vmem:[%s1599_s13 + $0x270] sm:$0xff] %v903_v5  ;;  %1113 = vst [vmem:[%s1599_s13 + $0x278] sm:$0xff] %v905_v60 }
 0x139   : > { %1114 = vst [vmem:[%s1599_s13 + $0x340] sm:$0xff] %v907_v6  ;;  %1115 = vst [vmem:[%s1599_s13 + $0x348] sm:$0xff] %v909_v7 }
 0x13a   : > { %1116 = vst [vmem:[%s1599_s13 + $0x350] sm:$0xff] %v911_v8  ;;  %1117 = vst [vmem:[%s1599_s13 + $0x358] sm:$0xff] %v913_v9 }
 0x13b   : > { %1118 = vst [vmem:[%s1599_s13 + $0x360] sm:$0xff] %v915_v10  ;;  %1119 = vst [vmem:[%s1599_s13 + $0x368] sm:$0xff] %v917_v11 }
 0x13c   : > { %1120 = vst [vmem:[%s1599_s13 + $0x370] sm:$0xff] %v919_v12  ;;  %1121 = vst [vmem:[%s1599_s13 + $0x378] sm:$0xff] %v921_v13 }
 0x13d PF: > { %s15_s24 = sadd.s32 1, %s1250_s24   ;;  %s1686_s18 = smov %s1230_s19 }
 0x13e   : > { %p12_p0 = scmp.ge.s32.totalorder %s15_s24, 6   ;;  %s1687_s19 = smov %s1338_s10 }
 0x13f   : > { %s1688_s20 = smov %s1242_s22  ;;  %s1689_s21 = smov %s1246_s23 }
 0x140   : > { %s1690_s22 = smov %s1323_s28  ;;  %s1691_s23 = smov %s1695_s26 }
 0x141   :  { %14 = sbr.rel (!%p12_p0) target bundleno = 4 (0x4), region = 127 }

// kernel: res_block_forward.3
= control target key start
LH: loop header
LB: loop body
LE: loop exit
PB: predicated region body
PF: predicated region fallthrough
CT: control target
= control target key end

     0   :  { %s5632_s0 = inlined_call_operand.vmem [shape: bf16[2,8,4096], index: 0, kind: input, shape index: {}, may-alias: {0,1,2}]   ;;  %s5633_s1 = inlined_call_operand.vmem [shape: bf16[2,8,4096], index: 1, kind: input, shape index: {}, may-alias: {0,1,2}]   ;;  %s5634_s2 = inlined_call_operand.vmem [shape: bf16[2,8,4096], index: 2, kind: input, shape index: {}, may-alias: {0,1,2}]   ;;  %s5635_s3 = inlined_call_operand.vmem [shape: bf16[9,32,8], index: 3, kind: input, shape index: {}]   ;;  %s5636_s4 = inlined_call_operand.vmem [shape: f32[32,1], index: 4, kind: input, shape index: {}]   ;;  %s5637_s5 = inlined_call_operand.vmem [shape: f32[1,1024], index: 5, kind: input, shape index: {}]   ;;  %s5638_s6 = inlined_call_operand.vmem [shape: f32[2], index: 6, kind: input, shape index: {}]   ;;  %s5639_s7 = inlined_call_operand.vmem [shape: bf16[2,32,4096], index: 7, kind: output, shape index: {}]  }
   0x1   :  { %5644 = sst [smem:[#allocation12_spill]] %s5638_s6 }
   0x2   :  { %12 = vsyncpa [#allocation4], 0  ;;  %s4715_s24 = smov 0   ;;  %s4717_s25 = smov 0  }
   0x3   :  { %s4719_s26 = smov 0   ;;  %s4721_s27 = smov 0  }
   0x4   :  { %s4723_s28 = smov 0   ;;  %s4725_s29 = smov 0  }
   0x5   :  { %s4727_s30 = smov 0  }
   0x6 LB: > { %5645 = sst [smem:[#allocation7_spill]] %s4661_s28  ;;  %s3953_s8 = sadd.s32 4294967295, %s4669_s30   ;;  %s4669_s30 = sphi %s4727_s30, %s18_s30   ;;  %s4665_s29 = sphi %s4725_s29, %s5675_s29   ;;  %s4661_s28 = sphi %s4723_s28, %s5674_s28   ;;  %s4657_s27 = sphi %s4721_s27, %s5678_s27   ;;  %s4653_s26 = sphi %s4719_s26, %s5672_s26   ;;  %s4649_s25 = sphi %s4717_s25, %s5677_s25   ;;  %s4645_s24 = sphi %s4715_s24, %s5676_s24  }
   0x7   : > { %5646 = sst [smem:[#allocation8_spill]] %s4665_s29  ;;  %s27_s9 = sadd.s32 1, %s4661_s28 }
   0x8   : > { %p28_p0 = scmp.ge.s32.totalorder %s27_s9, 2  ;;  %s30_s10 = sadd.s32 1, %s4665_s29 }
   0x9   : > { %s221_s11 = sadd.s32 1, %s4649_s25  ;;  %p231_p1 = scmp.ne.s32.totalorder %s4649_s25, %s4645_s24 }
   0xa   : > { %s4756_s12 = scalar_select %p28_p0, 0, %s27_s9  }
   0xb   : > { %s5680_s10 = smov (!%p28_p0, %s30_s10), %s4665_s29  ;;  %p232_p2 = scmp.eq.s32.totalorder %s3953_s8, 3 }
   0xc   : > { %5647 = sst [smem:[#allocation9_spill]] %s4756_s12  ;;  %s215_s13 = sadd.s32 1, %s4756_s12 }
   0xd   : > { %p32_p3 = scmp.ge.s32.totalorder %s5680_s10, 2  ;;  %s217_s14 = ssub.s32 %s27_s9, %s215_s13 }
   0xe   : > { %p4760_p4 = por %p232_p2, %p231_p1  ;;  %p3961_p5 = scmp.ge.s32.totalorder %s4669_s30, 1 }
   0xf   : > { %s5682_s10 = smov (%p32_p3, %s5680_s10), 0  ;;  %p245_p6 = scmp.lt.s32.totalorder %s4669_s30, 5 }
  0x10   : > { %5649 = sst [smem:[#allocation10_spill]] %s5682_s10  ;;  %s216_s16 = ssub.s32 %s4665_s29, %s5682_s10 }
  0x11   : > { %p4770_p7 = scmp.eq.s32.totalorder %s3953_s8, 0  ;;  %s218_s18 = sor.u32 %s217_s14, %s216_s16 }
  0x12   : > { %p4774_p8 = pnand %p3961_p5, %p245_p6  ;;  %p219_p9 = scmp.eq.s32.totalorder %s218_s18, 0 }
  0x13   : > { %s5652_s6 = sld [smem:[#allocation12_spill]] }
  0x14   : > { %p4494_p10 = pneg %p4774_p8 }
  0x15   : > { %s4784_s23 = scalar_select %p219_p9, %s4649_s25, %s221_s11  }
  0x16   : > { %p4495_p11 = pnand %p4770_p7, %p4494_p10 }
  0x17   : > { %5653 = sst [smem:[#allocation11_spill]] %s4784_s23 }
  0x18   : > { %p4598_p13 = pneg %p4495_p11 }
  0x19   : > { %s267_s22 = sshll.u32 %s5652_s6, 4  ;;  %s268_s22 = int_to_ptr.vmem [resolvable:$true] %s267_s22 }
  0x1a   : > { %s4596_s8 = scalar_lea.vmem %s268_s22, 16  ;;  %p4604_p2 = scmp.lt.s32.totalorder %s268_s22, %s268_s22 }
  0x1b   : > { %p4597_p12 = scmp.ne.s32.totalorder %s268_s22, %s4596_s8  ;;  %p4605_p3 = scmp.lt.s32.totalorder %s4596_s8, %s4596_s8 }
  0x1d   : > { %p4599_p0 = pnand %p4598_p13, %p4597_p12  ;;  %p4606_p5 = por %p4605_p3, %p4604_p2 }
  0x1f   : > { %p4600_p1 = pneg %p4599_p0 }
  0x21   : > { %p4607_p6 = pnand %p4606_p5, %p4600_p1 }
  0x23   : > { %4610 = shalt.err (!%p4607_p6)
}
  0x24   : > { %s4671_s9 = smov [#allocation3]   ;;  %327 = sbr.rel (%p4774_p8) target bundleno = 698 (0x2ba), region = 48 }
  0x25   : > { %4497 = dma.vmem_to_smem (!%p4495_p11), %s268_s22, 16, %s4671_s9, [#allocation4]  }
  0x2b   : > { %4640 = dma.done.wait (%p4770_p7), [#allocation4], 16  }
  0x2c   : > { %4642 = vsyncadd (%p4770_p7), [#allocation4], 4294967280 }
  0x2d   : > { %333 = sfence }
  0x2e   : > { %s4795_s11 = sshll.u32 %s4653_s26, 3  ;;  %p387_p9 = scmp.lt.s32.totalorder %s4657_s27, 1  ;;  %v4672_v0 = vmov 0   ;;  %vm565_vm6 = vcmask 1043456   ;;  %v4574_v36 = vld [vmem:[%s5635_s3 + $0x10] sm:$0xff]   ;;  %vm558_vm7 = vcmask 64512  }
  0x2f   : > { %s4799_s13 = sadd.s32 8, %s4795_s11  ;;  %p428_p8 = scmp.gt.s32.totalorder %s4653_s26, 0  ;;  %475 = vst [vmem:[#allocation2] sm:$0xf] %v4672_v0  ;;  %476 = vst [vmem:[#allocation2 + $0x2c] sm:$0xf] %v4672_v0  ;;  %622 = vmatprep.mubr.bf16.mxu0 %v4672_v0  ;;  %675 = vmatprep.mubr.bf16.mxu1 %v4672_v0 }
  0x30   : > { %s388_s14 = scalar_select %p387_p9, %s4657_s27, 1  ;;  %4560 = vset.pattern.permute.xlu0 %v4672_v0  ;;  %4561 = vset.pattern.permute.xlu1 %v4672_v0  ;;  %v4575_v46 = vld [vmem:[%s5635_s3 + $0x18] sm:$0xff]   ;;  %vm853_vm10 = vcmask 7168   ;;  %vm1160_vm11 = vcmask 1039360  }
  0x31   : > { %s3971_s16 = sadd.s32 4294967295, %s4799_s13  ;;  %s442_s17 = sld [smem:[#allocation3]] }
  0x32   : > { %p402_p7 = scmp.lt.s32.totalorder %s3971_s16, 31  ;;  %s4810_s18 = sshll.u32 %s388_s14, 5 }
  0x33   : > { %s429_s19 = scalar_select %p428_p8, 1, 0 }
  0x34   : > { %s5684_s16 = smov (!%p402_p7, %s3971_s16), 31  ;;  %p389_p11 = scmp.lt.s32.totalorder %s4799_s13, 31 }
  0x35   : > { %s405_s20 = sadd.s32 %s4810_s18, %s5684_s16  ;;  %v430_v1 = vstv %s429_s19  ;;  %p433_p13 = scmp.lt.s32.totalorder %s4653_s26, 1 }
  0x36   : > { %s3973_s21 = sshll.u32 %s405_s20, 2  ;;  %vm431_vm0 = vcmp.eq.s32.totalorder %v430_v1, 1  ;;  %s5688_s13 = smov (!%p389_p11, %s4799_s13), 31  ;;  %v4587_v61 = vld [vmem:[#allocation2 + $0x2c] ss:$0 sps:$4 sm:$0xff]  }
  0x37   : > { %s407_s9 = scalar_lea.vmem %s5633_s1, %s3973_s21  ;;  %s445_s6 = sshrl.u32 %s442_s17, 16 }
  0x38   : > { %p444_p10 = scmp.ne.f32.partialorder %s442_s17, %s442_s17  ;;  %s446_s10 = sand.u32 1, %s445_s6  ;;  %v426_v2 = vld [vmem:[%s407_s9] sm:$0xf] }
  0x39   : > { %s447_s12 = sadd.s32 32767, %s446_s10  ;;  %v432_v3 = vsel %vm431_vm0, %v426_v2, 0  ;;  %s392_s28 = sadd.s32 %s4810_s18, %s5688_s13 }
  0x3a   : > { %s448_s14 = sadd.s32 %s447_s12, %s442_s17  ;;  %s3969_s22 = sshll.u32 %s392_s28, 2  ;;  %vm453_vm1 = vcmp.ge.bf16.partialorder %v432_v3, 0 }
  0x3b   : > { %s449_s29 = sand.u32 4294901760, %s448_s14  ;;  %s394_s6 = scalar_lea.vmem %s5632_s0, %s3969_s22 }
  0x3c   : > { %s5686_s29 = smov (%p444_p10, %s449_s29), 2143289344  ;;  %v438_v6 = vld [vmem:[%s394_s6] sm:$0xff]  ;;  %v439_v7 = vld [vmem:[%s394_s6 + $0x8] sm:$0xff]  ;;  %v440_v8 = vld [vmem:[%s394_s6 + $0x10] sm:$0xff]  ;;  %s4673_s28 = smov 1  }
  0x3d   : > { %s452_s16 = sshrl.u32 %s5686_s29, 16  ;;  %vm460_vm2 = vcmp.ge.bf16.partialorder %v438_v6, 0  ;;  %vm461_vm3 = vcmp.ge.bf16.partialorder %v439_v7, 0  ;;  %v441_v11 = vld [vmem:[%s394_s6 + $0x18] sm:$0xff]  ;;  %vm462_vm4 = vcmp.ge.bf16.partialorder %v440_v8, 0  ;;  %s4217_s29 = sadd.s32 16, %s4795_s11 }
  0x3e   : > { %s454_s20 = sshll.u32 %s452_s16, 16  ;;  %vm463_vm5 = vcmp.ge.bf16.partialorder %v441_v11, 0  ;;  %p4849_p12 = scmp.lt.s32.totalorder %s4217_s29, 31 }
  0x3f   : > { %s455_s23 = sor.u32 %s454_s20, %s452_s16  ;;  %s4674_s16 = smov 127  }
  0x40   : > { %v4821_v4 = vstv %s455_s23  ;;  %s5690_s29 = smov (!%p4849_p12, %s4217_s29), 31  ;;  %s3519_s10 = ssub.s32 16, %s4795_s11 }
  0x41   : > { %v458_v5 = vmul.bf16 %v4821_v4, %v432_v3  ;;  %v464_v9 = vmul.bf16 %v4821_v4, %v438_v6  ;;  %v465_v10 = vmul.bf16 %v4821_v4, %v439_v7  ;;  %v466_v13 = vmul.bf16 %v4821_v4, %v440_v8  ;;  %s418_s13 = sadd.s32 %s4810_s18, %s5690_s29  ;;  %s4165_s12 = sshll.u32 %s3519_s10, 7 }
  0x42   : > { %v467_v16 = vmul.bf16 %v4821_v4, %v441_v11  ;;  %s3976_s17 = sshll.u32 %s418_s13, 2  ;;  %s4163_s23 = sld [smem:[#allocation3 + $0x1]] }
  0x43   : > { %v459_v12 = vsel %vm453_vm1, %v432_v3, %v458_v5  ;;  %v468_v14 = vsel %vm460_vm2, %v438_v6, %v464_v9  ;;  %v469_v15 = vsel %vm461_vm3, %v439_v7, %v465_v10  ;;  %v470_v18 = vsel %vm462_vm4, %v440_v8, %v466_v13  ;;  %s420_s14 = scalar_lea.vmem %s5634_s2, %s3976_s17  ;;  %v4576_v6 = vld [vmem:[%s5635_s3] sm:$0xff]   ;;  %s382_s13 = sand.u32 1, %s4645_s24  }
  0x44   : > { %477 = vst [vmem:[#allocation2 + $0x4] sm:$0xf] %v459_v12  ;;  %478 = vst [vmem:[#allocation2 + $0x8] sm:$0xff] %v468_v14  ;;  %v4831_v17 = vcombine.low %v468_v14, %v468_v14  ;;  %v4833_v19 = vsel %vm463_vm5, %v441_v11, %v467_v16  ;;  %v4835_v20 = vcombine.high %v468_v14, %v468_v14  ;;  %s434_s18 = scalar_select %p433_p13, 1, 0 }
  0x45   : > { %479 = vst [vmem:[#allocation2 + $0x10] sm:$0xff] %v469_v15  ;;  %480 = vst [vmem:[#allocation2 + $0x18] sm:$0xff] %v470_v18  ;;  %v4842_v22 = vcombine.high %v469_v15, %v469_v15  ;;  %v4860_v32 = vcombine.high %v470_v18, %v470_v18  ;;  %v4890_v41 = vcombine.low %v469_v15, %v469_v15  ;;  %v427_v45 = vld [vmem:[%s420_s14] sm:$0xf]  ;;  %s5408_s24 = sshll.u32 %s382_s13, 7  ;;  %s4184_s8 = sshll.u32 (%p4760_p4), %s4657_s27, 7 }
  0x46   : > { %839 = vrot.lane.b32.xlu1 %v4831_v17, %s4673_s28  ;;  %481 = vst [vmem:[#allocation2 + $0x20] sm:$0xff] %v4833_v19  ;;  %v4917_v44 = vcombine.low %v470_v18, %v470_v18  ;;  %v435_v47 = vstv %s434_s18  ;;  %v4981_v53 = vcombine.low %v4833_v19, %v4833_v19  ;;  %v4994_v55 = vcombine.high %v4833_v19, %v4833_v19  ;;  %v4577_v18 = vld [vmem:[%s5635_s3 + $0x8] sm:$0xff]   ;;  %s5434_s17 = scalar_lea.vmem [#allocation5], %s5408_s24  ;;  %s3890_s15 = sadd.s32 (%p4760_p4), %s4795_s11, %s4184_s8 }
  0x47   : > { %vm436_vm8 = vcmp.eq.s32.totalorder %v435_v47, 1  ;;  %s4185_s9 = sshll.u32 (%p4760_p4), %s3890_s15, 2 }
  0x48   : > { %v437_v48 = vsel %vm436_vm8, %v427_v45, 0 }
  0x49   : > { %vm472_vm9 = vcmp.ge.bf16.partialorder %v437_v48, 0  ;;  %v473_v50 = vmul.bf16 %v4821_v4, %v437_v48 }
  0x4a   : > { %841 = vrot.lane.b32.xlu1 %v4835_v20, %s4673_s28 }
  0x4b   : > { %v519_v21 = vld [vmem:[#allocation2] sm:$0xff]  ;;  %v474_v51 = vsel %vm472_vm9, %v437_v48, %v473_v50 }
  0x4c   : > { %v4001_v23 = vcombine.low %v519_v21, %v519_v21  ;;  %v1104_v24 = vld [vmem:[#allocation2 + $0x4] sm:$0xff]  ;;  %v1105_v25 = vld [vmem:[#allocation2 + $0xc] sm:$0xff]  ;;  %v4002_v28 = vcombine.high %v519_v21, %v519_v21  ;;  %v1106_v31 = vld [vmem:[#allocation2 + $0x14] sm:$0xff]  ;;  %482 = vst [vmem:[#allocation2 + $0x28] sm:$0xf] %v474_v51 }
  0x4d   : > { %v4845_v26 = vcombine.low %v1104_v24, %v1104_v24  ;;  %v4847_v27 = vcombine.high %v1104_v24, %v1104_v24  ;;  %v4854_v29 = vcombine.low %v1105_v25, %v1105_v25  ;;  %v4856_v30 = vcombine.high %v1105_v25, %v1105_v25  ;;  %v1107_v34 = vld [vmem:[#allocation2 + $0x1c] sm:$0xff]  ;;  %v4573_v52 = vld [vmem:[#allocation2 + $0x24] ss:$0 sps:$4 sm:$0xff]  }
  0x4e   : > { %835 = vrot.lane.b32.xlu0 %v4001_v23, %s4673_s28  ;;  %845 = vrot.lane.b32.xlu1 %v4842_v22, %s4673_s28  ;;  %v4862_v33 = vcombine.high %v1106_v31, %v1106_v31  ;;  %v4871_v37 = vcombine.low %v1106_v31, %v1106_v31  ;;  %v4873_v38 = vcombine.high %v1107_v34, %v1107_v34  ;;  %v4564_v49 = vld [vmem:[#allocation2 + $0x20] ss:$0 sps:$4 sm:$0xff]  }
  0x4f   : > { %3987 = vmatprep.subr.msk.bf16.mxu0 %vm565_vm6, %v4847_v27  ;;  %v567_v35 = vsel %vm565_vm6, %v4845_v26, 0  ;;  %3990 = vmatprep.subr.msk.bf16.mxu1 %vm565_vm6, %v4856_v30  ;;  %v4879_v39 = vsel %vm565_vm6, %v4854_v29, 0  ;;  %v4883_v40 = vcombine.low %v1107_v34, %v1107_v34 }
  0x50   : > { %591 = vmatpush1.bf16.msra.mxu0 %v567_v35  ;;  %644 = vmatpush1.bf16.msra.mxu1 %v4879_v39  ;;  %v4894_v42 = vsel %vm565_vm6, %v4871_v37, 0 }
  0x51   : > { %3993 = vmatprep.subr.msk.bf16.mxu0 %vm565_vm6, %v4862_v33  ;;  %3996 = vmatprep.subr.msk.bf16.mxu1 %vm565_vm6, %v4873_v38  ;;  %v4904_v43 = vsel %vm565_vm6, %v4883_v40, 0 }
  0x52   : > { %837 = vrot.lane.b32.xlu0 %v4002_v28, %s4673_s28  ;;  %849 = vrot.lane.b32.xlu1 %v4860_v32, %s4673_s28 }
  0x53   : > { %3988 = vmatmul.mubr.msk.bf16.vlgmr.msra.gmra.mrb[0].mxu0 %vm558_vm7, %v4574_v36  ;;  %3991 = vmatmul.mubr.msk.bf16.vlgmr.msra.gmra.mrb[0].mxu1 %vm558_vm7, %v4574_v36  ;;  %v4578_v54 = vld [vmem:[#allocation2 + $0x28] ss:$0 sps:$4 sm:$0xff]  }
  0x54   : > { %632 = vmatprep.mubr.bf16.mxu0 %v4672_v0  ;;  %685 = vmatprep.mubr.bf16.mxu1 %v4672_v0  ;;  %v3020_v56 = vld [vmem:[#allocation2 + $0x24] sm:$0xff] }
  0x55   : > { %697 = vmatpush1.bf16.msra.mxu0 %v4894_v42  ;;  %750 = vmatpush1.bf16.msra.mxu1 %v4904_v43  ;;  %v5027_v57 = vcombine.low %v3020_v56, %v3020_v56  ;;  %v5031_v60 = vcombine.high %v3020_v56, %v3020_v56 }
  0x56   : > { %843 = vrot.lane.b32.xlu0 %v4890_v41, %s4673_s28  ;;  %1142 = vrot.lane.b32.xlu1 %v4845_v26, %s4674_s16 }
  0x5a   : > { %847 = vrot.lane.b32.xlu0 %v4917_v44, %s4673_s28  ;;  %1146 = vrot.lane.b32.xlu1 %v4854_v29, %s4674_s16 }
  0x5b   : > { %3989 = vmatmul.mubr.msk.bf16.gmra.mrb[4].mxu0 %vm558_vm7, %v4575_v46  ;;  %3992 = vmatmul.mubr.msk.bf16.gmra.mrb[4].mxu1 %vm558_vm7, %v4575_v46 }
  0x5c   : > { %728 = vmatprep.mubr.bf16.mxu0 %v4672_v0  ;;  %781 = vmatprep.mubr.bf16.mxu1 %v4672_v0 }
  0x5e   : > { %851 = vrot.lane.b32.xlu0 %v4564_v49, %s4673_s28  ;;  %1150 = vrot.lane.b32.xlu1 %v4871_v37, %s4674_s16 }
  0x62   : > { %1144 = vrot.lane.b32.xlu0 %v4847_v27, %s4674_s16  ;;  %1154 = vrot.lane.b32.xlu1 %v4883_v40, %s4674_s16 }
  0x63   : > { %3994 = vmatmul.mubr.msk.bf16.vlgmr.msra.gmra.mrb[8].mxu0 %vm558_vm7, %v4574_v36  ;;  %3997 = vmatmul.mubr.msk.bf16.vlgmr.msra.gmra.mrb[8].mxu1 %vm558_vm7, %v4574_v36 }
  0x64   : > { %738 = vmatprep.mubr.bf16.mxu0 %v4672_v0  ;;  %791 = vmatprep.mubr.bf16.mxu1 %v4672_v0 }
  0x66   : > { %1148 = vrot.lane.b32.xlu0 %v4856_v30, %s4674_s16  ;;  %1158 = vrot.lane.b32.xlu1 %v4573_v52, %s4674_s16 }
  0x6a   : > { %1152 = vrot.lane.b32.xlu0 %v4862_v33, %s4674_s16  ;;  %1455 = vrot.lane.b32.xlu1 %v4847_v27, %s4673_s28 }
  0x6b   : > { %3995 = vmatmul.mubr.msk.bf16.gmra.mrb[12].mxu0 %vm558_vm7, %v4575_v46  ;;  %3998 = vmatmul.mubr.msk.bf16.gmra.mrb[12].mxu1 %vm558_vm7, %v4575_v46 }
  0x6c   : > { %924 = vmatprep.mubr.bf16.mxu0 %v4672_v0  ;;  %977 = vmatprep.mubr.bf16.mxu1 %v4672_v0 }
  0x6e   : > { %1156 = vrot.lane.b32.xlu0 %v4873_v38, %s4674_s16  ;;  %1459 = vrot.lane.b32.xlu1 %v4856_v30, %s4673_s28 }
  0x72   : > { %1453 = vrot.lane.b32.xlu0 %v4845_v26, %s4673_s28  ;;  %1463 = vrot.lane.b32.xlu1 %v4862_v33, %s4673_s28 }
  0x76   : > { %1457 = vrot.lane.b32.xlu0 %v4854_v29, %s4673_s28  ;;  %1467 = vrot.lane.b32.xlu1 %v4873_v38, %s4673_s28 }
  0x7a   : > { %1461 = vrot.lane.b32.xlu0 %v4871_v37, %s4673_s28  ;;  %2099 = vrot.lane.b32.xlu1 %v4831_v17, %s4674_s16 }
  0x7e   : > { %1465 = vrot.lane.b32.xlu0 %v4883_v40, %s4673_s28  ;;  %2103 = vrot.lane.b32.xlu1 %v4890_v41, %s4674_s16 }
  0x82   : > { %1469 = vrot.lane.b32.xlu0 %v4573_v52, %s4673_s28  ;;  %2107 = vrot.lane.b32.xlu1 %v4917_v44, %s4674_s16  ;;  %v4579_v52 = vld [vmem:[%s5635_s3 + $0x20] sm:$0xff]  }
  0x86   : > { %2101 = vrot.lane.b32.xlu0 %v4835_v20, %s4674_s16  ;;  %2111 = vrot.lane.b32.xlu1 %v4981_v53, %s4674_s16 }
  0x8a   : > { %2105 = vrot.lane.b32.xlu0 %v4842_v22, %s4674_s16  ;;  %2115 = vrot.lane.b32.xlu1 %v4578_v54, %s4674_s16 }
  0x8e   : > { %2109 = vrot.lane.b32.xlu0 %v4860_v32, %s4674_s16  ;;  %2411 = vrot.lane.b32.xlu1 %v4835_v20, %s4673_s28 }
  0x92   : > { %2113 = vrot.lane.b32.xlu0 %v4994_v55, %s4674_s16  ;;  %2415 = vrot.lane.b32.xlu1 %v4842_v22, %s4673_s28 }
  0x96   : > { %2409 = vrot.lane.b32.xlu0 %v4831_v17, %s4673_s28  ;;  %2419 = vrot.lane.b32.xlu1 %v4860_v32, %s4673_s28 }
  0x9a   : > { %2413 = vrot.lane.b32.xlu0 %v4890_v41, %s4673_s28  ;;  %2423 = vrot.lane.b32.xlu1 %v4994_v55, %s4673_s28 }
  0x9e   : > { %2417 = vrot.lane.b32.xlu0 %v4917_v44, %s4673_s28  ;;  %3055 = vrot.lane.b32.xlu1 %v4854_v29, %s4674_s16 }
  0xa2   : > { %2421 = vrot.lane.b32.xlu0 %v4981_v53, %s4673_s28  ;;  %3059 = vrot.lane.b32.xlu1 %v4871_v37, %s4674_s16 }
  0xa6   : > { %2425 = vrot.lane.b32.xlu0 %v4578_v54, %s4673_s28  ;;  %3063 = vrot.lane.b32.xlu1 %v4883_v40, %s4674_s16 }
  0xaa   : > { %3057 = vrot.lane.b32.xlu0 %v4856_v30, %s4674_s16  ;;  %3067 = vrot.lane.b32.xlu1 %v5027_v57, %s4674_s16 }
  0xae   : > { %3061 = vrot.lane.b32.xlu0 %v4862_v33, %s4674_s16  ;;  %3071 = vrot.lane.b32.xlu1 %v4587_v61, %s4674_s16 }
  0xb2   : > { %3065 = vrot.lane.b32.xlu0 %v4873_v38, %s4674_s16 }
  0xb6   : > { %3069 = vrot.lane.b32.xlu0 %v5031_v60, %s4674_s16  ;;  %s3892_s16 = scalar_lea.vmem (%p4760_p4), %s5639_s7, %s4185_s9 }
  0xb8   : > { %v840_v58 = vpop.permute.xlu1 %839 }
  0xbc   : > { %v842_v59 = vpop.permute.xlu1 %841 }
  0xbd   : > { %v856_v7 = vsel %vm853_vm10, %v840_v58, %v842_v59 }
  0xbe   : > { %v875_v11 = vsel %vm565_vm6, %v856_v7, 0 }
  0xc0   : > { %v836_v62 = vpop.permute.xlu0 %835  ;;  %v846_v63 = vpop.permute.xlu1 %845 }
  0xc4   : > { %v838_v1 = vpop.permute.xlu0 %837  ;;  %v850_v4 = vpop.permute.xlu1 %849 }
  0xc5   : > { %v854_v2 = vsel %vm853_vm10, %v836_v62, %v838_v1  ;;  %v855_v3 = vsel %vm853_vm10, %v838_v1, %v840_v58 }
  0xc6   : > { %v869_v5 = vsel %vm565_vm6, %v854_v2, 0  ;;  %4010 = vmatprep.subr.msk.bf16.mxu0 %vm565_vm6, %v855_v3  ;;  %v4580_v2 = vld [vmem:[%s5635_s3 + $0x28] sm:$0xff]  }
  0xc7   : > { %893 = vmatpush1.bf16.msra.mxu0 %v869_v5 }
  0xc8   : > { %v844_v8 = vpop.permute.xlu0 %843  ;;  %v1143_v10 = vpop.permute.xlu1 %1142 }
  0xc9   : > { %v857_v9 = vsel %vm853_vm10, %v842_v59, %v844_v8  ;;  %v858_v12 = vsel %vm853_vm10, %v844_v8, %v846_v63 }
  0xca   : > { %4011 = vmatmul.mubr.msk.bf16.vlgmr.msra.gmra.mrb[0].mxu0 %vm558_vm7, %v4576_v6  ;;  %4013 = vmatprep.subr.msk.bf16.mxu1 %vm565_vm6, %v857_v9  ;;  %v881_v16 = vsel %vm565_vm6, %v858_v12, 0 }
  0xcb   : > { %946 = vmatpush1.bf16.msra.mxu1 %v875_v11  ;;  %934 = vmatprep.mubr.bf16.mxu0 %v4672_v0 }
  0xcc   : > { %v848_v13 = vpop.permute.xlu0 %847  ;;  %v1147_v19 = vpop.permute.xlu1 %1146 }
  0xcd   : > { %v859_v14 = vsel %vm853_vm10, %v846_v63, %v848_v13  ;;  %v860_v15 = vsel %vm853_vm10, %v848_v13, %v850_v4 }
  0xce   : > { %4014 = vmatmul.mubr.msk.bf16.vlgmr.msra.gmra.mrb[0].mxu1 %vm558_vm7, %v4576_v6  ;;  %4016 = vmatprep.subr.msk.bf16.mxu0 %vm565_vm6, %v859_v14  ;;  %v887_v23 = vsel %vm565_vm6, %v860_v15, 0  ;;  %v4581_v14 = vld [vmem:[%s5635_s3 + $0x30] sm:$0xff]  }
  0xcf   : > { %999 = vmatpush1.bf16.msra.mxu0 %v881_v16  ;;  %987 = vmatprep.mubr.bf16.mxu1 %v4672_v0 }
  0xd0   : > { %v852_v21 = vpop.permute.xlu0 %851  ;;  %v1151_v26 = vpop.permute.xlu1 %1150 }
  0xd1   : > { %v861_v24 = vsel %vm853_vm10, %v850_v4, %v852_v21  ;;  %v1800_v21 = vsel %vm565_vm6, %v4890_v41, 0  ;;  %v1806_v41 = vsel %vm565_vm6, %v4917_v44, 0  ;;  %v4584_v44 = vld [vmem:[%s5635_s3 + $0x48] sm:$0xff]  }
  0xd2   : > { %4012 = vmatmul.mubr.msk.bf16.gmra.mrb[4].mxu0 %vm558_vm7, %v4577_v18  ;;  %4019 = vmatprep.subr.msk.bf16.mxu1 %vm565_vm6, %v861_v24 }
  0xd3   : > { %1052 = vmatpush1.bf16.msra.mxu1 %v887_v23  ;;  %1030 = vmatprep.mubr.bf16.mxu0 %v4672_v0 }
  0xd4   : > { %v1145_v25 = vpop.permute.xlu0 %1144  ;;  %v1155_v36 = vpop.permute.xlu1 %1154 }
  0xd5   : > { %v1161_v27 = vsel %vm1160_vm11, %v1143_v10, %v1145_v25  ;;  %v1162_v28 = vsel %vm1160_vm11, %v1145_v25, %v1147_v19 }
  0xd6   : > { %4015 = vmatmul.mubr.msk.bf16.gmra.mrb[4].mxu1 %vm558_vm7, %v4577_v18  ;;  %4033 = vmatprep.subr.msk.bf16.mxu0 %vm565_vm6, %v1162_v28  ;;  %v1176_v29 = vsel %vm565_vm6, %v1161_v27, 0 }
  0xd7   : > { %1083 = vmatprep.mubr.bf16.mxu1 %v4672_v0 }
  0xd8   : > { %v1149_v31 = vpop.permute.xlu0 %1148  ;;  %v1159_v46 = vpop.permute.xlu1 %1158 }
  0xd9   : > { %v1163_v34 = vsel %vm1160_vm11, %v1147_v19, %v1149_v31  ;;  %v1164_v35 = vsel %vm1160_vm11, %v1149_v31, %v1151_v26  ;;  %v4582_v19 = vld [vmem:[%s5635_s3 + $0x38] sm:$0xff]  }
  0xda   : > { %4017 = vmatmul.mubr.msk.bf16.vlgmr.msra.gmra.mrb[8].mxu0 %vm558_vm7, %v4576_v6  ;;  %4036 = vmatprep.subr.msk.bf16.mxu1 %vm565_vm6, %v1164_v35  ;;  %v1182_v37 = vsel %vm565_vm6, %v1163_v34, 0 }
  0xdb   : > { %1040 = vmatprep.mubr.bf16.mxu0 %v4672_v0  ;;  %1200 = vmatpush1.bf16.msra.mxu0 %v1176_v29 }
  0xdc   : > { %v1153_v40 = vpop.permute.xlu0 %1152  ;;  %v1456_v50 = vpop.permute.xlu1 %1455 }
  0xdd   : > { %v1166_v45 = vsel %vm1160_vm11, %v1153_v40, %v1155_v36  ;;  %v1165_v51 = vsel %vm1160_vm11, %v1151_v26, %v1153_v40  ;;  %v1812_v26 = vsel %vm565_vm6, %v4981_v53, 0 }
  0xde   : > { %4020 = vmatmul.mubr.msk.bf16.vlgmr.msra.gmra.mrb[8].mxu1 %vm558_vm7, %v4576_v6  ;;  %4039 = vmatprep.subr.msk.bf16.mxu0 %vm565_vm6, %v1166_v45  ;;  %v1188_v54 = vsel %vm565_vm6, %v1165_v51, 0  ;;  %v3355_v51 = vld [vmem:[%s5636_s4] sm:$0xff] }
  0xdf   : > { %1093 = vmatprep.mubr.bf16.mxu1 %v4672_v0  ;;  %1253 = vmatpush1.bf16.msra.mxu1 %v1182_v37 }
  0xe0   : > { %v1157_v47 = vpop.permute.xlu0 %1156  ;;  %v1460_v61 = vpop.permute.xlu1 %1459  ;;  %3361 = vperm.xlu0 %4560, %v3355_v51  }
  0xe1   : > { %v1168_v48 = vsel %vm1160_vm11, %v1157_v47, %v1159_v46  ;;  %v1167_v58 = vsel %vm1160_vm11, %v1155_v36, %v1157_v47 }
  0xe2   : > { %4018 = vmatmul.mubr.msk.bf16.gmra.mrb[12].mxu0 %vm558_vm7, %v4577_v18  ;;  %4042 = vmatprep.subr.msk.bf16.mxu1 %vm565_vm6, %v1168_v48  ;;  %v1194_v62 = vsel %vm565_vm6, %v1167_v58, 0 }
  0xe3   : > { %1231 = vmatprep.mubr.bf16.mxu0 %v4672_v0 }
  0xe4   : > { %v1454_v49 = vpop.permute.xlu0 %1453  ;;  %v1464_v5 = vpop.permute.xlu1 %1463 }
  0xe5   : > { %v1471_v3 = vsel %vm853_vm10, %v1454_v49, %v1456_v50 }
  0xe6   : > { %4021 = vmatmul.mubr.msk.bf16.gmra.mrb[12].mxu1 %vm558_vm7, %v4577_v18  ;;  %v1486_v6 = vsel %vm565_vm6, %v1471_v3, 0  ;;  %v4589_v3 = vld [vmem:[%s5635_s3 + $0x58] sm:$0xff]  }
  0xe7   : > { %1284 = vmatprep.mubr.bf16.mxu1 %v4672_v0 }
  0xe8   : > { %v1458_v56 = vpop.permute.xlu0 %1457  ;;  %v1468_v10 = vpop.permute.xlu1 %1467 }
  0xe9   : > { %v1472_v59 = vsel %vm853_vm10, %v1456_v50, %v1458_v56  ;;  %v1473_v7 = vsel %vm853_vm10, %v1458_v56, %v1460_v61  ;;  %v4588_v50 = vld [vmem:[%s5635_s3 + $0x50] sm:$0xff]  }
  0xea   : > { %4034 = vmatmul.mubr.msk.bf16.vlgmr.msra.gmra.mrb[0].mxu0 %vm558_vm7, %v4579_v52  ;;  %v1492_v11 = vsel %vm565_vm6, %v1473_v7, 0 }
  0xeb   : > { %1306 = vmatpush1.bf16.msra.mxu0 %v1188_v54  ;;  %1241 = vmatprep.mubr.bf16.mxu0 %v4672_v0 }
  0xec   : > { %4047 = vmatprep.subr.msk.bf16.mxu0 %vm565_vm6, %v1472_v59  ;;  %v1462_v63 = vpop.permute.xlu0 %1461  ;;  %v3357_v59 = vld [vmem:[%s5636_s4 + $0x10] sm:$0xff] }
  0xed   : > { %v1474_v1 = vsel %vm853_vm10, %v1460_v61, %v1462_v63  ;;  %v1475_v13 = vsel %vm853_vm10, %v1462_v63, %v1464_v5  ;;  %v3358_v63 = vld [vmem:[%s5636_s4 + $0x18] sm:$0xff] }
  0xee   : > { %4037 = vmatmul.mubr.msk.bf16.vlgmr.msra.gmra.mrb[0].mxu1 %vm558_vm7, %v4579_v52  ;;  %v1498_v15 = vsel %vm565_vm6, %v1475_v13, 0  ;;  %3376 = vperm.xlu0 %4560, %v3358_v63  }
  0xef   : > { %1294 = vmatprep.mubr.bf16.mxu1 %v4672_v0  ;;  %1359 = vmatpush1.bf16.msra.mxu1 %v1194_v62 }
  0xf0   : > { %4050 = vmatprep.subr.msk.bf16.mxu1 %vm565_vm6, %v1474_v1  ;;  %v1466_v4 = vpop.permute.xlu0 %1465 }
  0xf1   : > { %v1476_v8 = vsel %vm853_vm10, %v1464_v5, %v1466_v4  ;;  %v1477_v16 = vsel %vm853_vm10, %v1466_v4, %v1468_v10 }
  0xf2   : > { %4035 = vmatmul.mubr.msk.bf16.gmra.mrb[4].mxu0 %vm558_vm7, %v4580_v2  ;;  %v1504_v18 = vsel %vm565_vm6, %v1477_v16, 0 }
  0xf3   : > { %1337 = vmatprep.mubr.bf16.mxu0 %v4672_v0 }
  0xf4   : > { %v1470_v9 = vpop.permute.xlu0 %1469 }
  0xf5   : > { %v1478_v12 = vsel %vm853_vm10, %v1468_v10, %v1470_v9 }
  0xf6   : > { %4038 = vmatmul.mubr.msk.bf16.gmra.mrb[4].mxu1 %vm558_vm7, %v4580_v2 }
  0xf7   : > { %1390 = vmatprep.mubr.bf16.mxu1 %v4672_v0 }
  0xfa   : > { %4040 = vmatmul.mubr.msk.bf16.vlgmr.msra.gmra.mrb[8].mxu0 %vm558_vm7, %v4579_v52 }
  0xfb   : > { %1347 = vmatprep.mubr.bf16.mxu0 %v4672_v0  ;;  %1510 = vmatpush1.bf16.msra.mxu0 %v1486_v6 }
  0xfc   : > { %4053 = vmatprep.subr.msk.bf16.mxu0 %vm565_vm6, %v1476_v8 }
  0xfe   : > { %4043 = vmatmul.mubr.msk.bf16.vlgmr.msra.gmra.mrb[8].mxu1 %vm558_vm7, %v4579_v52  ;;  %v3356_v52 = vld [vmem:[%s5636_s4 + $0x8] sm:$0xff] }
  0xff   : > { %1400 = vmatprep.mubr.bf16.mxu1 %v4672_v0  ;;  %1563 = vmatpush1.bf16.msra.mxu1 %v1492_v11 }
 0x100   : > { %4056 = vmatprep.subr.msk.bf16.mxu1 %vm565_vm6, %v1478_v12  ;;  %3366 = vperm.xlu1 %4561, %v3356_v52   ;;  %v3521_v52 = vstv %s4165_s12 }
 0x102   : > { %4041 = vmatmul.mubr.msk.bf16.gmra.mrb[12].mxu0 %vm558_vm7, %v4580_v2 }
 0x103   : > { %1541 = vmatprep.mubr.bf16.mxu0 %v4672_v0 }
 0x104   : > { %3371 = vperm.xlu1 %4561, %v3357_v59  }
 0x106   : > { %4044 = vmatmul.mubr.msk.bf16.gmra.mrb[12].mxu1 %vm558_vm7, %v4580_v2 }
 0x107   : > { %1594 = vmatprep.mubr.bf16.mxu1 %v4672_v0 }
 0x10a   : > { %4048 = vmatmul.mubr.msk.bf16.vlgmr.msra.gmra.mrb[0].mxu0 %vm558_vm7, %v4581_v14 }
 0x10b   : > { %1616 = vmatpush1.bf16.msra.mxu0 %v1498_v15  ;;  %1551 = vmatprep.mubr.bf16.mxu0 %v4672_v0  ;;  %v4590_v15 = vld [vmem:[%s5635_s3 + $0x60] sm:$0xff]  }
 0x10c   : > { %4069 = vmatprep.subr.msk.bf16.mxu0 %vm565_vm6, %v4835_v20  ;;  %v1794_v20 = vsel %vm565_vm6, %v4831_v17, 0  ;;  %v2102_v17 = vpop.permute.xlu0 %2101 }
 0x10e   : > { %4051 = vmatmul.mubr.msk.bf16.vlgmr.msra.gmra.mrb[0].mxu1 %vm558_vm7, %v4581_v14 }
 0x10f   : > { %1604 = vmatprep.mubr.bf16.mxu1 %v4672_v0  ;;  %1669 = vmatpush1.bf16.msra.mxu1 %v1504_v18 }
 0x110   : > { %4072 = vmatprep.subr.msk.bf16.mxu1 %vm565_vm6, %v4842_v22  ;;  %v2100_v22 = vpop.permute.xlu1 %2099 }
 0x111   : > { %v2117_v53 = vsel %vm1160_vm11, %v2100_v22, %v2102_v17  ;;  %v2768_v22 = vsel %vm565_vm6, %v5027_v57, 0 }
 0x112   : > { %4049 = vmatmul.mubr.msk.bf16.gmra.mrb[4].mxu0 %vm558_vm7, %v4582_v19  ;;  %v2132_v31 = vsel %vm565_vm6, %v2117_v53, 0 }
 0x113   : > { %1647 = vmatprep.mubr.bf16.mxu0 %v4672_v0 }
 0x114   : > { %v2104_v23 = vpop.permute.xlu1 %2103 }
 0x115   : > { %v2118_v24 = vsel %vm1160_vm11, %v2102_v17, %v2104_v23 }
 0x116   : > { %4052 = vmatmul.mubr.msk.bf16.gmra.mrb[4].mxu1 %vm558_vm7, %v4582_v19 }
 0x117   : > { %1700 = vmatprep.mubr.bf16.mxu1 %v4672_v0 }
 0x118   : > { %v2108_v25 = vpop.permute.xlu1 %2107 }
 0x11a   : > { %4054 = vmatmul.mubr.msk.bf16.vlgmr.msra.gmra.mrb[8].mxu0 %vm558_vm7, %v4581_v14 }
 0x11b   : > { %1657 = vmatprep.mubr.bf16.mxu0 %v4672_v0  ;;  %1818 = vmatpush1.bf16.msra.mxu0 %v1794_v20  ;;  %v4591_v20 = vld [vmem:[%s5635_s3 + $0x68] sm:$0xff]  }
 0x11c   : > { %4075 = vmatprep.subr.msk.bf16.mxu0 %vm565_vm6, %v4860_v32  ;;  %v4583_v32 = vld [vmem:[%s5635_s3 + $0x40] sm:$0xff]   ;;  %v2112_v29 = vpop.permute.xlu1 %2111 }
 0x11e   : > { %4057 = vmatmul.mubr.msk.bf16.vlgmr.msra.gmra.mrb[8].mxu1 %vm558_vm7, %v4581_v14 }
 0x11f   : > { %1710 = vmatprep.mubr.bf16.mxu1 %v4672_v0  ;;  %1871 = vmatpush1.bf16.msra.mxu1 %v1800_v21 }
 0x120   : > { %4078 = vmatprep.subr.msk.bf16.mxu1 %vm565_vm6, %v4994_v55  ;;  %v2106_v55 = vpop.permute.xlu0 %2105  ;;  %v2116_v37 = vpop.permute.xlu1 %2115 }
 0x121   : > { %v2120_v27 = vsel %vm1160_vm11, %v2106_v55, %v2108_v25  ;;  %v2119_v34 = vsel %vm1160_vm11, %v2104_v23, %v2106_v55  ;;  %v4593_v23 = vld [vmem:[%s5635_s3 + $0x78] sm:$0xff]  }
 0x122   : > { %4055 = vmatmul.mubr.msk.bf16.gmra.mrb[12].mxu0 %vm558_vm7, %v4582_v19  ;;  %v2138_v40 = vsel %vm565_vm6, %v2119_v34, 0 }
 0x123   : > { %1849 = vmatprep.mubr.bf16.mxu0 %v4672_v0 }
 0x124   : > { %v2110_v28 = vpop.permute.xlu0 %2109  ;;  %v2412_v48 = vpop.permute.xlu1 %2411 }
 0x125   : > { %v2122_v35 = vsel %vm1160_vm11, %v2110_v28, %v2112_v29  ;;  %v2121_v49 = vsel %vm1160_vm11, %v2108_v25, %v2110_v28  ;;  %v4594_v28 = vld [vmem:[%s5635_s3 + $0x80] sm:$0xff]  }
 0x126   : > { %4058 = vmatmul.mubr.msk.bf16.gmra.mrb[12].mxu1 %vm558_vm7, %v4582_v19  ;;  %v2144_v54 = vsel %vm565_vm6, %v2121_v49, 0 }
 0x127   : > { %1902 = vmatprep.mubr.bf16.mxu1 %v4672_v0 }
 0x128   : > { %v2114_v36 = vpop.permute.xlu0 %2113  ;;  %v2416_v62 = vpop.permute.xlu1 %2415 }
 0x129   : > { %v2124_v45 = vsel %vm1160_vm11, %v2114_v36, %v2116_v37  ;;  %v2123_v56 = vsel %vm1160_vm11, %v2112_v29, %v2114_v36  ;;  %v3509_v36 = vlaneseq  ;;  %v3530_v37 = vld [vmem:[%s5637_s5] sm:$0xff] }
 0x12a   : > { %4070 = vmatmul.mubr.msk.bf16.vlgmr.msra.gmra.mrb[0].mxu0 %vm558_vm7, %v4583_v32  ;;  %v2150_v1 = vsel %vm565_vm6, %v2123_v56, 0  ;;  %vm3531_vm12 = vcmp.gt.f32.partialorder %v3530_v37, 0.5 }
 0x12b   : > { %1859 = vmatprep.mubr.bf16.mxu0 %v4672_v0  ;;  %1924 = vmatpush1.bf16.msra.mxu0 %v1806_v41 }
 0x12c   : > { %4092 = vmatprep.subr.msk.bf16.mxu0 %vm565_vm6, %v2118_v24  ;;  %v2410_v46 = vpop.permute.xlu0 %2409  ;;  %v2420_v6 = vpop.permute.xlu1 %2419 }
 0x12d   : > { %v2427_v4 = vsel %vm853_vm10, %v2410_v46, %v2412_v48  ;;  %v3510_v46 = vand.u32 127, %v3509_v36 }
 0x12e   : > { %4073 = vmatmul.mubr.msk.bf16.vlgmr.msra.gmra.mrb[0].mxu1 %vm558_vm7, %v4583_v32  ;;  %v2442_v7 = vsel %vm565_vm6, %v2427_v4, 0 }
 0x12f   : > { %1912 = vmatprep.mubr.bf16.mxu1 %v4672_v0  ;;  %1977 = vmatpush1.bf16.msra.mxu1 %v1812_v26  ;;  %vm3522_vm13 = vcmp.lt.s32.totalorder %v3510_v46, %v3521_v52  ;;  %v3514_v4 = vadd.s32 512, %v3510_v46 }
 0x130   : > { %4095 = vmatprep.subr.msk.bf16.mxu1 %vm565_vm6, %v2120_v27  ;;  %v2414_v47 = vpop.permute.xlu0 %2413  ;;  %v2424_v11 = vpop.permute.xlu1 %2423 }
 0x131   : > { %v2428_v58 = vsel %vm853_vm10, %v2412_v48, %v2414_v47  ;;  %v2429_v8 = vsel %vm853_vm10, %v2414_v47, %v2416_v62  ;;  %v3532_v47 = vsel %vm3531_vm12, 1, %v4672_v0  ;;  %vm3526_vm9 = vcmp.lt.s32.totalorder %v3514_v4, %v3521_v52 }
 0x132   : > { %4071 = vmatmul.mubr.msk.bf16.gmra.mrb[4].mxu0 %vm558_vm7, %v4584_v44  ;;  %v2448_v12 = vsel %vm565_vm6, %v2429_v8, 0  ;;  %v3516_v8 = vadd.s32 768, %v3510_v46 }
 0x133   : > { %1955 = vmatprep.mubr.bf16.mxu0 %v4672_v0 }
 0x134   : > { %v2418_v61 = vpop.permute.xlu0 %2417 }
 0x135   : > { %v2430_v2 = vsel %vm853_vm10, %v2416_v62, %v2418_v61  ;;  %v2431_v14 = vsel %vm853_vm10, %v2418_v61, %v2420_v6  ;;  %v3513_v62 = vadd.s32 384, %v3510_v46 }
 0x136   : > { %4074 = vmatmul.mubr.msk.bf16.gmra.mrb[4].mxu1 %vm558_vm7, %v4584_v44  ;;  %v2454_v16 = vsel %vm565_vm6, %v2431_v14, 0 }
 0x137   : > { %2008 = vmatprep.mubr.bf16.mxu1 %v4672_v0  ;;  %vm3525_vm4 = vcmp.lt.s32.totalorder %v3513_v62, %v3521_v52 }
 0x138   : > { %v2422_v5 = vpop.permute.xlu0 %2421 }
 0x139   : > { %v2432_v9 = vsel %vm853_vm10, %v2420_v6, %v2422_v5  ;;  %v2433_v18 = vsel %vm853_vm10, %v2422_v5, %v2424_v11  ;;  %v3515_v6 = vadd.s32 640, %v3510_v46 }
 0x13a   : > { %4076 = vmatmul.mubr.msk.bf16.vlgmr.msra.gmra.mrb[8].mxu0 %vm558_vm7, %v4583_v32  ;;  %v2460_v19 = vsel %vm565_vm6, %v2433_v18, 0 }
 0x13b   : > { %1965 = vmatprep.mubr.bf16.mxu0 %v4672_v0  ;;  %2156 = vmatpush1.bf16.msra.mxu0 %v2132_v31 }
 0x13c   : > { %4098 = vmatprep.subr.msk.bf16.mxu0 %vm565_vm6, %v2122_v35  ;;  %v2426_v10 = vpop.permute.xlu0 %2425  ;;  %v4595_v35 = vld [vmem:[%s5635_s3 + $0x88] sm:$0xff]  }
 0x13d   : > { %v2434_v13 = vsel %vm853_vm10, %v2424_v11, %v2426_v10  ;;  %v3517_v10 = vadd.s32 896, %v3510_v46 }
 0x13e   : > { %4079 = vmatmul.mubr.msk.bf16.vlgmr.msra.gmra.mrb[8].mxu1 %vm558_vm7, %v4583_v32 }
 0x13f   : > { %2018 = vmatprep.mubr.bf16.mxu1 %v4672_v0  ;;  %2209 = vmatpush1.bf16.msra.mxu1 %v2138_v40  ;;  %v3534_v40 = vshrl.u32 %v3509_v36, 7 }
 0x140   : > { %4101 = vmatprep.subr.msk.bf16.mxu1 %vm565_vm6, %v2124_v45 }
 0x141   : > { %v5351_v45 = vsub.s32 0, %v3534_v40  ;;  %v3539_v48 = vsub.s32 1, %v3534_v40  ;;  %v3543_v49 = vsub.s32 2, %v3534_v40  ;;  %v3551_v61 = vsub.s32 4, %v3534_v40 }
 0x142   : > { %4077 = vmatmul.mubr.msk.bf16.gmra.mrb[12].mxu0 %vm558_vm7, %v4584_v44 }
 0x143   : > { %2187 = vmatprep.mubr.bf16.mxu0 %v4672_v0  ;;  %v3536_v51 = vrot.slane %v3532_v47, %v5351_v45  ;;  %v3540_v56 = vrot.slane %v3532_v47, %v3539_v48  ;;  %v3544_v59 = vrot.slane %v3532_v47, %v3543_v49  ;;  %v3552_v5 = vrot.slane %v3532_v47, %v3551_v61 }
 0x145   : > { %vm3565_vm14 = vcmp.ne.s32.totalorder %v3536_v51, 0  ;;  %vm3566_vm0 = vcmp.ne.s32.totalorder %v3540_v56, 0  ;;  %vm3567_vm2 = vcmp.ne.s32.totalorder %v3544_v59, 0  ;;  %vm3569_vm10 = vcmp.ne.s32.totalorder %v3552_v5, 0 }
 0x146   : > { %4080 = vmatmul.mubr.msk.bf16.gmra.mrb[12].mxu1 %vm558_vm7, %v4584_v44  ;;  %vm3573_vm3 = vmand %vm3522_vm13, %vm3565_vm14  ;;  %vm3528_vm13 = vcmp.lt.s32.totalorder %v3516_v8, %v3521_v52 }
 0x147   : > { %2240 = vmatprep.mubr.bf16.mxu1 %v4672_v0 }
 0x14a   : > { %4093 = vmatmul.mubr.msk.bf16.vlgmr.msra.gmra.mrb[0].mxu0 %vm558_vm7, %v4588_v50 }
 0x14b   : > { %2262 = vmatpush1.bf16.msra.mxu0 %v2144_v54  ;;  %2197 = vmatprep.mubr.bf16.mxu0 %v4672_v0  ;;  %v3511_v54 = vadd.s32 128, %v3510_v46 }
 0x14c   : > { %4106 = vmatprep.subr.msk.bf16.mxu0 %vm565_vm6, %v2428_v58  ;;  %v3512_v58 = vadd.s32 256, %v3510_v46 }
 0x14d   : > { %vm3523_vm15 = vcmp.lt.s32.totalorder %v3511_v54, %v3521_v52 }
 0x14e   : > { %4096 = vmatmul.mubr.msk.bf16.vlgmr.msra.gmra.mrb[0].mxu1 %vm558_vm7, %v4588_v50  ;;  %vm3524_vm1 = vcmp.lt.s32.totalorder %v3512_v58, %v3521_v52 }
 0x14f   : > { %2250 = vmatprep.mubr.bf16.mxu1 %v4672_v0  ;;  %2315 = vmatpush1.bf16.msra.mxu1 %v2150_v1  ;;  %v3555_v1 = vsub.s32 5, %v3534_v40 }
 0x150   : > { %4109 = vmatprep.subr.msk.bf16.mxu1 %vm565_vm6, %v2430_v2  ;;  %v3559_v2 = vsub.s32 6, %v3534_v40 }
 0x152   : > { %4094 = vmatmul.mubr.msk.bf16.gmra.mrb[4].mxu0 %vm558_vm7, %v4589_v3 }
 0x153   : > { %2293 = vmatprep.mubr.bf16.mxu0 %v4672_v0 }
 0x156   : > { %4097 = vmatmul.mubr.msk.bf16.gmra.mrb[4].mxu1 %vm558_vm7, %v4589_v3 }
 0x157   : > { %2346 = vmatprep.mubr.bf16.mxu1 %v4672_v0 }
 0x15a   : > { %4099 = vmatmul.mubr.msk.bf16.vlgmr.msra.gmra.mrb[8].mxu0 %vm558_vm7, %v4588_v50 }
 0x15b   : > { %2303 = vmatprep.mubr.bf16.mxu0 %v4672_v0  ;;  %2466 = vmatpush1.bf16.msra.mxu0 %v2442_v7  ;;  %v3556_v7 = vrot.slane %v3532_v47, %v3555_v1 }
 0x15c   : > { %4112 = vmatprep.subr.msk.bf16.mxu0 %vm565_vm6, %v2432_v9  ;;  %v3560_v9 = vrot.slane %v3532_v47, %v3559_v2 }
 0x15d   : > { %vm3570_vm12 = vcmp.ne.s32.totalorder %v3556_v7, 0 }
 0x15e   : > { %4102 = vmatmul.mubr.msk.bf16.vlgmr.msra.gmra.mrb[8].mxu1 %vm558_vm7, %v4588_v50  ;;  %v3547_v50 = vsub.s32 3, %v3534_v40  ;;  %vm3571_vm14 = vcmp.ne.s32.totalorder %v3560_v9, 0 }
 0x15f   : > { %2356 = vmatprep.mubr.bf16.mxu1 %v4672_v0  ;;  %2519 = vmatpush1.bf16.msra.mxu1 %v2448_v12  ;;  %v3581_v12 = vsel %vm3573_vm3, 1, %v4672_v0  ;;  %vm3579_vm3 = vmand %vm3528_vm13, %vm3571_vm14 }
 0x160   : > { %4115 = vmatprep.subr.msk.bf16.mxu1 %vm565_vm6, %v2434_v13  ;;  %v3548_v63 = vrot.slane %v3532_v47, %v3547_v50 }
 0x162   : > { %4100 = vmatmul.mubr.msk.bf16.gmra.mrb[12].mxu0 %vm558_vm7, %v4589_v3  ;;  %vm3568_vm5 = vcmp.ne.s32.totalorder %v3548_v63, 0 }
 0x163   : > { %2497 = vmatprep.mubr.bf16.mxu0 %v4672_v0  ;;  %vm3576_vm8 = vmand %vm3525_vm4, %vm3568_vm5 }
 0x166   : > { %4103 = vmatmul.mubr.msk.bf16.gmra.mrb[12].mxu1 %vm558_vm7, %v4589_v3  ;;  %v3563_v3 = vsub.s32 7, %v3534_v40 }
 0x167   : > { %2550 = vmatprep.mubr.bf16.mxu1 %v4672_v0 }
 0x168   : > { %v3564_v11 = vrot.slane %v3532_v47, %v3563_v3 }
 0x16a   : > { %4107 = vmatmul.mubr.msk.bf16.vlgmr.msra.gmra.mrb[0].mxu0 %vm558_vm7, %v4590_v15 }
 0x16b   : > { %2572 = vmatpush1.bf16.msra.mxu0 %v2454_v16  ;;  %2507 = vmatprep.mubr.bf16.mxu0 %v4672_v0  ;;  %v3592_v16 = vrot.slane %v3581_v12, %v5351_v45 }
 0x16c   : > { %4128 = vmatprep.subr.msk.bf16.mxu0 %vm565_vm6, %v4856_v30  ;;  %v3056_v30 = vpop.permute.xlu1 %3055 }
 0x16d   : > { %vm5373_vm5 = vcmp.eq.s32.totalorder %v3592_v16, 1 }
 0x16e   : > { %4110 = vmatmul.mubr.msk.bf16.vlgmr.msra.gmra.mrb[0].mxu1 %vm558_vm7, %v4590_v15 }
 0x16f   : > { %2560 = vmatprep.mubr.bf16.mxu1 %v4672_v0  ;;  %2625 = vmatpush1.bf16.msra.mxu1 %v2460_v19 }
 0x170   : > { %4131 = vmatprep.subr.msk.bf16.mxu1 %vm565_vm6, %v4862_v33  ;;  %v3058_v33 = vpop.permute.xlu0 %3057  ;;  %v3060_v21 = vpop.permute.xlu1 %3059 }
 0x172   : > { %4108 = vmatmul.mubr.msk.bf16.gmra.mrb[4].mxu0 %vm558_vm7, %v4591_v20 }
 0x173   : > { %2603 = vmatprep.mubr.bf16.mxu0 %v4672_v0 }
 0x176   : > { %4111 = vmatmul.mubr.msk.bf16.gmra.mrb[4].mxu1 %vm558_vm7, %v4591_v20 }
 0x177   : > { %2656 = vmatprep.mubr.bf16.mxu1 %v4672_v0 }
 0x17a   : > { %4113 = vmatmul.mubr.msk.bf16.vlgmr.msra.gmra.mrb[8].mxu0 %vm558_vm7, %v4590_v15 }
 0x17b   : > { %2613 = vmatprep.mubr.bf16.mxu0 %v4672_v0  ;;  %2774 = vmatpush1.bf16.msra.mxu0 %v4879_v39  ;;  %v3074_v39 = vsel %vm1160_vm11, %v3058_v33, %v3060_v21 }
 0x17c   : > { %4134 = vmatprep.subr.msk.bf16.mxu0 %vm565_vm6, %v4873_v38  ;;  %v4592_v38 = vld [vmem:[%s5635_s3 + $0x70] sm:$0xff]  }
 0x17e   : > { %4116 = vmatmul.mubr.msk.bf16.vlgmr.msra.gmra.mrb[8].mxu1 %vm558_vm7, %v4590_v15  ;;  %v3584_v15 = vsel %vm3576_vm8, 1, %v4672_v0 }
 0x17f   : > { %2666 = vmatprep.mubr.bf16.mxu1 %v4672_v0  ;;  %2827 = vmatpush1.bf16.msra.mxu1 %v4894_v42  ;;  %v3062_v42 = vpop.permute.xlu0 %3061 }
 0x180   : > { %4137 = vmatprep.subr.msk.bf16.mxu1 %vm565_vm6, %v5031_v60  ;;  %v3064_v60 = vpop.permute.xlu1 %3063  ;;  %v3075_v24 = vsel %vm1160_vm11, %v3060_v21, %v3062_v42 }
 0x181   : > { %v3076_v17 = vsel %vm1160_vm11, %v3062_v42, %v3064_v60  ;;  %v3094_v27 = vsel %vm565_vm6, %v3075_v24, 0 }
 0x182   : > { %4114 = vmatmul.mubr.msk.bf16.gmra.mrb[12].mxu0 %vm558_vm7, %v4591_v20 }
 0x183   : > { %2805 = vmatprep.mubr.bf16.mxu0 %v4672_v0  ;;  %v3066_v57 = vpop.permute.xlu0 %3065 }
 0x184   : > { %v3068_v32 = vpop.permute.xlu1 %3067  ;;  %v3077_v53 = vsel %vm1160_vm11, %v3064_v60, %v3066_v57 }
 0x185   : > { %v3078_v55 = vsel %vm1160_vm11, %v3066_v57, %v3068_v32  ;;  %v3100_v29 = vsel %vm565_vm6, %v3077_v53, 0 }
 0x186   : > { %4117 = vmatmul.mubr.msk.bf16.gmra.mrb[12].mxu1 %vm558_vm7, %v4591_v20 }
 0x187   : > { %2858 = vmatprep.mubr.bf16.mxu1 %v4672_v0  ;;  %v3070_v25 = vpop.permute.xlu0 %3069 }
 0x188   : > { %v3072_v26 = vpop.permute.xlu1 %3071  ;;  %v3079_v31 = vsel %vm1160_vm11, %v3068_v32, %v3070_v25 }
 0x189   : > { %v3080_v44 = vsel %vm1160_vm11, %v3070_v25, %v3072_v26  ;;  %v3106_v34 = vsel %vm565_vm6, %v3079_v31, 0 }
 0x18a   : > { %4129 = vmatmul.mubr.msk.bf16.vlgmr.msra.gmra.mrb[0].mxu0 %vm558_vm7, %v4592_v38 }
 0x18b   : > { %2815 = vmatprep.mubr.bf16.mxu0 %v4672_v0  ;;  %2880 = vmatpush1.bf16.msra.mxu0 %v4904_v43  ;;  %v3073_v43 = vsel %vm1160_vm11, %v3056_v30, %v3058_v33  ;;  %vm3527_vm11 = vcmp.lt.s32.totalorder %v3515_v6, %v3521_v52  ;;  %v5362_v20 = vpop.permute.xlu0 %3361  ;;  %v3604_v30 = vrot.slane %v3584_v15, %v5351_v45 }
 0x18c   : > { %4151 = vmatprep.subr.msk.bf16.mxu0 %vm565_vm6, %v3074_v39  ;;  %v3088_v41 = vsel %vm565_vm6, %v3073_v43, 0  ;;  %v5371_v39 = vstv %s4163_s23  ;;  %v5377_v60 = vpop.permute.xlu1 %3366 }
 0x18d   : > { %vm5396_vm8 = vcmp.eq.s32.totalorder %v3604_v30, 1 }
 0x18e   : > { %4132 = vmatmul.mubr.msk.bf16.vlgmr.msra.gmra.mrb[0].mxu1 %vm558_vm7, %v4592_v38 }
 0x18f   : > { %2868 = vmatprep.mubr.bf16.mxu1 %v4672_v0  ;;  %2933 = vmatpush1.bf16.msra.mxu1 %v2768_v22  ;;  %v5380_v22 = vsel %vm3579_vm3, 1, %v4672_v0  ;;  %v5431_v6 = vpop.permute.xlu0 %3376 }
 0x190   : > { %4154 = vmatprep.subr.msk.bf16.mxu1 %vm565_vm6, %v3076_v17  ;;  %v3616_v53 = vrot.slane %v5380_v22, %v5351_v45  ;;  %v5425_v63 = vpop.permute.xlu1 %3371 }
 0x192   : > { %4130 = vmatmul.mubr.msk.bf16.gmra.mrb[4].mxu0 %vm558_vm7, %v4593_v23 }
 0x193   : > { %2911 = vmatprep.mubr.bf16.mxu0 %v4672_v0 }
 0x196   : > { %4133 = vmatmul.mubr.msk.bf16.gmra.mrb[4].mxu1 %vm558_vm7, %v4593_v23 }
 0x197   : > { %2964 = vmatprep.mubr.bf16.mxu1 %v4672_v0 }
 0x19a   : > { %4135 = vmatmul.mubr.msk.bf16.vlgmr.msra.gmra.mrb[8].mxu0 %vm558_vm7, %v4592_v38 }
 0x19b   : > { %2921 = vmatprep.mubr.bf16.mxu0 %v4672_v0  ;;  %3112 = vmatpush1.bf16.msra.mxu0 %v3088_v41 }
 0x19c   : > { %4157 = vmatprep.subr.msk.bf16.mxu0 %vm565_vm6, %v3078_v55 }
 0x19e   : > { %4138 = vmatmul.mubr.msk.bf16.vlgmr.msra.gmra.mrb[8].mxu1 %vm558_vm7, %v4592_v38 }
 0x19f   : > { %2974 = vmatprep.mubr.bf16.mxu1 %v4672_v0  ;;  %3165 = vmatpush1.bf16.msra.mxu1 %v3094_v27 }
 0x1a0   : > { %4160 = vmatprep.subr.msk.bf16.mxu1 %vm565_vm6, %v3080_v44  ;;  %vm3574_vm6 = vmand %vm3523_vm15, %vm3566_vm0  ;;  %vm3529_vm0 = vcmp.lt.s32.totalorder %v3517_v10, %v3521_v52 }
 0x1a1   : > { %v3582_v13 = vsel %vm3574_vm6, 1, %v4672_v0  ;;  %vm3577_vm15 = vmand %vm3526_vm9, %vm3569_vm10 }
 0x1a2   : > { %4136 = vmatmul.mubr.msk.bf16.gmra.mrb[12].mxu0 %vm558_vm7, %v4593_v23  ;;  %v3596_v18 = vrot.slane %v3582_v13, %v5351_v45  ;;  %v5366_v33 = vsel %vm3577_vm15, 1, %v4672_v0 }
 0x1a3   : > { %3143 = vmatprep.mubr.bf16.mxu0 %v4672_v0  ;;  %v3608_v25 = vrot.slane %v5366_v33, %v5351_v45 }
 0x1a4   : > { %vm5384_vm6 = vcmp.eq.s32.totalorder %v3596_v18, 1 }
 0x1a6   : > { %4139 = vmatmul.mubr.msk.bf16.gmra.mrb[12].mxu1 %vm558_vm7, %v4593_v23 }
 0x1a7   : > { %3196 = vmatprep.mubr.bf16.mxu1 %v4672_v0 }
 0x1aa   : > { %4152 = vmatmul.mubr.msk.bf16.vlgmr.msra.gmra.mrb[0].mxu0 %vm558_vm7, %v4594_v28 }
 0x1ab   : > { %3218 = vmatpush1.bf16.msra.mxu0 %v3100_v29  ;;  %3153 = vmatprep.mubr.bf16.mxu0 %v4672_v0 }
 0x1ae   : > { %4155 = vmatmul.mubr.msk.bf16.vlgmr.msra.gmra.mrb[0].mxu1 %vm558_vm7, %v4594_v28 }
 0x1af   : > { %3206 = vmatprep.mubr.bf16.mxu1 %v4672_v0  ;;  %3271 = vmatpush1.bf16.msra.mxu1 %v3106_v34 }
 0x1b2   : > { %4153 = vmatmul.mubr.msk.bf16.gmra.mrb[4].mxu0 %vm558_vm7, %v4595_v35 }
 0x1b3   : > { %3249 = vmatprep.mubr.bf16.mxu0 %v4672_v0 }
 0x1b6   : > { %4156 = vmatmul.mubr.msk.bf16.gmra.mrb[4].mxu1 %vm558_vm7, %v4595_v35 }
 0x1b7   : > { %3302 = vmatprep.mubr.bf16.mxu1 %v4672_v0 }
 0x1ba   : > { %4158 = vmatmul.mubr.msk.bf16.vlgmr.msra.gmra.mrb[8].mxu0 %vm558_vm7, %v4594_v28 }
 0x1bb   : > { %3259 = vmatprep.mubr.bf16.mxu0 %v4672_v0 }
 0x1be   : > { %4161 = vmatmul.mubr.msk.bf16.vlgmr.msra.gmra.mrb[8].mxu1 %vm558_vm7, %v4594_v28 }
 0x1bf   : > { %3312 = vmatprep.mubr.bf16.mxu1 %v4672_v0 }
 0x1c2   : > { %4159 = vmatmul.mubr.msk.bf16.gmra.mrb[12].mxu0 %vm558_vm7, %v4595_v35 }
 0x1c6   : > { %4162 = vmatmul.mubr.msk.bf16.gmra.mrb[12].mxu1 %vm558_vm7, %v4595_v35  ;;  %vm3575_vm7 = vmand %vm3524_vm1, %vm3567_vm2  ;;  %vm3572_vm1 = vcmp.ne.s32.totalorder %v3564_v11, 0 }
 0x1c7   : > { %v3583_v14 = vsel %vm3575_vm7, 1, %v4672_v0  ;;  %vm3578_vm2 = vmand %vm3527_vm11, %vm3570_vm12 }
 0x1c8   : > { %v3600_v19 = vrot.slane %v3583_v14, %v5351_v45  ;;  %vm3580_vm4 = vmand %vm3529_vm0, %vm3572_vm1  ;;  %v5369_v21 = vsel %vm3578_vm2, 1, %v4672_v0 }
 0x1c9   : > { %v5393_v32 = vsel %vm3580_vm4, 1, %v4672_v0  ;;  %v3612_v26 = vrot.slane %v5369_v21, %v5351_v45 }
 0x1ca   : > { %vm5388_vm7 = vcmp.eq.s32.totalorder %v3600_v19, 1  ;;  %v3620_v34 = vrot.slane %v5393_v32, %v5351_v45 }
 0x27d   : > { %v3145_v38 = vpop.f32.mrb[0].mxu0 }
 0x27e   : > { %v3379_v17 = vadd.f32 %v5362_v20, %v3145_v38  ;;  %v3147_v23 = vpop.f32.mrb[1].mxu0 }
 0x27f   : > { %v3380_v41 = vadd.f32 %v5362_v20, %v3147_v23  ;;  %v3149_v24 = vpop.f32.mrb[2].mxu0 }
 0x280   : > { %vm3412_vm9 = vcmp.ge.f32.partialorder %v3379_v17, 0.0  ;;  %v3445_v27 = vmul.f32 %v5371_v39, %v3379_v17  ;;  %v3151_v44 = vpop.f32.mrb[3].mxu0  ;;  %v3387_v0 = vadd.f32 %v5377_v60, %v3149_v24 }
 0x281   : > { %vm3413_vm10 = vcmp.ge.f32.partialorder %v3380_v41, 0.0  ;;  %v3446_v28 = vmul.f32 %v5371_v39, %v3380_v41  ;;  %v3388_v29 = vadd.f32 %v5377_v60, %v3151_v44  ;;  %v3198_v31 = vpop.f32.mrb[0].mxu1 }
 0x282   : > { %v3477_v35 = vsel %vm3412_vm9, %v3379_v17, %v3445_v27  ;;  %vm3420_vm11 = vcmp.ge.f32.partialorder %v3387_v0, 0.0  ;;  %v3453_v36 = vmul.f32 %v5371_v39, %v3387_v0  ;;  %v3381_v37 = vadd.f32 %v5362_v20, %v3198_v31  ;;  %v3200_v40 = vpop.f32.mrb[1].mxu1 }
 0x283   : > { %v3629_v46 = vsel %vm5373_vm5, %v3477_v35, 0.0  ;;  %v3478_v47 = vsel %vm3413_vm10, %v3380_v41, %v3446_v28  ;;  %vm3421_vm12 = vcmp.ge.f32.partialorder %v3388_v29, 0.0  ;;  %v3454_v48 = vmul.f32 %v5371_v39, %v3388_v29  ;;  %v3202_v49 = vpop.f32.mrb[2].mxu1 }
 0x284   : > { %v3630_v50 = vsel %vm5384_vm6, %v3478_v47, 0.0  ;;  %v3485_v51 = vsel %vm3420_vm11, %v3387_v0, %v3453_v36  ;;  %vm3414_vm13 = vcmp.ge.f32.partialorder %v3381_v37, 0.0  ;;  %v3447_v52 = vmul.f32 %v5371_v39, %v3381_v37  ;;  %v3204_v54 = vpop.f32.mrb[3].mxu1 }
 0x285   : > { %v4218_v56 = vpack.c.bf16 %v3630_v50, %v3629_v46  ;;  %v3486_v58 = vsel %vm3421_vm12, %v3388_v29, %v3454_v48  ;;  %v3637_v59 = vsel %vm5373_vm5, %v3485_v51, 0.0  ;;  %v3382_v61 = vadd.f32 %v5362_v20, %v3200_v40  ;;  %v3155_v62 = vpop.f32.mrb[4].mxu0 }
 0x286   : > { %v3638_v1 = vsel %vm5384_vm6, %v3486_v58, 0.0  ;;  %v3479_v2 = vsel %vm3414_vm13, %v3381_v37, %v3447_v52  ;;  %v3389_v3 = vadd.f32 %v5377_v60, %v3202_v49  ;;  %v3390_v4 = vadd.f32 %v5377_v60, %v3204_v54  ;;  %v3157_v5 = vpop.f32.mrb[5].mxu0 }
 0x287   : > { %3757 = vst [vmem:[%s5434_s17] sm:$0xff] %v4218_v56  ;;  %v4222_v7 = vpack.c.bf16 %v3638_v1, %v3637_v59  ;;  %v3631_v8 = vsel %vm5388_vm7, %v3479_v2, 0.0  ;;  %vm3415_vm14 = vcmp.ge.f32.partialorder %v3382_v61, 0.0  ;;  %v3448_v9 = vmul.f32 %v5371_v39, %v3382_v61  ;;  %v3159_v10 = vpop.f32.mrb[6].mxu0 }
 0x288   : > { %vm3422_vm15 = vcmp.ge.f32.partialorder %v3389_v3, 0.0  ;;  %v3455_v11 = vmul.f32 %v5371_v39, %v3389_v3  ;;  %vm3423_vm0 = vcmp.ge.f32.partialorder %v3390_v4, 0.0  ;;  %v3456_v12 = vmul.f32 %v5371_v39, %v3390_v4  ;;  %v3161_v13 = vpop.f32.mrb[7].mxu0 }
 0x289   : > { %3761 = vst [vmem:[%s5434_s17 + $0x20] sm:$0xff] %v4222_v7  ;;  %v3480_v14 = vsel %vm3415_vm14, %v3382_v61, %v3448_v9  ;;  %v3395_v15 = vadd.f32 %v5425_v63, %v3155_v62  ;;  %v3396_v16 = vadd.f32 %v5425_v63, %v3157_v5  ;;  %v3403_v18 = vadd.f32 %v5431_v6, %v3159_v10  ;;  %v3208_v19 = vpop.f32.mrb[4].mxu1 }
 0x28a   : > { %v3632_v30 = vsel %vm5396_vm8, %v3480_v14, 0.0  ;;  %v3487_v38 = vsel %vm3422_vm15, %v3389_v3, %v3455_v11  ;;  %v3488_v17 = vsel %vm3423_vm0, %v3390_v4, %v3456_v12  ;;  %v3404_v23 = vadd.f32 %v5431_v6, %v3161_v13  ;;  %v3210_v41 = vpop.f32.mrb[5].mxu1 }
 0x28b   : > { %v4219_v24 = vpack.c.bf16 %v3632_v30, %v3631_v8  ;;  %v3639_v27 = vsel %vm5388_vm7, %v3487_v38, 0.0  ;;  %v3640_v44 = vsel %vm5396_vm8, %v3488_v17, 0.0  ;;  %vm3428_vm1 = vcmp.ge.f32.partialorder %v3395_v15, 0.0  ;;  %v3212_v0 = vpop.f32.mrb[6].mxu1 }
 0x28c   : > { %v4223_v28 = vpack.c.bf16 %v3640_v44, %v3639_v27  ;;  %vm3429_vm2 = vcmp.ge.f32.partialorder %v3396_v16, 0.0  ;;  %v3461_v29 = vmul.f32 %v5371_v39, %v3395_v15  ;;  %v3462_v31 = vmul.f32 %v5371_v39, %v3396_v16  ;;  %v3214_v35 = vpop.f32.mrb[7].mxu1 }
 0x28d   : > { %3758 = vst [vmem:[%s5434_s17 + $0x8] sm:$0xff] %v4219_v24  ;;  %vm3436_vm3 = vcmp.ge.f32.partialorder %v3403_v18, 0.0  ;;  %v3469_v36 = vmul.f32 %v5371_v39, %v3403_v18  ;;  %vm3437_vm4 = vcmp.ge.f32.partialorder %v3404_v23, 0.0  ;;  %v3470_v37 = vmul.f32 %v5371_v39, %v3404_v23  ;;  %v3251_v40 = vpop.f32.mrb[8].mxu0 }
 0x28e   : > { %3762 = vst [vmem:[%s5434_s17 + $0x28] sm:$0xff] %v4223_v28  ;;  %v3493_v46 = vsel %vm3428_vm1, %v3395_v15, %v3461_v29  ;;  %v3494_v47 = vsel %vm3429_vm2, %v3396_v16, %v3462_v31  ;;  %v3397_v48 = vadd.f32 %v5425_v63, %v3208_v19  ;;  %v3398_v49 = vadd.f32 %v5425_v63, %v3210_v41  ;;  %v3253_v51 = vpop.f32.mrb[9].mxu0 }
 0x28f   : > { %vm5464_vm9 = vcmp.eq.s32.totalorder %v3608_v25, 1  ;;  %vm5471_vm10 = vcmp.eq.s32.totalorder %v3612_v26, 1  ;;  %v3645_v54 = vsel %vm5373_vm5, %v3493_v46, 0.0  ;;  %v3646_v56 = vsel %vm5384_vm6, %v3494_v47, 0.0  ;;  %v3255_v58 = vpop.f32.mrb[10].mxu0 }
 0x290   : > { %v3501_v33 = vsel %vm3436_vm3, %v3403_v18, %v3469_v36  ;;  %v3502_v25 = vsel %vm3437_vm4, %v3404_v23, %v3470_v37  ;;  %v4226_v59 = vpack.c.bf16 %v3646_v56, %v3645_v54  ;;  %vm3430_vm11 = vcmp.ge.f32.partialorder %v3397_v48, 0.0  ;;  %v3257_v26 = vpop.f32.mrb[11].mxu0 }
 0x291   : > { %v3653_v61 = vsel %vm5373_vm5, %v3501_v33, 0.0  ;;  %v3654_v21 = vsel %vm5384_vm6, %v3502_v25, 0.0  ;;  %v3463_v1 = vmul.f32 %v5371_v39, %v3397_v48  ;;  %vm3431_vm12 = vcmp.ge.f32.partialorder %v3398_v49, 0.0  ;;  %v3304_v3 = vpop.f32.mrb[8].mxu1 }
 0x292   : > { %v4230_v62 = vpack.c.bf16 %v3654_v21, %v3653_v61  ;;  %v3464_v2 = vmul.f32 %v5371_v39, %v3398_v49  ;;  %3765 = vst [vmem:[%s5434_s17 + $0x40] sm:$0xff] %v4226_v59  ;;  %v3405_v4 = vadd.f32 %v5431_v6, %v3212_v0  ;;  %v3406_v5 = vadd.f32 %v5431_v6, %v3214_v35  ;;  %v3306_v43 = vpop.f32.mrb[9].mxu1 }
 0x293   : > { %v3383_v42 = vadd.f32 %v5362_v20, %v3251_v40  ;;  %v3384_v7 = vadd.f32 %v5362_v20, %v3253_v51  ;;  %v3495_v8 = vsel %vm3430_vm11, %v3397_v48, %v3463_v1  ;;  %v3391_v10 = vadd.f32 %v5377_v60, %v3255_v58  ;;  %v3308_v12 = vpop.f32.mrb[10].mxu1 }
 0x294   : > { %3769 = vst [vmem:[%s5434_s17 + $0x60] sm:$0xff] %v4230_v62  ;;  %v3496_v9 = vsel %vm3431_vm12, %v3398_v49, %v3464_v2  ;;  %v3392_v11 = vadd.f32 %v5377_v60, %v3257_v26  ;;  %v3647_v13 = vsel %vm5388_vm7, %v3495_v8, 0.0  ;;  %vm3438_vm5 = vcmp.ge.f32.partialorder %v3405_v4, 0.0  ;;  %v3310_v18 = vpop.f32.mrb[11].mxu1  ;;  %v3800_v16 = vld [vmem:[%s5434_s17 + $0x8] sm:$0xff] (%p4760_p4) }
 0x295   : > { %v3648_v14 = vsel %vm5396_vm8, %v3496_v9, 0.0  ;;  %v3471_v15 = vmul.f32 %v5371_v39, %v3405_v4  ;;  %vm5501_vm6 = vcmp.eq.s32.totalorder %v3616_v53, 1  ;;  %vm3439_vm13 = vcmp.ge.f32.partialorder %v3406_v5, 0.0  ;;  %v3261_v17 = vpop.f32.mrb[12].mxu0  ;;  %4187 = vst [vmem:[%s3892_s16 + $0x28] sm:$0xff] (%p4760_p4), %v3800_v16 }
 0x296   : > { %v4227_v19 = vpack.c.bf16 %v3648_v14, %v3647_v13  ;;  %v3472_v30 = vmul.f32 %v5371_v39, %v3406_v5  ;;  %vm3416_vm14 = vcmp.ge.f32.partialorder %v3383_v42, 0.0  ;;  %vm5509_vm15 = vcmp.eq.s32.totalorder %v3620_v34, 1  ;;  %v3263_v41 = vpop.f32.mrb[13].mxu0 }
 0x297   : > { %v3503_v23 = vsel %vm3438_vm5, %v3405_v4, %v3471_v15  ;;  %v3449_v22 = vmul.f32 %v5371_v39, %v3383_v42  ;;  %vm3417_vm0 = vcmp.ge.f32.partialorder %v3384_v7, 0.0  ;;  %v3450_v53 = vmul.f32 %v5371_v39, %v3384_v7  ;;  %v3265_v32 = vpop.f32.mrb[14].mxu0 }
 0x298   : > { %3766 = vst [vmem:[%s5434_s17 + $0x48] sm:$0xff] %v4227_v19  ;;  %v3655_v24 = vsel %vm5388_vm7, %v3503_v23, 0.0  ;;  %v3504_v27 = vsel %vm3439_vm13, %v3406_v5, %v3472_v30  ;;  %vm3424_vm1 = vcmp.ge.f32.partialorder %v3391_v10, 0.0  ;;  %v3457_v45 = vmul.f32 %v5371_v39, %v3391_v10  ;;  %v3267_v28 = vpop.f32.mrb[15].mxu0 }
 0x299   : > { %v3656_v34 = vsel %vm5396_vm8, %v3504_v27, 0.0  ;;  %v3481_v44 = vsel %vm3416_vm14, %v3383_v42, %v3449_v22  ;;  %v3482_v0 = vsel %vm3417_vm0, %v3384_v7, %v3450_v53  ;;  %vm3425_vm2 = vcmp.ge.f32.partialorder %v3392_v11, 0.0  ;;  %v3314_v36 = vpop.f32.mrb[12].mxu1 }
 0x29a   : > { %v4231_v29 = vpack.c.bf16 %v3656_v34, %v3655_v24  ;;  %v3633_v31 = vsel %vm5464_vm9, %v3481_v44, 0.0  ;;  %v3634_v57 = vsel %vm5471_vm10, %v3482_v0, 0.0  ;;  %v3489_v35 = vsel %vm3424_vm1, %v3391_v10, %v3457_v45  ;;  %v3316_v47 = vpop.f32.mrb[13].mxu1 }
 0x29b   : > { %v4220_v37 = vpack.c.bf16 %v3634_v57, %v3633_v31  ;;  %v3641_v55 = vsel %vm5464_vm9, %v3489_v35, 0.0  ;;  %v3458_v40 = vmul.f32 %v5371_v39, %v3392_v11  ;;  %v3385_v46 = vadd.f32 %v5362_v20, %v3304_v3  ;;  %v3318_v56 = vpop.f32.mrb[14].mxu1 }
 0x29c   : > { %3770 = vst [vmem:[%s5434_s17 + $0x68] sm:$0xff] %v4231_v29  ;;  %v3386_v48 = vadd.f32 %v5362_v20, %v3306_v43  ;;  %v3393_v49 = vadd.f32 %v5377_v60, %v3308_v12  ;;  %v3394_v51 = vadd.f32 %v5377_v60, %v3310_v18  ;;  %v3399_v54 = vadd.f32 %v5425_v63, %v3261_v17  ;;  %v3320_v59 = vpop.f32.mrb[15].mxu1 }
 0x29d   : > { %3759 = vst [vmem:[%s5434_s17 + $0x10] sm:$0xff] %v4220_v37  ;;  %v3490_v33 = vsel %vm3425_vm2, %v3392_v11, %v3458_v40  ;;  %vm3418_vm7 = vcmp.ge.f32.partialorder %v3385_v46, 0.0  ;;  %v3451_v25 = vmul.f32 %v5371_v39, %v3385_v46  ;;  %v3400_v58 = vadd.f32 %v5425_v63, %v3263_v41 }
 0x29e   : > { %v3642_v20 = vsel %vm5471_vm10, %v3490_v33, 0.0  ;;  %vm3419_vm8 = vcmp.ge.f32.partialorder %v3386_v48, 0.0  ;;  %v3452_v61 = vmul.f32 %v5371_v39, %v3386_v48  ;;  %vm3426_vm3 = vcmp.ge.f32.partialorder %v3393_v49, 0.0 }
 0x29f   : > { %v4224_v60 = vpack.c.bf16 %v3642_v20, %v3641_v55  ;;  %v3483_v21 = vsel %vm3418_vm7, %v3385_v46, %v3451_v25  ;;  %v3459_v26 = vmul.f32 %v5371_v39, %v3393_v49  ;;  %vm3427_vm4 = vcmp.ge.f32.partialorder %v3394_v51, 0.0  ;;  %v3806_v46 = vld [vmem:[%s5434_s17 + $0x20] sm:$0xff] (%p4760_p4) }
 0x2a0   : > { %v3635_v62 = vsel %vm5501_vm6, %v3483_v21, 0.0  ;;  %v3484_v1 = vsel %vm3419_vm8, %v3386_v48, %v3452_v61  ;;  %v3460_v2 = vmul.f32 %v5371_v39, %v3394_v51  ;;  %vm3432_vm11 = vcmp.ge.f32.partialorder %v3399_v54, 0.0  ;;  %4190 = vst [vmem:[%s3892_s16 + $0xa0] sm:$0xff] (%p4760_p4), %v3806_v46  ;;  %v3822_v25 = vld [vmem:[%s5434_s17 + $0x60] sm:$0xff] (%p4760_p4) }
 0x2a1   : > { %3763 = vst [vmem:[%s5434_s17 + $0x30] sm:$0xff] %v4224_v60  ;;  %v3636_v3 = vsel %vm5509_vm15, %v3484_v1, 0.0  ;;  %v3491_v4 = vsel %vm3426_vm3, %v3393_v49, %v3459_v26  ;;  %v3465_v5 = vmul.f32 %v5371_v39, %v3399_v54  ;;  %vm3433_vm12 = vcmp.ge.f32.partialorder %v3400_v58, 0.0  ;;  %4198 = vst [vmem:[%s3892_s16 + $0x1a0] sm:$0xff] (%p4760_p4), %v3822_v25 }
 0x2a2   : > { %v4221_v42 = vpack.c.bf16 %v3636_v3, %v3635_v62  ;;  %v3643_v7 = vsel %vm5501_vm6, %v3491_v4, 0.0  ;;  %v3492_v43 = vsel %vm3427_vm4, %v3394_v51, %v3460_v2  ;;  %v3466_v8 = vmul.f32 %v5371_v39, %v3400_v58  ;;  %v3814_v51 = vld [vmem:[%s5434_s17 + $0x40] sm:$0xff] (%p4760_p4) }
 0x2a3   : > { %v3644_v9 = vsel %vm5509_vm15, %v3492_v43, 0.0  ;;  %v3497_v10 = vsel %vm3432_vm11, %v3399_v54, %v3465_v5  ;;  %v3407_v11 = vadd.f32 %v5431_v6, %v3265_v32  ;;  %v3408_v12 = vadd.f32 %v5431_v6, %v3267_v28  ;;  %v3816_v54 = vld [vmem:[%s5434_s17 + $0x48] sm:$0xff] (%p4760_p4)  ;;  %4194 = vst [vmem:[%s3892_s16 + $0x120] sm:$0xff] (%p4760_p4), %v3814_v51 }
 0x2a4   : > { %3760 = vst [vmem:[%s5434_s17 + $0x18] sm:$0xff] %v4221_v42  ;;  %v4225_v13 = vpack.c.bf16 %v3644_v9, %v3643_v7  ;;  %v3649_v14 = vsel %vm5464_vm9, %v3497_v10, 0.0  ;;  %v3498_v15 = vsel %vm3433_vm12, %v3400_v58, %v3466_v8  ;;  %v3401_v18 = vadd.f32 %v5425_v63, %v3314_v36  ;;  %v3802_v38 = vld [vmem:[%s5434_s17 + $0x10] sm:$0xff] (%p4760_p4)  ;;  %4195 = vst [vmem:[%s3892_s16 + $0x128] sm:$0xff] (%p4760_p4), %v3816_v54  ;;  %v3824_v58 = vld [vmem:[%s5434_s17 + $0x68] sm:$0xff] (%p4760_p4) }
 0x2a5   : > { %v3650_v19 = vsel %vm5471_vm10, %v3498_v15, 0.0  ;;  %vm3440_vm5 = vcmp.ge.f32.partialorder %v3407_v11, 0.0  ;;  %v3473_v30 = vmul.f32 %v5371_v39, %v3407_v11  ;;  %vm3441_vm13 = vcmp.ge.f32.partialorder %v3408_v12, 0.0  ;;  %4188 = vst [vmem:[%s3892_s16 + $0x30] sm:$0xff] (%p4760_p4), %v3802_v38  ;;  %4199 = vst [vmem:[%s3892_s16 + $0x1a8] sm:$0xff] (%p4760_p4), %v3824_v58 }
 0x2a6   : > { %3764 = vst [vmem:[%s5434_s17 + $0x38] sm:$0xff] %v4225_v13  ;;  %v4228_v17 = vpack.c.bf16 %v3650_v19, %v3649_v14  ;;  %v3474_v23 = vmul.f32 %v5371_v39, %v3408_v12  ;;  %vm3434_vm14 = vcmp.ge.f32.partialorder %v3401_v18, 0.0  ;;  %v3467_v22 = vmul.f32 %v5371_v39, %v3401_v18 }
 0x2a7   : > { %v3505_v53 = vsel %vm3440_vm5, %v3407_v11, %v3473_v30  ;;  %v3402_v41 = vadd.f32 %v5425_v63, %v3316_v47  ;;  %v3409_v24 = vadd.f32 %v5431_v6, %v3318_v56  ;;  %v3410_v27 = vadd.f32 %v5431_v6, %v3320_v59  ;;  %v3808_v47 = vld [vmem:[%s5434_s17 + $0x28] sm:$0xff] (%p4760_p4) }
 0x2a8   : > { %3767 = vst [vmem:[%s5434_s17 + $0x50] sm:$0xff] %v4228_v17  ;;  %v3657_v45 = vsel %vm5464_vm9, %v3505_v53, 0.0  ;;  %v3506_v32 = vsel %vm3441_vm13, %v3408_v12, %v3474_v23  ;;  %v3499_v34 = vsel %vm3434_vm14, %v3401_v18, %v3467_v22  ;;  %v3810_v48 = vld [vmem:[%s5434_s17 + $0x30] sm:$0xff] (%p4760_p4)  ;;  %4191 = vst [vmem:[%s3892_s16 + $0xa8] sm:$0xff] (%p4760_p4), %v3808_v47 }
 0x2a9   : > { %v3658_v44 = vsel %vm5471_vm10, %v3506_v32, 0.0  ;;  %v3651_v0 = vsel %vm5501_vm6, %v3499_v34, 0.0  ;;  %vm3435_vm0 = vcmp.ge.f32.partialorder %v3402_v41, 0.0  ;;  %v3468_v63 = vmul.f32 %v5371_v39, %v3402_v41  ;;  %4192 = vst [vmem:[%s3892_s16 + $0xb0] sm:$0xff] (%p4760_p4), %v3810_v48 }
 0x2aa   : > { %v4232_v28 = vpack.c.bf16 %v3658_v44, %v3657_v45  ;;  %vm3442_vm1 = vcmp.ge.f32.partialorder %v3409_v24, 0.0  ;;  %v3475_v6 = vmul.f32 %v5371_v39, %v3409_v24  ;;  %vm3443_vm2 = vcmp.ge.f32.partialorder %v3410_v27, 0.0 }
 0x2ab   : > { %v3500_v50 = vsel %vm3435_vm0, %v3402_v41, %v3468_v63  ;;  %v3476_v29 = vmul.f32 %v5371_v39, %v3410_v27  ;;  %3779 = sbr.rel (!%p4760_p4) target bundleno = 698 (0x2ba), region = 56  ;;  %v3798_v39 = vld [vmem:[%s5434_s17] sm:$0xff] (%p4760_p4)  ;;  %v3804_v40 = vld [vmem:[%s5434_s17 + $0x18] sm:$0xff] (%p4760_p4) }
 0x2ac   : > { %3771 = vst [vmem:[%s5434_s17 + $0x70] sm:$0xff] %v4232_v28  ;;  %v3652_v52 = vsel %vm5509_vm15, %v3500_v50, 0.0  ;;  %v3507_v31 = vsel %vm3442_vm1, %v3409_v24, %v3475_v6  ;;  %4186 = vst [vmem:[%s3892_s16 + $0x20] sm:$0xff] (%p4760_p4), %v3798_v39 }
 0x2ad   : > { %v4229_v57 = vpack.c.bf16 %v3652_v52, %v3651_v0  ;;  %v3659_v35 = vsel %vm5501_vm6, %v3507_v31, 0.0  ;;  %v3508_v36 = vsel %vm3443_vm2, %v3410_v27, %v3476_v29  ;;  %v3812_v49 = vld [vmem:[%s5434_s17 + $0x38] sm:$0xff] (%p4760_p4)  ;;  %4189 = vst [vmem:[%s3892_s16 + $0x38] sm:$0xff] (%p4760_p4), %v3804_v40 }
 0x2ae   : > { %v3660_v37 = vsel %vm5509_vm15, %v3508_v36, 0.0  ;;  %4193 = vst [vmem:[%s3892_s16 + $0xb8] sm:$0xff] (%p4760_p4), %v3812_v49 }
 0x2af   : > { %3768 = vst [vmem:[%s5434_s17 + $0x58] sm:$0xff] %v4229_v57  ;;  %v4233_v55 = vpack.c.bf16 %v3660_v37, %v3659_v35  ;;  %v3818_v56 = vld [vmem:[%s5434_s17 + $0x50] sm:$0xff] (%p4760_p4) }
 0x2b0   : > { %4196 = vst [vmem:[%s3892_s16 + $0x130] sm:$0xff] (%p4760_p4), %v3818_v56 }
 0x2b1   : > { %3772 = vst [vmem:[%s5434_s17 + $0x78] sm:$0xff] %v4233_v55 }
 0x2b3   : > { %v3826_v59 = vld [vmem:[%s5434_s17 + $0x70] sm:$0xff] }
 0x2b4   : > { %4200 = vst [vmem:[%s3892_s16 + $0x1b0] sm:$0xff] %v3826_v59 }
 0x2b6   : > { %v3820_v33 = vld [vmem:[%s5434_s17 + $0x58] sm:$0xff] }
 0x2b7   : > { %4197 = vst [vmem:[%s3892_s16 + $0x138] sm:$0xff] %v3820_v33 }
 0x2b8   : > { %v3828_v20 = vld [vmem:[%s5434_s17 + $0x78] sm:$0xff] }
 0x2b9   : > { %4201 = vst [vmem:[%s3892_s16 + $0x1b8] sm:$0xff] %v3828_v20 }
 0x2ba PF: > { %s18_s30 = sadd.s32 1, %s4669_s30   ;;  %s5671_s27 = sld [smem:[#allocation11_spill]] }
 0x2bb   : > { %p15_p4 = scmp.ge.s32.totalorder %s18_s30, 6   ;;  %s5672_s26 = sld [smem:[#allocation7_spill]] }
 0x2bc   : > { %s5673_s11 = sld [smem:[#allocation8_spill]]  ;;  %s5674_s28 = sld [smem:[#allocation9_spill]] }
 0x2bd   : > { %s5675_s29 = sld [smem:[#allocation10_spill]]  ;;  %s5676_s24 = smov %s4649_s25 }
 0x2be   :  { %17 = sbr.rel (!%p15_p4) target bundleno = 6 (0x6), region = 112 }
 0x2c0   : > { %s5677_s25 = smov %s5671_s27 }
 0x2c2   : > { %s5678_s27 = smov %s5673_s11 }
 0x2c5   :  { %3845 = vsyncpa [#allocation4], 1 }
 0x2c6   :  { %3847 = vsyncpa [#allocation4 + $0x1], 1 }

// kernel: res_block_forward.4
= control target key start
LH: loop header
LB: loop body
LE: loop exit
PB: predicated region body
PF: predicated region fallthrough
CT: control target
= control target key end

     0   :  { %s6278_s0 = inlined_call_operand.vmem [shape: bf16[2,32,4096], index: 0, kind: input, shape index: {}, may-alias: {0,1,2}]   ;;  %s6279_s1 = inlined_call_operand.vmem [shape: bf16[2,32,4096], index: 1, kind: input, shape index: {}, may-alias: {0,1,2}]   ;;  %s6280_s2 = inlined_call_operand.vmem [shape: bf16[2,32,4096], index: 2, kind: input, shape index: {}, may-alias: {0,1,2}]   ;;  %s6281_s3 = inlined_call_operand.vmem [shape: bf16[9,32,32], index: 3, kind: input, shape index: {}]   ;;  %s6282_s4 = inlined_call_operand.vmem [shape: f32[32,1], index: 4, kind: input, shape index: {}]   ;;  %s6283_s5 = inlined_call_operand.vmem [shape: f32[1,1024], index: 5, kind: input, shape index: {}]   ;;  %s6284_s6 = inlined_call_operand.vmem [shape: f32[2], index: 6, kind: input, shape index: {}]   ;;  %s6285_s7 = inlined_call_operand.vmem [shape: bf16[2,32,4096], index: 7, kind: output, shape index: {0}]   ;;  %s6286_s8 = inlined_call_operand.vmem [shape: f32[2,32,256], index: 8, kind: output, shape index: {1}]  }
   0x1   :  { %6294 = sst [smem:[#allocation21_spill]] %s6281_s3 }
   0x2   :  { %6295 = sst [smem:[#allocation22_spill]] %s6282_s4 }
   0x3   :  { %6296 = sst [smem:[#allocation23_spill]] %s6283_s5 }
   0x4   :  { %6297 = sst [smem:[#allocation24_spill]] %s6284_s6 }
   0x5   :  { %6298 = sst [smem:[#allocation25_spill]] %s6285_s7 }
   0x6   :  { %6299 = sst [smem:[#allocation26_spill]] %s6286_s8 }
   0x7   :  { %14 = vsyncpa [#allocation7], 0  ;;  %s5046_s27 = smov 0   ;;  %s5048_s28 = smov 0  }
   0x8   :  { %s5050_s29 = smov 0   ;;  %s5052_s30 = smov 0  }
   0x9   :  { %s5054_s9 = smov 0   ;;  %s5056_s10 = smov 0  }
   0xa   :  { %s5058_s11 = smov 0   ;;  %s5060_s12 = smov 0  }
   0xb   :  { %s5062_s13 = smov 0   ;;  %s5064_s14 = smov 0  }
   0xc   :  { %s5066_s15 = smov 0   ;;  %s5068_s16 = smov 0  }
   0xd   :  { %s5070_s17 = smov 0  }
   0xe LB: > { %6300 = sst [smem:[#allocation11_spill]] %s4963_s9  ;;  %s29_s19 = sadd.s32 1, %s4987_s15  ;;  %s4995_s17 = sphi %s5070_s17, %s20_s17   ;;  %s4991_s16 = sphi %s5068_s16, %s6374_s16   ;;  %s4987_s15 = sphi %s5066_s15, %s6363_s15   ;;  %s4983_s14 = sphi %s5064_s14, %s6373_s14   ;;  %s4979_s13 = sphi %s5062_s13, %s6362_s13   ;;  %s4975_s12 = sphi %s5060_s12, %s6372_s12   ;;  %s4971_s11 = sphi %s5058_s11, %s6371_s11   ;;  %s4967_s10 = sphi %s5056_s10, %s6370_s10   ;;  %s4963_s9 = sphi %s5054_s9, %s6369_s9   ;;  %s4959_s30 = sphi %s5052_s30, %s6368_s30   ;;  %s4955_s29 = sphi %s5050_s29, %s6367_s29   ;;  %s4951_s28 = sphi %s5048_s28, %s6366_s28   ;;  %s4947_s27 = sphi %s5046_s27, %s6365_s27  }
   0xf   : > { %6301 = sst [smem:[#allocation12_spill]] %s4979_s13  ;;  %p30_p0 = scmp.ge.s32.totalorder %s29_s19, 2 }
  0x10   : > { %6302 = sst [smem:[#allocation13_spill]] %s4983_s14  ;;  %s32_s20 = sadd.s32 1, %s4991_s16 }
  0x11   : > { %6303 = sst [smem:[#allocation14_spill]] %s4987_s15  ;;  %s43_s21 = sadd.s32 1, %s4975_s12 }
  0x12   : > { %p50_p1 = scmp.ne.s32.totalorder %s4975_s12, %s4971_s11  ;;  %s6376_s20 = smov (!%p30_p0, %s32_s20), %s4991_s16 }
  0x13   : > { %s5117_s22 = scalar_select %p30_p0, 0, %s29_s19  }
  0x14   : > { %p51_p2 = scmp.eq.s32.totalorder %s4995_s17, 0  ;;  %p34_p3 = scmp.ge.s32.totalorder %s6376_s20, 2 }
  0x15   : > { %6304 = sst [smem:[#allocation15_spill]] %s5117_s22  ;;  %s37_s23 = sadd.s32 1, %s5117_s22 }
  0x16   : > { %s39_s24 = ssub.s32 %s29_s19, %s37_s23  ;;  %p5127_p4 = por %p51_p2, %p50_p1 }
  0x17   : > { %s5132_s26 = sshll.u32 %s4987_s15, 3  ;;  %s6378_s20 = smov (%p34_p3, %s6376_s20), 0 }
  0x18   : > { %6306 = sst [smem:[#allocation16_spill]] %s6378_s20  ;;  %s4450_s18 = sadd.s32 8, %s5132_s26 }
  0x19   : > { %s4451_s8 = sshll.u32 %s5117_s22, 3  ;;  %s38_s19 = ssub.s32 %s4991_s16, %s6378_s20 }
  0x1a   : > { %s5140_s23 = sadd.s32 4294967295, %s4450_s18  ;;  %s40_s7 = sor.u32 %s39_s24, %s38_s19 }
  0x1b   : > { %s4452_s14 = sadd.s32 8, %s4451_s8  ;;  %p41_p5 = scmp.eq.s32.totalorder %s40_s7, 0 }
  0x1c   : > { %s4250_s5 = sadd.s32 4294967295, %s4452_s14  ;;  %s77_s3 = sadd.s32 1, %s4967_s10 }
  0x1d   : > { %s73_s4 = ssub.s32 %s5140_s23, %s4250_s5  ;;  %p84_p6 = scmp.ne.s32.totalorder %s4967_s10, %s4963_s9 }
  0x1e   : > { %s5145_s13 = scalar_select %p41_p5, %s4975_s12, %s43_s21  }
  0x1f   : > { %s74_s20 = sor.u32 %s73_s4, %s38_s19  ;;  %s4454_s18 = sadd.s32 16, %s5132_s26 }
  0x20   : > { %6307 = sst [smem:[#allocation17_spill]] %s5145_s13  ;;  %p75_p7 = scmp.eq.s32.totalorder %s74_s20, 0 }
  0x21   : > { %p5152_p8 = por %p84_p6, %p51_p2  ;;  %s4456_s5 = sadd.s32 16, %s4451_s8 }
  0x22   : > { %s5157_s14 = scalar_select %p75_p7, %s4967_s10, %s77_s3  }
  0x23   : > { %s6308_s7 = scalar_select %p5152_p8, 1, 0 }
  0x24   : > { %6309 = sst [smem:[#allocation18_spill]] %s5157_s14  ;;  %s105_s21 = ssub.s32 %s4454_s18, %s4456_s5 }
  0x25   : > { %s109_s4 = sadd.s32 1, %s4959_s30  ;;  %s106_s24 = sor.u32 %s105_s21, %s38_s19 }
  0x26   : > { %p116_p9 = scmp.ne.s32.totalorder %s4959_s30, %s4955_s29  ;;  %p107_p10 = scmp.eq.s32.totalorder %s106_s24, 0 }
  0x27   : > { %s6310_s20 = sadd.s32 4294967295, %s4995_s17   ;;  %s247_s9 = ssub.s32 %s4987_s15, %s5117_s22 }
  0x28   : > { %p234_p11 = scmp.eq.s32.totalorder %s6310_s20, 3  ;;  %p5166_p12 = por %p116_p9, %p51_p2 }
  0x29   : > { %s5173_s8 = scalar_select %p107_p10, %s4959_s30, %s109_s4  }
  0x2a   : > { %s6311_s13 = scalar_select %p5166_p12, 1, 0 }
  0x2b   : > { %6312 = sst [smem:[#allocation19_spill]] %s5173_s8  ;;  %p5178_p13 = por %p234_p11, %p50_p1 }
  0x2c   : > { %s248_s18 = sor.u32 %s247_s9, %s38_s19  ;;  %s251_s5 = sadd.s32 1, %s4951_s28 }
  0x2d   : > { %s6313_s3 = scalar_select %p5178_p13, 1, 0 }
  0x2e   : > { %p249_p0 = scmp.eq.s32.totalorder %s248_s18, 0  ;;  %p261_p3 = scmp.ne.s32.totalorder %s4951_s28, %s4947_s27 }
  0x2f   : > { %p4253_p5 = scmp.ge.s32.totalorder %s4995_s17, 1  ;;  %p275_p2 = scmp.lt.s32.totalorder %s4995_s17, 5 }
  0x30   : > { %s5187_s21 = scalar_select %p249_p0, %s4951_s28, %s251_s5  }
  0x31   : > { %p5189_p6 = por %p261_p3, %p234_p11  ;;  %p5196_p7 = scmp.eq.s32.totalorder %s6310_s20, 0 }
  0x32   : > { %6314 = sst [smem:[#allocation20_spill]] %s5187_s21  ;;  %p5200_p1 = pnand %p4253_p5, %p275_p2 }
  0x33   : > { %s6315_s24 = scalar_select %p5189_p6, 1, 0 }
  0x34   : > { %s6318_s6 = sld [smem:[#allocation24_spill]]  ;;  %p4735_p9 = pneg %p5200_p1 }
  0x36   : > { %p4736_p10 = pnand %p5196_p7, %p4735_p9 }
  0x38   : > { %p4876_p0 = pneg %p4736_p10 }
  0x3a   : > { %s297_s18 = sshll.u32 %s6318_s6, 4  ;;  %s298_s18 = int_to_ptr.vmem [resolvable:$true] %s297_s18 }
  0x3b   : > { %s4874_s5 = scalar_lea.vmem %s298_s18, 16  ;;  %p4882_p13 = scmp.lt.s32.totalorder %s298_s18, %s298_s18 }
  0x3c   : > { %p4875_p11 = scmp.ne.s32.totalorder %s298_s18, %s4874_s5  ;;  %p4883_p5 = scmp.lt.s32.totalorder %s4874_s5, %s4874_s5 }
  0x3e   : > { %p4877_p3 = pnand %p4876_p0, %p4875_p11  ;;  %p4884_p2 = por %p4883_p5, %p4882_p13 }
  0x40   : > { %p4878_p6 = pneg %p4877_p3 }
  0x42   : > { %p4885_p12 = pnand %p4884_p2, %p4878_p6 }
  0x44   : > { %4888 = shalt.err (!%p4885_p12)
}
  0x45   : > { %s4997_s20 = smov [#allocation6]   ;;  %p4255_p8 = scmp.ge.s32.totalorder %s4995_s17, 4 }
  0x46   : > { %4738 = dma.vmem_to_smem (!%p4736_p10), %s298_s18, 16, %s4997_s20, [#allocation7]  }
  0x47   : > { %304 = sbr.rel (%p4255_p8) target bundleno = 114 (0x72), region = 32 }
  0x4e   : > { %307 = sbr.rel (!%p5127_p4) target bundleno = 92 (0x5c), region = 36  ;;  %s309_s9 = sand.u32 (%p5127_p4), 1, %s4975_s12  }
  0x4f   : > { %s4258_s19 = sshll.u32 (%p5127_p4), %s4991_s16, 7  ;;  %s4256_s6 = sshll.u32 (%p5127_p4), %s309_s9, 7 }
  0x50   : > { %s4111_s15 = sadd.s32 (%p5127_p4), %s5132_s26, %s4258_s19  ;;  %s311_s25 = scalar_lea.vmem (%p5127_p4), [#allocation3], %s4256_s6 }
  0x51   : > { %s4259_s14 = sshll.u32 (%p5127_p4), %s4111_s15, 2 }
  0x52   : > { %s5220_s21 = scalar_lea.vmem (%p5127_p4), %s6278_s0, %s4259_s14 }
  0x53   : > { %v4260_v0 = vld [vmem:[%s5220_s21 + $0x20] sm:$0xff] (%p5127_p4)  ;;  %v4261_v1 = vld [vmem:[%s5220_s21 + $0x28] sm:$0xff] (%p5127_p4)  ;;  %v4262_v2 = vld [vmem:[%s5220_s21 + $0x30] sm:$0xff] (%p5127_p4) }
  0x54   : > { %331 = vst [vmem:[%s311_s25] sm:$0xff] (%p5127_p4), %v4260_v0  ;;  %333 = vst [vmem:[%s311_s25 + $0x8] sm:$0xff] (%p5127_p4), %v4261_v1  ;;  %v4263_v3 = vld [vmem:[%s5220_s21 + $0x38] sm:$0xff] (%p5127_p4)  ;;  %v4264_v4 = vld [vmem:[%s5220_s21 + $0xa0] sm:$0xff] (%p5127_p4) }
  0x55   : > { %335 = vst [vmem:[%s311_s25 + $0x10] sm:$0xff] %v4262_v2  ;;  %v4265_v5 = vld [vmem:[%s5220_s21 + $0xa8] sm:$0xff]  ;;  %337 = vst [vmem:[%s311_s25 + $0x18] sm:$0xff] %v4263_v3  ;;  %v4266_v6 = vld [vmem:[%s5220_s21 + $0xb0] sm:$0xff] }
  0x56   : > { %339 = vst [vmem:[%s311_s25 + $0x20] sm:$0xff] %v4264_v4  ;;  %341 = vst [vmem:[%s311_s25 + $0x28] sm:$0xff] %v4265_v5  ;;  %v4267_v7 = vld [vmem:[%s5220_s21 + $0xb8] sm:$0xff]  ;;  %v4268_v8 = vld [vmem:[%s5220_s21 + $0x120] sm:$0xff] }
  0x57   : > { %343 = vst [vmem:[%s311_s25 + $0x30] sm:$0xff] %v4266_v6  ;;  %345 = vst [vmem:[%s311_s25 + $0x38] sm:$0xff] %v4267_v7  ;;  %v4269_v9 = vld [vmem:[%s5220_s21 + $0x128] sm:$0xff]  ;;  %v4270_v10 = vld [vmem:[%s5220_s21 + $0x130] sm:$0xff] }
  0x58   : > { %347 = vst [vmem:[%s311_s25 + $0x40] sm:$0xff] %v4268_v8  ;;  %v4271_v11 = vld [vmem:[%s5220_s21 + $0x138] sm:$0xff]  ;;  %349 = vst [vmem:[%s311_s25 + $0x48] sm:$0xff] %v4269_v9  ;;  %v4272_v12 = vld [vmem:[%s5220_s21 + $0x1a0] sm:$0xff] }
  0x59   : > { %351 = vst [vmem:[%s311_s25 + $0x50] sm:$0xff] %v4270_v10  ;;  %353 = vst [vmem:[%s311_s25 + $0x58] sm:$0xff] %v4271_v11  ;;  %v4273_v13 = vld [vmem:[%s5220_s21 + $0x1a8] sm:$0xff]  ;;  %v4274_v14 = vld [vmem:[%s5220_s21 + $0x1b0] sm:$0xff] }
  0x5a   : > { %355 = vst [vmem:[%s311_s25 + $0x60] sm:$0xff] %v4272_v12  ;;  %357 = vst [vmem:[%s311_s25 + $0x68] sm:$0xff] %v4273_v13  ;;  %v4275_v15 = vld [vmem:[%s5220_s21 + $0x1b8] sm:$0xff] }
  0x5b   : > { %359 = vst [vmem:[%s311_s25 + $0x70] sm:$0xff] %v4274_v14  ;;  %361 = vst [vmem:[%s311_s25 + $0x78] sm:$0xff] %v4275_v15 }
  0x5c PF: > { %p6319_p4 = scmp.ne.s32.totalorder %s6308_s7, 0 }
  0x5d   : > { %s369_s6 = sand.u32 (%p6319_p4), 1, %s4967_s10   ;;  %s4279_s15 = sshll.u32 (%p6319_p4), %s4991_s16, 7 }
  0x5e   : > { %367 = sbr.rel (!%p6319_p4) target bundleno = 103 (0x67), region = 59  ;;  %s4276_s14 = sshll.u32 (%p6319_p4), %s369_s6, 4 }
  0x5f   : > { %s376_s8 = sadd.s32 (%p6319_p4), %s4279_s15, %s5140_s23  ;;  %s371_s21 = scalar_lea.vmem (%p6319_p4), [#allocation4], %s4276_s14 }
  0x60   : > { %s4280_s18 = sshll.u32 (%p6319_p4), %s376_s8, 2 }
  0x61   : > { %s378_s19 = scalar_lea.vmem (%p6319_p4), %s6279_s1, %s4280_s18 }
  0x62   : > { %v394_v16 = vld [vmem:[%s378_s19] sm:$0xf] (%p6319_p4) }
  0x63   : > { %v396_v17 = vld [vmem:[%s378_s19 + $0x80] sm:$0xf] (%p6319_p4)  ;;  %395 = vst [vmem:[%s371_s21] sm:$0xf] (%p6319_p4), %v394_v16 }
  0x64   : > { %v398_v18 = vld [vmem:[%s378_s19 + $0x100] sm:$0xf] (%p6319_p4)  ;;  %397 = vst [vmem:[%s371_s21 + $0x4] sm:$0xf] (%p6319_p4), %v396_v17 }
  0x65   : > { %399 = vst [vmem:[%s371_s21 + $0x8] sm:$0xf] %v398_v18  ;;  %v400_v19 = vld [vmem:[%s378_s19 + $0x180] sm:$0xf] }
  0x66   : > { %401 = vst [vmem:[%s371_s21 + $0xc] sm:$0xf] %v400_v19 }
  0x67 PF: > { %p6320_p8 = scmp.ne.s32.totalorder %s6311_s13, 0 }
  0x68   : > { %s434_s23 = sand.u32 (%p6320_p8), 1, %s4959_s30   ;;  %s4283_s7 = sshll.u32 (%p6320_p8), %s4991_s16, 7 }
  0x69   : > { %432 = sbr.rel (!%p6320_p8) target bundleno = 114 (0x72), region = 100  ;;  %s4281_s5 = sshll.u32 (%p6320_p8), %s434_s23, 4 }
  0x6a   : > { %s4125_s25 = sadd.s32 (%p6320_p8), %s5132_s26, %s4283_s7  ;;  %s436_s18 = scalar_lea.vmem (%p6320_p8), [#allocation5], %s4281_s5 }
  0x6b   : > { %s4284_s6 = sshll.u32 (%p6320_p8), %s4125_s25, 2 }
  0x6c   : > { %s4127_s14 = scalar_lea.vmem (%p6320_p8), %s6280_s2, %s4284_s6 }
  0x6d   : > { %v4285_v20 = vld [vmem:[%s4127_s14 + $0x40] sm:$0xf] (%p6320_p8) }
  0x6e   : > { %v4286_v21 = vld [vmem:[%s4127_s14 + $0xc0] sm:$0xf] (%p6320_p8)  ;;  %459 = vst [vmem:[%s436_s18] sm:$0xf] (%p6320_p8), %v4285_v20 }
  0x6f   : > { %v4287_v22 = vld [vmem:[%s4127_s14 + $0x140] sm:$0xf] (%p6320_p8)  ;;  %461 = vst [vmem:[%s436_s18 + $0x4] sm:$0xf] (%p6320_p8), %v4286_v21 }
  0x70   : > { %463 = vst [vmem:[%s436_s18 + $0x8] sm:$0xf] %v4287_v22  ;;  %v4288_v23 = vld [vmem:[%s4127_s14 + $0x1c0] sm:$0xf] }
  0x71   : > { %465 = vst [vmem:[%s436_s18 + $0xc] sm:$0xf] %v4288_v23 }
  0x72 PF: > { %499 = sbr.rel (%p5200_p1) target bundleno = 906 (0x38a), region = 141  ;;  %s6321_s13 = sld [smem:[#allocation11_spill]] (!%p5200_p1) }
  0x73   : > { %s502_s26 = sand.u32 (!%p5200_p1), 1, %s4971_s11   ;;  %s516_s21 = sand.u32 (!%p5200_p1), 1, %s4955_s29  }
  0x74   : > { %s5258_s9 = sshll.u32 (!%p5200_p1), %s502_s26, 7  ;;  %s4292_s23 = sshll.u32 (!%p5200_p1), %s516_s21, 4 }
  0x75   : > { %s5262_s7 = scalar_lea.vmem (!%p5200_p1), [#allocation3], %s5258_s9  ;;  %s5264_s25 = scalar_lea.vmem (!%p5200_p1), [#allocation5], %s4292_s23 }
  0x78   : > { %s509_s20 = sand.u32 (!%p5200_p1), 1, %s6321_s13  }
  0x79   : > { %s4291_s19 = sshll.u32 %s509_s20, 4 }
  0x7a   : > { %s511_s5 = scalar_lea.vmem [#allocation4], %s4291_s19 }
  0x7b   : > { %4942 = dma.done.wait (%p5196_p7), [#allocation7], 16  }
  0x7c   : > { %4944 = vsyncadd (%p5196_p7), [#allocation7], 4294967280 }
  0x7d   : > { %526 = sfence }
  0x7e   : > { %s6322_s11 = sld [smem:[#allocation12_spill]]  ;;  %v599_v24 = vld [vmem:[%s5262_s7] sm:$0xff]  ;;  %v5273_v26 = vld [vmem:[%s5262_s7 + $0x8] sm:$0xff]  ;;  %v4998_v30 = vmov 0   ;;  %s4999_s22 = smov 1   ;;  %v5304_v42 = vld [vmem:[%s5262_s7 + $0x18] sm:$0xff] }
  0x7f   : > { %v603_v25 = vld [vmem:[%s5262_s7 + $0x20] sm:$0xff]  ;;  %v5279_v28 = vld [vmem:[%s5262_s7 + $0x28] sm:$0xff]  ;;  %846 = vmatprep.mubr.bf16.mxu0 %v4998_v30  ;;  %899 = vmatprep.mubr.bf16.mxu1 %v4998_v30  ;;  %v5307_v43 = vld [vmem:[%s5262_s7 + $0x38] sm:$0xff]  ;;  %s6323_s15 = sld [smem:[#allocation21_spill]]  ;;  %vm807_vm1 = vcmask 261120   ;;  %s5000_s13 = smov 127  }
  0x80   : > { %v5276_v27 = vcombine.low %v599_v24, %v603_v25  ;;  %v577_v29 = vld [vmem:[%s511_s5 + $0x8] sm:$0xf]  ;;  %v5285_v31 = vcombine.low %v5273_v26, %v5279_v28  ;;  %v578_v32 = vld [vmem:[%s511_s5 + $0xc] sm:$0xf]  ;;  %v575_v33 = vld [vmem:[%s511_s5] sm:$0xf]  ;;  %4854 = vset.pattern.permute.xlu1 %v4998_v30  ;;  %4855 = vset.pattern.permute.xlu0 %v4998_v30  ;;  %v5291_v34 = vcombine.high %v599_v24, %v603_v25 }
  0x81   : > { %4850 = vrot.lane.b32.xlu1 %v4998_v30, %s4999_s22  ;;  %v576_v35 = vld [vmem:[%s511_s5 + $0x4] sm:$0xf]  ;;  %v608_v39 = vld [vmem:[%s5262_s7 + $0x48] sm:$0xff]  ;;  %v5326_v54 = vcombine.low %v5304_v42, %v5307_v43  ;;  %v5333_v56 = vld [vmem:[%s5262_s7 + $0x58] sm:$0xff]  ;;  %v5370_v0 = vcombine.high %v5273_v26, %v5279_v28  ;;  %v5443_v4 = vcombine.high %v5304_v42, %v5307_v43  ;;  %vm1090_vm2 = vcmask 7168   ;;  %s6328_s14 = sld [smem:[#allocation23_spill]] }
  0x82   : > { %1058 = vrot.lane.b32.xlu0 %v5276_v27, %s4999_s22  ;;  %v607_v36 = vld [vmem:[%s5262_s7 + $0x40] sm:$0xff]  ;;  %v612_v40 = vld [vmem:[%s5262_s7 + $0x68] sm:$0xff]  ;;  %814 = vmatprep.subr.bf16.mxu0 %v5276_v27  ;;  %v601_v51 = vld [vmem:[%s5262_s7 + $0x10] sm:$0xff]  ;;  %vm1423_vm4 = vcmask 1039360   ;;  %p6349_p6 = scmp.ne.s32.totalorder %s6313_s3, 0 }
  0x83   : > { %v611_v38 = vld [vmem:[%s5262_s7 + $0x60] sm:$0xff]  ;;  %867 = vmatprep.subr.bf16.mxu1 %v5285_v31  ;;  %v5301_v41 = vcombine.low %v608_v39, %v612_v40  ;;  %v605_v52 = vld [vmem:[%s5262_s7 + $0x30] sm:$0xff]  ;;  %v5338_v57 = vld [vmem:[%s5262_s7 + $0x78] sm:$0xff]  ;;  %v5386_v3 = vcombine.high %v608_v39, %v612_v40  ;;  %s6350_s21 = sld [smem:[#allocation13_spill]] (%p6349_p6) }
  0x84   : > { %p583_p12 = scmp.gt.s32.totalorder %s6322_s11, 0  ;;  %868 = vmatpush1.bf16.msra.mxu1 %v5291_v34  ;;  %v5318_v50 = vcombine.high %v607_v36, %v611_v38  ;;  %v5322_v53 = vcombine.low %v607_v36, %v611_v38  ;;  %v609_v58 = vld [vmem:[%s5262_s7 + $0x50] sm:$0xff]  ;;  %v5347_v59 = vcombine.high %v601_v51, %v605_v52  ;;  %v5349_v60 = vcombine.low %v601_v51, %v605_v52  ;;  %p591_p13 = scmp.lt.s32.totalorder %s6322_s11, 1  ;;  %v581_v38 = vld [vmem:[%s5264_s25 + $0x8] sm:$0xf] }
  0x85   : > { %1060 = vrot.lane.b32.xlu1 %v5291_v34, %s4999_s22  ;;  %869 = vmatprep.subr.bf16.mxu1 %v5301_v41  ;;  %s6324_s8 = smov %s6323_s15  ;;  %v4856_v55 = vld [vmem:[%s6323_s15 + $0x10] sm:$0xff]   ;;  %v5357_v62 = vcombine.low %v5333_v56, %v5338_v57  ;;  %v5455_v5 = vcombine.high %v5333_v56, %v5338_v57  ;;  %v582_v39 = vld [vmem:[%s5264_s25 + $0xc] sm:$0xf]  ;;  %s4406_s18 = sshll.u32 %s6322_s11, 3 }
  0x86   : > { %s584_s29 = scalar_select %p583_p12, 1, 0  ;;  %1062 = vrot.lane.b32.xlu0 %v5285_v31, %s4999_s22  ;;  %v613_v61 = vld [vmem:[%s5262_s7 + $0x70] sm:$0xff]  ;;  %v4857_v63 = vld [vmem:[%s6324_s8 + $0x18] sm:$0xff]  }
  0x87   : > { %v5372_v1 = vcombine.high %v609_v58, %v613_v61  ;;  %v5374_v2 = vcombine.low %v609_v58, %v613_v61  ;;  %s592_s26 = scalar_select %p591_p13, 1, 0  ;;  %v579_v18 = vld [vmem:[%s5264_s25] sm:$0xf]  ;;  %v580_v19 = vld [vmem:[%s5264_s25 + $0x4] sm:$0xf] }
  0x88   : > { %v585_v37 = vstv %s584_s29  ;;  %870 = vmatpush1.bf16.msra.mxu1 %v5318_v50  ;;  %s6327_s7 = sld [smem:[#allocation22_spill]]  ;;  %s6050_s11 = scalar_lea.vmem [#allocation8], %s5258_s9 }
  0x89   : > { %vm586_vm0 = vcmp.eq.s32.totalorder %v585_v37, 1  ;;  %973 = vmatprep.subr.bf16.mxu1 %v5326_v54  ;;  %v593_v13 = vstv %s592_s26  ;;  %s562_s9 = sand.u32 1, %s4947_s27   ;;  %s4427_s23 = sshll.u32 (%p6349_p6), %s6350_s21, 7 }
  0x8a   : > { %v589_v44 = vsel %vm586_vm0, %v577_v29, 0  ;;  %v590_v45 = vsel %vm586_vm0, %v578_v32, 0  ;;  %v587_v46 = vsel %vm586_vm0, %v575_v33, 0  ;;  %v588_v47 = vsel %vm586_vm0, %v576_v35, 0  ;;  %v5537_v29 = vld [vmem:[%s6324_s8] sm:$0xff]   ;;  %s4295_s20 = sshll.u32 %s562_s9, 5  ;;  %s4151_s3 = sadd.s32 (%p6349_p6), %s4427_s23, %s4406_s18 }
  0x8b   : > { %v5314_v48 = vcombine.low %v589_v44, %v590_v45  ;;  %v5316_v49 = vcombine.low %v587_v46, %v588_v47  ;;  %4320 = vmatmul.mubr.msk.bf16.vlgmr.msra.gmra.mrb[0].mxu1 %vm807_vm1, %v4856_v55  ;;  %vm5522_vm3 = vcmp.eq.s32.totalorder %v593_v13, 1  ;;  %v4859_v47 = vld [vmem:[%s6324_s8 + $0x8] sm:$0xff]   ;;  %s6192_s19 = scalar_lea.vmem [#allocation9], %s4295_s20  ;;  %s4428_s5 = sshll.u32 (%p6349_p6), %s4151_s3, 2 }
  0x8c   : > { %909 = vmatprep.mubr.bf16.mxu1 %v4998_v30  ;;  %974 = vmatpush1.bf16.msra.mxu1 %v5347_v59  ;;  %v595_v25 = vsel %vm5522_vm3, %v579_v18, 0  ;;  %v596_v26 = vsel %vm5522_vm3, %v580_v19, 0  ;;  %v597_v44 = vsel %vm5522_vm3, %v581_v38, 0  ;;  %v598_v45 = vsel %vm5522_vm3, %v582_v39, 0 }
  0x8d   : > { %815 = vmatpush1.bf16.msra.mxu0 %v5316_v49  ;;  %1074 = vrot.lane.b32.xlu1 %v5314_v48, %s4999_s22  ;;  %v5543_v35 = vcombine.low %v595_v25, %v596_v26  ;;  %v5572_v51 = vcombine.low %v597_v44, %v598_v45 }
  0x8e   : > { %816 = vmatprep.subr.bf16.mxu0 %v5322_v53  ;;  %1056 = vrot.lane.b32.xlu0 %v5316_v49, %s4999_s22 }
  0x8f   : > { %975 = vmatprep.subr.bf16.mxu1 %v5357_v62 }
  0x90   : > { %976 = vmatpush1.bf16.msra.mxu1 %v5372_v1 }
  0x91   : > { %817 = vmatpush1.bf16.msra.mxu0 %v5314_v48  ;;  %1078 = vrot.lane.b32.xlu1 %v5318_v50, %s4999_s22 }
  0x92   : > { %920 = vmatprep.subr.bf16.mxu0 %v5349_v60  ;;  %1076 = vrot.lane.b32.xlu0 %v5322_v53, %s4999_s22 }
  0x93   : > { %4321 = vmatmul.mubr.msk.bf16.gmra.mrb[4].mxu1 %vm807_vm1, %v4857_v63 }
  0x94   : > { %4318 = vmatmul.mubr.msk.bf16.vlgmr.msra.gmra.mrb[0].mxu0 %vm807_vm1, %v4856_v55  ;;  %1005 = vmatprep.mubr.bf16.mxu1 %v4998_v30 }
  0x95   : > { %856 = vmatprep.mubr.bf16.mxu0 %v4998_v30  ;;  %921 = vmatpush1.bf16.msra.mxu0 %v5370_v0 }
  0x96   : > { %922 = vmatprep.subr.bf16.mxu0 %v5374_v2  ;;  %1064 = vrot.lane.b32.xlu1 %v5370_v0, %s4999_s22 }
  0x97   : > { %1080 = vrot.lane.b32.xlu0 %v5301_v41, %s4999_s22 }
  0x99   : > { %923 = vmatpush1.bf16.msra.mxu0 %v5386_v3 }
  0x9a   : > { %1068 = vrot.lane.b32.xlu1 %v5347_v59, %s4999_s22 }
  0x9b   : > { %1066 = vrot.lane.b32.xlu0 %v5349_v60, %s4999_s22  ;;  %4324 = vmatmul.mubr.msk.bf16.vlgmr.msra.gmra.mrb[8].mxu1 %vm807_vm1, %v4856_v55 }
  0x9c   : > { %4319 = vmatmul.mubr.msk.bf16.gmra.mrb[4].mxu0 %vm807_vm1, %v4857_v63  ;;  %1015 = vmatprep.mubr.bf16.mxu1 %v4998_v30 }
  0x9d   : > { %952 = vmatprep.mubr.bf16.mxu0 %v4998_v30 }
  0x9e   : > { %1082 = vrot.lane.b32.xlu1 %v5386_v3, %s4999_s22 }
  0x9f   : > { %1070 = vrot.lane.b32.xlu0 %v5326_v54, %s4999_s22 }
  0xa2   : > { %1086 = vrot.lane.b32.xlu1 %v5372_v1, %s4999_s22 }
  0xa3   : > { %1084 = vrot.lane.b32.xlu0 %v5374_v2, %s4999_s22  ;;  %4325 = vmatmul.mubr.msk.bf16.gmra.mrb[12].mxu1 %vm807_vm1, %v4857_v63 }
  0xa4   : > { %4322 = vmatmul.mubr.msk.bf16.vlgmr.msra.gmra.mrb[8].mxu0 %vm807_vm1, %v4856_v55  ;;  %1214 = vmatprep.mubr.bf16.mxu1 %v4998_v30 }
  0xa5   : > { %962 = vmatprep.mubr.bf16.mxu0 %v4998_v30 }
  0xa6   : > { %1389 = vrot.lane.b32.xlu1 %v5276_v27, %s5000_s13 }
  0xa7   : > { %1088 = vrot.lane.b32.xlu0 %v5357_v62, %s4999_s22 }
  0xaa   : > { %1387 = vrot.lane.b32.xlu1 %v5316_v49, %s5000_s13 }
  0xab   : > { %1391 = vrot.lane.b32.xlu0 %v5291_v34, %s5000_s13 }
  0xac   : > { %4323 = vmatmul.mubr.msk.bf16.gmra.mrb[12].mxu0 %vm807_vm1, %v4857_v63 }
  0xad   : > { %1161 = vmatprep.mubr.bf16.mxu0 %v4998_v30 }
  0xae   : > { %1395 = vrot.lane.b32.xlu1 %v5370_v0, %s5000_s13 }
  0xaf   : > { %1393 = vrot.lane.b32.xlu0 %v5285_v31, %s5000_s13 }
  0xb2   : > { %1409 = vrot.lane.b32.xlu1 %v5318_v50, %s5000_s13 }
  0xb3   : > { %1407 = vrot.lane.b32.xlu0 %v5322_v53, %s5000_s13 }
  0xb6   : > { %1411 = vrot.lane.b32.xlu1 %v5301_v41, %s5000_s13 }
  0xb7   : > { %1405 = vrot.lane.b32.xlu0 %v5314_v48, %s5000_s13 }
  0xba   : > { %1397 = vrot.lane.b32.xlu1 %v5349_v60, %s5000_s13 }
  0xbb   : > { %1413 = vrot.lane.b32.xlu0 %v5386_v3, %s5000_s13 }
  0xbe   : > { %1401 = vrot.lane.b32.xlu1 %v5326_v54, %s5000_s13 }
  0xbf   : > { %1399 = vrot.lane.b32.xlu0 %v5347_v59, %s5000_s13 }
  0xc2   : > { %1415 = vrot.lane.b32.xlu1 %v5374_v2, %s5000_s13 }
  0xc3   : > { %1403 = vrot.lane.b32.xlu0 %v5443_v4, %s5000_s13 }
  0xc6   : > { %1419 = vrot.lane.b32.xlu1 %v5357_v62, %s5000_s13 }
  0xc7   : > { %1417 = vrot.lane.b32.xlu0 %v5372_v1, %s5000_s13 }
  0xca   : > { %1718 = vrot.lane.b32.xlu1 %v5276_v27, %s4999_s22 }
  0xcb   : > { %1421 = vrot.lane.b32.xlu0 %v5455_v5, %s5000_s13 }
  0xce   : > { %1716 = vrot.lane.b32.xlu1 %v5316_v49, %s4999_s22 }
  0xcf   : > { %1720 = vrot.lane.b32.xlu0 %v5291_v34, %s4999_s22 }
  0xd2   : > { %1724 = vrot.lane.b32.xlu1 %v5370_v0, %s4999_s22 }
  0xd3   : > { %1722 = vrot.lane.b32.xlu0 %v5285_v31, %s4999_s22 }
  0xd6   : > { %1738 = vrot.lane.b32.xlu1 %v5318_v50, %s4999_s22 }
  0xd7   : > { %1736 = vrot.lane.b32.xlu0 %v5322_v53, %s4999_s22 }
  0xda   : > { %1740 = vrot.lane.b32.xlu1 %v5301_v41, %s4999_s22 }
  0xdb   : > { %1734 = vrot.lane.b32.xlu0 %v5314_v48, %s4999_s22 }
  0xde   : > { %1726 = vrot.lane.b32.xlu1 %v5349_v60, %s4999_s22 }
  0xdf   : > { %1742 = vrot.lane.b32.xlu0 %v5386_v3, %s4999_s22 }
  0xe2   : > { %1730 = vrot.lane.b32.xlu1 %v5326_v54, %s4999_s22 }
  0xe3   : > { %1728 = vrot.lane.b32.xlu0 %v5347_v59, %s4999_s22 }
  0xe6   : > { %1744 = vrot.lane.b32.xlu1 %v5374_v2, %s4999_s22 }
  0xe7   : > { %1732 = vrot.lane.b32.xlu0 %v5443_v4, %s4999_s22 }
  0xea   : > { %1748 = vrot.lane.b32.xlu1 %v5357_v62, %s4999_s22 }
  0xeb   : > { %1746 = vrot.lane.b32.xlu0 %v5372_v1, %s4999_s22 }
  0xee   : > { %2342 = vrot.lane.b32.xlu1 %v5291_v34, %s5000_s13 }
  0xef   : > { %1750 = vrot.lane.b32.xlu0 %v5455_v5, %s4999_s22 }
  0xf2   : > { %2340 = vrot.lane.b32.xlu1 %v5276_v27, %s5000_s13 }
  0xf3   : > { %2344 = vrot.lane.b32.xlu0 %v5285_v31, %s5000_s13  ;;  %v4851_v6 = vpop.permute.xlu1 %4850 }
  0xf4   : > { %v1059_v7 = vpop.permute.xlu0 %1058  ;;  %v4852_v12 = vunpack.i.l.bf16 %v4851_v6  ;;  %v4853_v21 = vunpack.i.h.bf16 %v4851_v6 }
  0xf6   : > { %2348 = vrot.lane.b32.xlu1 %v5349_v60, %s5000_s13 }
  0xf7   : > { %2346 = vrot.lane.b32.xlu0 %v5370_v0, %s5000_s13  ;;  %v1061_v8 = vpop.permute.xlu1 %1060 }
  0xf8   : > { %v1063_v9 = vpop.permute.xlu0 %1062  ;;  %v1093_v11 = vsel %vm1090_vm2, %v1059_v7, %v1061_v8 }
  0xf9   : > { %v1094_v10 = vsel %vm1090_vm2, %v1061_v8, %v1063_v9 }
  0xfa   : > { %2362 = vrot.lane.b32.xlu1 %v5301_v41, %s5000_s13  ;;  %1182 = vmatprep.subr.bf16.mxu1 %v1094_v10 }
  0xfb   : > { %2360 = vrot.lane.b32.xlu0 %v5318_v50, %s5000_s13  ;;  %1183 = vmatpush1.bf16.msra.mxu1 %v1093_v11 }
  0xfe   : > { %2364 = vrot.lane.b32.xlu1 %v5386_v3, %s5000_s13 }
  0xff   : > { %2358 = vrot.lane.b32.xlu0 %v5322_v53, %s5000_s13  ;;  %v1075_v14 = vpop.permute.xlu1 %1074 }
 0x100   : > { %v1057_v15 = vpop.permute.xlu0 %1056  ;;  %v1099_v28 = vsel %vm1090_vm2, %v4853_v21, %v1075_v14 }
 0x101   : > { %v1092_v16 = vsel %vm1090_vm2, %v1057_v15, %v1059_v7  ;;  %v1091_v17 = vsel %vm1090_vm2, %v4852_v12, %v1057_v15 }
 0x102   : > { %1129 = vmatprep.subr.bf16.mxu0 %v1092_v16  ;;  %2350 = vrot.lane.b32.xlu1 %v5347_v59, %s5000_s13 }
 0x103   : > { %2366 = vrot.lane.b32.xlu0 %v5374_v2, %s5000_s13  ;;  %1130 = vmatpush1.bf16.msra.mxu0 %v1091_v17  ;;  %v1079_v22 = vpop.permute.xlu1 %1078 }
 0x104   : > { %v1077_v23 = vpop.permute.xlu0 %1076 }
 0x105   : > { %v1100_v24 = vsel %vm1090_vm2, %v1075_v14, %v1077_v23  ;;  %v1101_v37 = vsel %vm1090_vm2, %v1077_v23, %v1079_v22  ;;  %v4860_v23 = vld [vmem:[%s6324_s8 + $0x20] sm:$0xff]  }
 0x106   : > { %1131 = vmatprep.subr.bf16.mxu0 %v1100_v24  ;;  %2354 = vrot.lane.b32.xlu1 %v5443_v4, %s5000_s13 }
 0x107   : > { %2352 = vrot.lane.b32.xlu0 %v5326_v54, %s5000_s13  ;;  %1132 = vmatpush1.bf16.msra.mxu0 %v1099_v28 }
 0x108   : > { %v1065_v32 = vpop.permute.xlu1 %1064 }
 0x109   : > { %v1081_v33 = vpop.permute.xlu0 %1080  ;;  %v1095_v46 = vsel %vm1090_vm2, %v1063_v9, %v1065_v32 }
 0x10a   : > { %v1102_v36 = vsel %vm1090_vm2, %v1079_v22, %v1081_v33  ;;  %4328 = vmatmul.mubr.msk.bf16.vlgmr.msra.gmra.mrb[0].mxu0 %vm807_vm1, %v5537_v29  ;;  %2368 = vrot.lane.b32.xlu1 %v5372_v1, %s5000_s13 }
 0x10b   : > { %1184 = vmatprep.subr.bf16.mxu1 %v1102_v36  ;;  %1171 = vmatprep.mubr.bf16.mxu0 %v4998_v30  ;;  %v4861_v36 = vld [vmem:[%s6324_s8 + $0x28] sm:$0xff]  }
 0x10c   : > { %1185 = vmatpush1.bf16.msra.mxu1 %v1101_v37  ;;  %v1069_v40 = vpop.permute.xlu1 %1068  ;;  %2356 = vrot.lane.b32.xlu0 %v5543_v35, %s5000_s13 }
 0x10d   : > { %v1067_v42 = vpop.permute.xlu0 %1066 }
 0x10e   : > { %v1096_v43 = vsel %vm1090_vm2, %v1065_v32, %v1067_v42  ;;  %2372 = vrot.lane.b32.xlu1 %v5455_v5, %s5000_s13  ;;  %v1097_v55 = vsel %vm1090_vm2, %v1067_v42, %v1069_v40 }
 0x10f   : > { %1235 = vmatprep.subr.bf16.mxu0 %v1096_v43  ;;  %4330 = vmatmul.mubr.msk.bf16.vlgmr.msra.gmra.mrb[0].mxu1 %vm807_vm1, %v5537_v29 }
 0x110   : > { %1236 = vmatpush1.bf16.msra.mxu0 %v1095_v46  ;;  %1224 = vmatprep.mubr.bf16.mxu1 %v4998_v30  ;;  %v1083_v48 = vpop.permute.xlu1 %1082 }
 0x111   : > { %v1071_v49 = vpop.permute.xlu0 %1070  ;;  %2370 = vrot.lane.b32.xlu0 %v5357_v62, %s5000_s13  ;;  %v1103_v61 = vsel %vm1090_vm2, %v1081_v33, %v1083_v48 }
 0x112   : > { %v1098_v52 = vsel %vm1090_vm2, %v1069_v40, %v1071_v49  ;;  %4329 = vmatmul.mubr.msk.bf16.gmra.mrb[4].mxu0 %vm807_vm1, %v4859_v47  ;;  %2670 = vrot.lane.b32.xlu1 %v5291_v34, %s4999_s22 }
 0x113   : > { %1288 = vmatprep.subr.bf16.mxu1 %v1098_v52  ;;  %1267 = vmatprep.mubr.bf16.mxu0 %v4998_v30 }
 0x114   : > { %1289 = vmatpush1.bf16.msra.mxu1 %v1097_v55  ;;  %v1087_v56 = vpop.permute.xlu1 %1086 }
 0x115   : > { %v1085_v57 = vpop.permute.xlu0 %1084  ;;  %2374 = vrot.lane.b32.xlu0 %v5572_v51, %s5000_s13 }
 0x116   : > { %v1104_v58 = vsel %vm1090_vm2, %v1083_v48, %v1085_v57  ;;  %2668 = vrot.lane.b32.xlu1 %v5276_v27, %s4999_s22  ;;  %v1105_v8 = vsel %vm1090_vm2, %v1085_v57, %v1087_v56 }
 0x117   : > { %1237 = vmatprep.subr.bf16.mxu0 %v1104_v58  ;;  %4331 = vmatmul.mubr.msk.bf16.gmra.mrb[4].mxu1 %vm807_vm1, %v4859_v47 }
 0x118   : > { %1238 = vmatpush1.bf16.msra.mxu0 %v1103_v61  ;;  %1320 = vmatprep.mubr.bf16.mxu1 %v4998_v30  ;;  %v1390_v63 = vpop.permute.xlu1 %1389 }
 0x119   : > { %v1089_v6 = vpop.permute.xlu0 %1088  ;;  %2672 = vrot.lane.b32.xlu0 %v5285_v31, %s4999_s22 }
 0x11a   : > { %v1106_v7 = vsel %vm1090_vm2, %v1087_v56, %v1089_v6  ;;  %2676 = vrot.lane.b32.xlu1 %v5349_v60, %s4999_s22 }
 0x11b   : > { %1290 = vmatprep.subr.bf16.mxu1 %v1106_v7  ;;  %4332 = vmatmul.mubr.msk.bf16.vlgmr.msra.gmra.mrb[8].mxu0 %vm807_vm1, %v5537_v29 }
 0x11c   : > { %1291 = vmatpush1.bf16.msra.mxu1 %v1105_v8  ;;  %1277 = vmatprep.mubr.bf16.mxu0 %v4998_v30  ;;  %v1388_v9 = vpop.permute.xlu1 %1387 }
 0x11d   : > { %v1392_v10 = vpop.permute.xlu0 %1391  ;;  %2674 = vrot.lane.b32.xlu0 %v5370_v0, %s4999_s22  ;;  %v1424_v11 = vsel %vm1423_vm4, %v1388_v9, %v1390_v63 }
 0x11e   : > { %v1425_v12 = vsel %vm1423_vm4, %v1390_v63, %v1392_v10  ;;  %2690 = vrot.lane.b32.xlu1 %v5301_v41, %s4999_s22 }
 0x11f   : > { %1462 = vmatprep.subr.bf16.mxu0 %v1425_v12  ;;  %4334 = vmatmul.mubr.msk.bf16.vlgmr.msra.gmra.mrb[8].mxu1 %vm807_vm1, %v5537_v29 }
 0x120   : > { %1463 = vmatpush1.bf16.msra.mxu0 %v1424_v11  ;;  %1330 = vmatprep.mubr.bf16.mxu1 %v4998_v30  ;;  %v1396_v13 = vpop.permute.xlu1 %1395 }
 0x121   : > { %v1394_v14 = vpop.permute.xlu0 %1393  ;;  %2688 = vrot.lane.b32.xlu0 %v5318_v50, %s4999_s22 }
 0x122   : > { %v1426_v15 = vsel %vm1423_vm4, %v1392_v10, %v1394_v14  ;;  %v1427_v16 = vsel %vm1423_vm4, %v1394_v14, %v1396_v13  ;;  %2692 = vrot.lane.b32.xlu1 %v5386_v3, %s4999_s22  ;;  %v4862_v14 = vld [vmem:[%s6324_s8 + $0x30] sm:$0xff]  }
 0x123   : > { %1515 = vmatprep.subr.bf16.mxu1 %v1427_v16  ;;  %4333 = vmatmul.mubr.msk.bf16.gmra.mrb[12].mxu0 %vm807_vm1, %v4859_v47 }
 0x124   : > { %1516 = vmatpush1.bf16.msra.mxu1 %v1426_v15  ;;  %1494 = vmatprep.mubr.bf16.mxu0 %v4998_v30  ;;  %v1410_v17 = vpop.permute.xlu1 %1409 }
 0x125   : > { %v1408_v18 = vpop.permute.xlu0 %1407  ;;  %2686 = vrot.lane.b32.xlu0 %v5322_v53, %s4999_s22 }
 0x126   : > { %v1433_v19 = vsel %vm1423_vm4, %v1408_v18, %v1410_v17  ;;  %2678 = vrot.lane.b32.xlu1 %v5347_v59, %s4999_s22 }
 0x127   : > { %1464 = vmatprep.subr.bf16.mxu0 %v1433_v19  ;;  %4335 = vmatmul.mubr.msk.bf16.gmra.mrb[12].mxu1 %vm807_vm1, %v4859_v47 }
 0x128   : > { %1547 = vmatprep.mubr.bf16.mxu1 %v4998_v30  ;;  %v1412_v20 = vpop.permute.xlu1 %1411 }
 0x129   : > { %v1406_v21 = vpop.permute.xlu0 %1405  ;;  %2694 = vrot.lane.b32.xlu0 %v5374_v2, %s4999_s22  ;;  %v1434_v28 = vsel %vm1423_vm4, %v1410_v17, %v1412_v20 }
 0x12a   : > { %v1432_v22 = vsel %vm1423_vm4, %v1406_v21, %v1408_v18  ;;  %2682 = vrot.lane.b32.xlu1 %v5443_v4, %s4999_s22 }
 0x12b   : > { %1465 = vmatpush1.bf16.msra.mxu0 %v1432_v22  ;;  %v4863_v22 = vld [vmem:[%s6324_s8 + $0x38] sm:$0xff]  }
 0x12c   : > { %v1398_v24 = vpop.permute.xlu1 %1397 }
 0x12d   : > { %v1414_v25 = vpop.permute.xlu0 %1413  ;;  %2680 = vrot.lane.b32.xlu0 %v5326_v54, %s4999_s22  ;;  %v1428_v37 = vsel %vm1423_vm4, %v1396_v13, %v1398_v24 }
 0x12e   : > { %v1435_v26 = vsel %vm1423_vm4, %v1412_v20, %v1414_v25  ;;  %4338 = vmatmul.mubr.msk.bf16.vlgmr.msra.gmra.mrb[0].mxu0 %vm807_vm1, %v4860_v23  ;;  %2696 = vrot.lane.b32.xlu1 %v5372_v1, %s4999_s22 }
 0x12f   : > { %1517 = vmatprep.subr.bf16.mxu1 %v1435_v26  ;;  %1504 = vmatprep.mubr.bf16.mxu0 %v4998_v30 }
 0x130   : > { %1518 = vmatpush1.bf16.msra.mxu1 %v1434_v28  ;;  %v1402_v29 = vpop.permute.xlu1 %1401 }
 0x131   : > { %v1400_v32 = vpop.permute.xlu0 %1399  ;;  %2684 = vrot.lane.b32.xlu0 %v5543_v35, %s4999_s22 }
 0x132   : > { %v1429_v33 = vsel %vm1423_vm4, %v1398_v24, %v1400_v32  ;;  %2700 = vrot.lane.b32.xlu1 %v5455_v5, %s4999_s22  ;;  %v1430_v42 = vsel %vm1423_vm4, %v1400_v32, %v1402_v29 }
 0x133   : > { %1568 = vmatprep.subr.bf16.mxu0 %v1429_v33  ;;  %4340 = vmatmul.mubr.msk.bf16.vlgmr.msra.gmra.mrb[0].mxu1 %vm807_vm1, %v4860_v23 }
 0x134   : > { %1569 = vmatpush1.bf16.msra.mxu0 %v1428_v37  ;;  %1557 = vmatprep.mubr.bf16.mxu1 %v4998_v30  ;;  %v1416_v38 = vpop.permute.xlu1 %1415 }
 0x135   : > { %v1404_v39 = vpop.permute.xlu0 %1403  ;;  %2698 = vrot.lane.b32.xlu0 %v5357_v62, %s4999_s22  ;;  %v1436_v46 = vsel %vm1423_vm4, %v1414_v25, %v1416_v38 }
 0x136   : > { %v1431_v40 = vsel %vm1423_vm4, %v1402_v29, %v1404_v39  ;;  %4339 = vmatmul.mubr.msk.bf16.gmra.mrb[4].mxu0 %vm807_vm1, %v4861_v36  ;;  %3294 = vrot.lane.b32.xlu1 %v5285_v31, %s5000_s13 }
 0x137   : > { %1621 = vmatprep.subr.bf16.mxu1 %v1431_v40  ;;  %1600 = vmatprep.mubr.bf16.mxu0 %v4998_v30 }
 0x138   : > { %1622 = vmatpush1.bf16.msra.mxu1 %v1430_v42  ;;  %v1420_v43 = vpop.permute.xlu1 %1419 }
 0x139   : > { %v1418_v44 = vpop.permute.xlu0 %1417  ;;  %2702 = vrot.lane.b32.xlu0 %v5572_v51, %s4999_s22  ;;  %s6352_s22 = sld [smem:[#allocation25_spill]] (%p6349_p6) }
 0x13a   : > { %v1437_v45 = vsel %vm1423_vm4, %v1416_v38, %v1418_v44  ;;  %3292 = vrot.lane.b32.xlu1 %v5291_v34, %s5000_s13  ;;  %v1438_v52 = vsel %vm1423_vm4, %v1418_v44, %v1420_v43 }
 0x13b   : > { %1570 = vmatprep.subr.bf16.mxu0 %v1437_v45  ;;  %4341 = vmatmul.mubr.msk.bf16.gmra.mrb[4].mxu1 %vm807_vm1, %v4861_v36 }
 0x13c   : > { %1571 = vmatpush1.bf16.msra.mxu0 %v1436_v46  ;;  %1653 = vmatprep.mubr.bf16.mxu1 %v4998_v30  ;;  %v1719_v47 = vpop.permute.xlu1 %1718 }
 0x13d   : > { %v1422_v48 = vpop.permute.xlu0 %1421  ;;  %3296 = vrot.lane.b32.xlu0 %v5370_v0, %s5000_s13 }
 0x13e   : > { %v1439_v49 = vsel %vm1423_vm4, %v1420_v43, %v1422_v48  ;;  %3300 = vrot.lane.b32.xlu1 %v5347_v59, %s5000_s13 }
 0x13f   : > { %1623 = vmatprep.subr.bf16.mxu1 %v1439_v49  ;;  %4342 = vmatmul.mubr.msk.bf16.vlgmr.msra.gmra.mrb[8].mxu0 %vm807_vm1, %v4860_v23  ;;  %s4153_s4 = scalar_lea.vmem (%p6349_p6), %s6352_s22, %s4428_s5 }
 0x140   : > { %1624 = vmatpush1.bf16.msra.mxu1 %v1438_v52  ;;  %1610 = vmatprep.mubr.bf16.mxu0 %v4998_v30  ;;  %v1717_v55 = vpop.permute.xlu1 %1716 }
 0x141   : > { %v1721_v56 = vpop.permute.xlu0 %1720  ;;  %3298 = vrot.lane.b32.xlu0 %v5349_v60, %s5000_s13  ;;  %v1752_v57 = vsel %vm1090_vm2, %v1717_v55, %v1719_v47  ;;  %v4865_v55 = vld [vmem:[%s6324_s8 + $0x48] sm:$0xff]  }
 0x142   : > { %v1753_v58 = vsel %vm1090_vm2, %v1719_v47, %v1721_v56  ;;  %3314 = vrot.lane.b32.xlu1 %v5386_v3, %s5000_s13 }
 0x143   : > { %1790 = vmatprep.subr.bf16.mxu0 %v1753_v58  ;;  %4344 = vmatmul.mubr.msk.bf16.vlgmr.msra.gmra.mrb[8].mxu1 %vm807_vm1, %v4860_v23 }
 0x144   : > { %1791 = vmatpush1.bf16.msra.mxu0 %v1752_v57  ;;  %1663 = vmatprep.mubr.bf16.mxu1 %v4998_v30  ;;  %v1725_v61 = vpop.permute.xlu1 %1724 }
 0x145   : > { %v1723_v63 = vpop.permute.xlu0 %1722  ;;  %3312 = vrot.lane.b32.xlu0 %v5301_v41, %s5000_s13 }
 0x146   : > { %v1754_v6 = vsel %vm1090_vm2, %v1721_v56, %v1723_v63  ;;  %v1755_v7 = vsel %vm1090_vm2, %v1723_v63, %v1725_v61  ;;  %3316 = vrot.lane.b32.xlu1 %v5374_v2, %s5000_s13 }
 0x147   : > { %1843 = vmatprep.subr.bf16.mxu1 %v1755_v7  ;;  %4343 = vmatmul.mubr.msk.bf16.gmra.mrb[12].mxu0 %vm807_vm1, %v4861_v36 }
 0x148   : > { %1844 = vmatpush1.bf16.msra.mxu1 %v1754_v6  ;;  %1822 = vmatprep.mubr.bf16.mxu0 %v4998_v30  ;;  %v1739_v8 = vpop.permute.xlu1 %1738 }
 0x149   : > { %v1737_v9 = vpop.permute.xlu0 %1736  ;;  %3310 = vrot.lane.b32.xlu0 %v5318_v50, %s5000_s13 }
 0x14a   : > { %v1761_v10 = vsel %vm1090_vm2, %v1737_v9, %v1739_v8  ;;  %3302 = vrot.lane.b32.xlu1 %v5326_v54, %s5000_s13 }
 0x14b   : > { %1792 = vmatprep.subr.bf16.mxu0 %v1761_v10  ;;  %4345 = vmatmul.mubr.msk.bf16.gmra.mrb[12].mxu1 %vm807_vm1, %v4861_v36 }
 0x14c   : > { %1875 = vmatprep.mubr.bf16.mxu1 %v4998_v30  ;;  %v1741_v11 = vpop.permute.xlu1 %1740 }
 0x14d   : > { %v1735_v12 = vpop.permute.xlu0 %1734  ;;  %3318 = vrot.lane.b32.xlu0 %v5372_v1, %s5000_s13  ;;  %v1762_v18 = vsel %vm1090_vm2, %v1739_v8, %v1741_v11 }
 0x14e   : > { %v1760_v13 = vsel %vm1090_vm2, %v1735_v12, %v1737_v9  ;;  %3306 = vrot.lane.b32.xlu1 %v5543_v35, %s5000_s13 }
 0x14f   : > { %1793 = vmatpush1.bf16.msra.mxu0 %v1760_v13 }
 0x150   : > { %v1727_v15 = vpop.permute.xlu1 %1726 }
 0x151   : > { %v1743_v16 = vpop.permute.xlu0 %1742  ;;  %3304 = vrot.lane.b32.xlu0 %v5443_v4, %s5000_s13  ;;  %v1756_v23 = vsel %vm1090_vm2, %v1725_v61, %v1727_v15 }
 0x152   : > { %4348 = vmatmul.mubr.msk.bf16.vlgmr.msra.gmra.mrb[0].mxu0 %vm807_vm1, %v4862_v14  ;;  %v1763_v17 = vsel %vm1090_vm2, %v1741_v11, %v1743_v16  ;;  %3320 = vrot.lane.b32.xlu1 %v5357_v62, %s5000_s13 }
 0x153   : > { %1845 = vmatprep.subr.bf16.mxu1 %v1763_v17  ;;  %1832 = vmatprep.mubr.bf16.mxu0 %v4998_v30 }
 0x154   : > { %1846 = vmatpush1.bf16.msra.mxu1 %v1762_v18  ;;  %v1731_v19 = vpop.permute.xlu1 %1730 }
 0x155   : > { %v1729_v20 = vpop.permute.xlu0 %1728  ;;  %3308 = vrot.lane.b32.xlu0 %v4998_v30, %s5000_s13 }
 0x156   : > { %v1757_v21 = vsel %vm1090_vm2, %v1727_v15, %v1729_v20  ;;  %3324 = vrot.lane.b32.xlu1 %v5572_v51, %s5000_s13  ;;  %v1758_v28 = vsel %vm1090_vm2, %v1729_v20, %v1731_v19 }
 0x157   : > { %4350 = vmatmul.mubr.msk.bf16.vlgmr.msra.gmra.mrb[0].mxu1 %vm807_vm1, %v4862_v14  ;;  %1896 = vmatprep.subr.bf16.mxu0 %v1757_v21  ;;  %v4866_v21 = vld [vmem:[%s6324_s8 + $0x50] sm:$0xff]  }
 0x158   : > { %1897 = vmatpush1.bf16.msra.mxu0 %v1756_v23  ;;  %1885 = vmatprep.mubr.bf16.mxu1 %v4998_v30  ;;  %v1745_v24 = vpop.permute.xlu1 %1744  ;;  %v3610_v23 = vld [vmem:[%s6327_s7] sm:$0xff] }
 0x159   : > { %v1733_v25 = vpop.permute.xlu0 %1732  ;;  %3322 = vrot.lane.b32.xlu0 %v5455_v5, %s5000_s13  ;;  %v1764_v36 = vsel %vm1090_vm2, %v1743_v16, %v1745_v24 }
 0x15a   : > { %4349 = vmatmul.mubr.msk.bf16.gmra.mrb[4].mxu0 %vm807_vm1, %v4863_v22  ;;  %v1759_v26 = vsel %vm1090_vm2, %v1731_v19, %v1733_v25  ;;  %3616 = vperm.xlu1 %4854, %v3610_v23  }
 0x15b   : > { %1949 = vmatprep.subr.bf16.mxu1 %v1759_v26  ;;  %1928 = vmatprep.mubr.bf16.mxu0 %v4998_v30 }
 0x15c   : > { %1950 = vmatpush1.bf16.msra.mxu1 %v1758_v28  ;;  %v1749_v29 = vpop.permute.xlu1 %1748  ;;  %v3612_v28 = vld [vmem:[%s6327_s7 + $0x10] sm:$0xff] }
 0x15d   : > { %v1747_v32 = vpop.permute.xlu0 %1746  ;;  %3326 = vrot.lane.b32.xlu0 %v4998_v30, %s5000_s13  ;;  %s3676_s13 = ssub.s32 16, %s4406_s18 }
 0x15e   : > { %v1765_v33 = vsel %vm1090_vm2, %v1745_v24, %v1747_v32  ;;  %v1766_v40 = vsel %vm1090_vm2, %v1747_v32, %v1749_v29  ;;  %v3611_v24 = vld [vmem:[%s6327_s7 + $0x8] sm:$0xff]  ;;  %3626 = vperm.xlu1 %4854, %v3612_v28   ;;  %s4407_s26 = sshll.u32 %s3676_s13, 7 }
 0x15f   : > { %4351 = vmatmul.mubr.msk.bf16.gmra.mrb[4].mxu1 %vm807_vm1, %v4863_v22  ;;  %1898 = vmatprep.subr.bf16.mxu0 %v1765_v33 }
 0x160   : > { %1899 = vmatpush1.bf16.msra.mxu0 %v1764_v36  ;;  %1981 = vmatprep.mubr.bf16.mxu1 %v4998_v30  ;;  %v2343_v38 = vpop.permute.xlu1 %2342 }
 0x161   : > { %v1751_v37 = vpop.permute.xlu0 %1750  ;;  %2050 = vmatprep.subr.bf16.mxu0 %v5291_v34  ;;  %3621 = vperm.xlu0 %4855, %v3611_v24  }
 0x162   : > { %v1767_v39 = vsel %vm1090_vm2, %v1749_v29, %v1751_v37 }
 0x163   : > { %4352 = vmatmul.mubr.msk.bf16.vlgmr.msra.gmra.mrb[8].mxu0 %vm807_vm1, %v4862_v14  ;;  %1951 = vmatprep.subr.bf16.mxu1 %v1767_v39 }
 0x164   : > { %1952 = vmatpush1.bf16.msra.mxu1 %v1766_v40  ;;  %2051 = vmatpush1.bf16.msra.mxu0 %v5276_v27  ;;  %v2341_v43 = vpop.permute.xlu1 %2340 }
 0x165   : > { %1938 = vmatprep.mubr.bf16.mxu0 %v4998_v30  ;;  %2103 = vmatprep.subr.bf16.mxu1 %v5370_v0  ;;  %v2345_v42 = vpop.permute.xlu0 %2344  ;;  %v2376_v8 = vsel %vm1423_vm4, %v2341_v43, %v2343_v38  ;;  %v3613_v43 = vld [vmem:[%s6327_s7 + $0x18] sm:$0xff] }
 0x166   : > { %2052 = vmatprep.subr.bf16.mxu0 %v5318_v50  ;;  %v2377_v56 = vsel %vm1423_vm4, %v2343_v38, %v2345_v42  ;;  %v4867_v38 = vld [vmem:[%s6324_s8 + $0x58] sm:$0xff]   ;;  %3631 = vperm.xlu1 %4854, %v3613_v43  }
 0x167   : > { %4354 = vmatmul.mubr.msk.bf16.vlgmr.msra.gmra.mrb[8].mxu1 %vm807_vm1, %v4862_v14 }
 0x168   : > { %2104 = vmatpush1.bf16.msra.mxu1 %v5285_v31  ;;  %1991 = vmatprep.mubr.bf16.mxu1 %v4998_v30  ;;  %v5747_v27 = vpop.permute.xlu1 %2348 }
 0x169   : > { %2053 = vmatpush1.bf16.msra.mxu0 %v5322_v53  ;;  %2105 = vmatprep.subr.bf16.mxu1 %v5386_v3  ;;  %v2347_v44 = vpop.permute.xlu0 %2346  ;;  %v4864_v53 = vld [vmem:[%s6324_s8 + $0x40] sm:$0xff]  }
 0x16a   : > { %2156 = vmatprep.subr.bf16.mxu0 %v5347_v59  ;;  %v2379_v58 = vsel %vm1423_vm4, %v2347_v44, %v5747_v27  ;;  %v2378_v13 = vsel %vm1423_vm4, %v2345_v42, %v2347_v44 }
 0x16b   : > { %4353 = vmatmul.mubr.msk.bf16.gmra.mrb[12].mxu0 %vm807_vm1, %v4863_v22 }
 0x16c   : > { %2082 = vmatprep.mubr.bf16.mxu0 %v4998_v30  ;;  %2106 = vmatpush1.bf16.msra.mxu1 %v5301_v41  ;;  %v2363_v46 = vpop.permute.xlu1 %2362 }
 0x16d   : > { %2209 = vmatprep.subr.bf16.mxu1 %v5443_v4  ;;  %v2361_v45 = vpop.permute.xlu0 %2360 }
 0x16e   : > { %v2385_v7 = vsel %vm1423_vm4, %v2361_v45, %v2363_v46 }
 0x16f   : > { %4355 = vmatmul.mubr.msk.bf16.gmra.mrb[12].mxu1 %vm807_vm1, %v4863_v22 }
 0x170   : > { %2135 = vmatprep.mubr.bf16.mxu1 %v4998_v30  ;;  %v2365_v48 = vpop.permute.xlu1 %2364 }
 0x171   : > { %v2359_v47 = vpop.permute.xlu0 %2358  ;;  %v2386_v17 = vsel %vm1423_vm4, %v2363_v46, %v2365_v48 }
 0x172   : > { %v2384_v11 = vsel %vm1423_vm4, %v2359_v47, %v2361_v45 }
 0x173   : > { %4358 = vmatmul.mubr.msk.bf16.vlgmr.msra.gmra.mrb[0].mxu0 %vm807_vm1, %v4864_v53 }
 0x174   : > { %2157 = vmatpush1.bf16.msra.mxu0 %v5349_v60  ;;  %2092 = vmatprep.mubr.bf16.mxu0 %v4998_v30  ;;  %v2351_v52 = vpop.permute.xlu1 %2350 }
 0x175   : > { %2158 = vmatprep.subr.bf16.mxu0 %v5372_v1  ;;  %v5763_v49 = vpop.permute.xlu0 %2366  ;;  %v2380_v29 = vsel %vm1423_vm4, %v5747_v27, %v2351_v52 }
 0x176   : > { %v2387_v12 = vsel %vm1423_vm4, %v2365_v48, %v5763_v49 }
 0x177   : > { %4360 = vmatmul.mubr.msk.bf16.vlgmr.msra.gmra.mrb[0].mxu1 %vm807_vm1, %v4864_v53 }
 0x178   : > { %2210 = vmatpush1.bf16.msra.mxu1 %v5326_v54  ;;  %2145 = vmatprep.mubr.bf16.mxu1 %v4998_v30  ;;  %v2355_v61 = vpop.permute.xlu1 %2354 }
 0x179   : > { %2159 = vmatpush1.bf16.msra.mxu0 %v5374_v2  ;;  %2211 = vmatprep.subr.bf16.mxu1 %v5455_v5  ;;  %v2353_v57 = vpop.permute.xlu0 %2352 }
 0x17a   : > { %2414 = vmatprep.subr.bf16.mxu0 %v2377_v56  ;;  %v2381_v14 = vsel %vm1423_vm4, %v2351_v52, %v2353_v57  ;;  %v2382_v36 = vsel %vm1423_vm4, %v2353_v57, %v2355_v61 }
 0x17b   : > { %4359 = vmatmul.mubr.msk.bf16.gmra.mrb[4].mxu0 %vm807_vm1, %v4865_v55 }
 0x17c   : > { %2188 = vmatprep.mubr.bf16.mxu0 %v4998_v30  ;;  %2212 = vmatpush1.bf16.msra.mxu1 %v5357_v62  ;;  %v2369_v6 = vpop.permute.xlu1 %2368 }
 0x17d   : > { %2467 = vmatprep.subr.bf16.mxu1 %v2379_v58  ;;  %v2388_v37 = vsel %vm1423_vm4, %v5763_v49, %v2369_v6 }
 0x17e   : > { %v2357_v63 = vpop.permute.xlu0 %2356 }
 0x17f   : > { %4361 = vmatmul.mubr.msk.bf16.gmra.mrb[4].mxu1 %vm807_vm1, %v4865_v55  ;;  %v2383_v18 = vsel %vm1423_vm4, %v2355_v61, %v2357_v63 }
 0x180   : > { %2241 = vmatprep.mubr.bf16.mxu1 %v4998_v30  ;;  %v2373_v10 = vpop.permute.xlu1 %2372 }
 0x183   : > { %4362 = vmatmul.mubr.msk.bf16.vlgmr.msra.gmra.mrb[8].mxu0 %vm807_vm1, %v4864_v53  ;;  %v2371_v9 = vpop.permute.xlu0 %2370 }
 0x184   : > { %2415 = vmatpush1.bf16.msra.mxu0 %v2376_v8  ;;  %2198 = vmatprep.mubr.bf16.mxu0 %v4998_v30  ;;  %v2671_v16 = vpop.permute.xlu1 %2670  ;;  %v2389_v26 = vsel %vm1423_vm4, %v2369_v6, %v2371_v9  ;;  %v2390_v44 = vsel %vm1423_vm4, %v2371_v9, %v2373_v10  ;;  %v4868_v8 = vld [vmem:[%s6324_s8 + $0x60] sm:$0xff]  }
 0x185   : > { %2416 = vmatprep.subr.bf16.mxu0 %v2385_v7 }
 0x187   : > { %4364 = vmatmul.mubr.msk.bf16.vlgmr.msra.gmra.mrb[8].mxu1 %vm807_vm1, %v4864_v53  ;;  %v2375_v15 = vpop.permute.xlu0 %2374 }
 0x188   : > { %2417 = vmatpush1.bf16.msra.mxu0 %v2384_v11  ;;  %2468 = vmatpush1.bf16.msra.mxu1 %v2378_v13  ;;  %v2669_v20 = vpop.permute.xlu1 %2668  ;;  %v2391_v33 = vsel %vm1423_vm4, %v2373_v10, %v2375_v15 }
 0x189   : > { %2469 = vmatprep.subr.bf16.mxu1 %v2387_v12  ;;  %2251 = vmatprep.mubr.bf16.mxu1 %v4998_v30  ;;  %v2704_v53 = vsel %vm1090_vm2, %v2669_v20, %v2671_v16 }
 0x18a   : > { %2520 = vmatprep.subr.bf16.mxu0 %v2381_v14 }
 0x18b   : > { %4363 = vmatmul.mubr.msk.bf16.gmra.mrb[12].mxu0 %vm807_vm1, %v4865_v55  ;;  %v2673_v19 = vpop.permute.xlu0 %2672 }
 0x18c   : > { %2470 = vmatpush1.bf16.msra.mxu1 %v2386_v17  ;;  %2446 = vmatprep.mubr.bf16.mxu0 %v4998_v30  ;;  %v5807_v25 = vpop.permute.xlu1 %2676  ;;  %v2705_v40 = vsel %vm1090_vm2, %v2671_v16, %v2673_v19  ;;  %v4869_v17 = vld [vmem:[%s6324_s8 + $0x68] sm:$0xff]  }
 0x18d   : > { %2573 = vmatprep.subr.bf16.mxu1 %v2383_v18 }
 0x18f   : > { %4365 = vmatmul.mubr.msk.bf16.gmra.mrb[12].mxu1 %vm807_vm1, %v4865_v55  ;;  %v2675_v22 = vpop.permute.xlu0 %2674 }
 0x190   : > { %2499 = vmatprep.mubr.bf16.mxu1 %v4998_v30  ;;  %v2691_v39 = vpop.permute.xlu1 %2690  ;;  %v2707_v27 = vsel %vm1090_vm2, %v2675_v22, %v5807_v25  ;;  %v2706_v56 = vsel %vm1090_vm2, %v2673_v19, %v2675_v22 }
 0x193   : > { %4368 = vmatmul.mubr.msk.bf16.vlgmr.msra.gmra.mrb[0].mxu0 %vm807_vm1, %v4866_v21  ;;  %v2689_v32 = vpop.permute.xlu0 %2688 }
 0x194   : > { %2521 = vmatpush1.bf16.msra.mxu0 %v2380_v29  ;;  %2456 = vmatprep.mubr.bf16.mxu0 %v4998_v30  ;;  %v2693_v45 = vpop.permute.xlu1 %2692  ;;  %v2713_v47 = vsel %vm1090_vm2, %v2689_v32, %v2691_v39 }
 0x195   : > { %2522 = vmatprep.subr.bf16.mxu0 %v2389_v26  ;;  %v2714_v58 = vsel %vm1090_vm2, %v2691_v39, %v2693_v45 }
 0x197   : > { %4370 = vmatmul.mubr.msk.bf16.vlgmr.msra.gmra.mrb[0].mxu1 %vm807_vm1, %v4866_v21  ;;  %v2687_v42 = vpop.permute.xlu0 %2686 }
 0x198   : > { %2523 = vmatpush1.bf16.msra.mxu0 %v2388_v37  ;;  %2574 = vmatpush1.bf16.msra.mxu1 %v2382_v36  ;;  %v2679_v48 = vpop.permute.xlu1 %2678  ;;  %v2712_v52 = vsel %vm1090_vm2, %v2687_v42, %v2689_v32 }
 0x199   : > { %2575 = vmatprep.subr.bf16.mxu1 %v2391_v33  ;;  %2509 = vmatprep.mubr.bf16.mxu1 %v4998_v30  ;;  %v2708_v11 = vsel %vm1090_vm2, %v5807_v25, %v2679_v48  ;;  %v4872_v33 = vld [vmem:[%s6324_s8 + $0x80] sm:$0xff]  }
 0x19a   : > { %2742 = vmatprep.subr.bf16.mxu0 %v2705_v40 }
 0x19b   : > { %4369 = vmatmul.mubr.msk.bf16.gmra.mrb[4].mxu0 %vm807_vm1, %v4867_v38  ;;  %v2695_v46 = vpop.permute.xlu0 %2694 }
 0x19c   : > { %2576 = vmatpush1.bf16.msra.mxu1 %v2390_v44  ;;  %2552 = vmatprep.mubr.bf16.mxu0 %v4998_v30  ;;  %v2715_v55 = vsel %vm1090_vm2, %v2693_v45, %v2695_v46  ;;  %v2683_v61 = vpop.permute.xlu1 %2682 }
 0x19d   : > { %2795 = vmatprep.subr.bf16.mxu1 %v2707_v27  ;;  %v4873_v27 = vld [vmem:[%s6324_s8 + $0x88] sm:$0xff]  }
 0x19f   : > { %4371 = vmatmul.mubr.msk.bf16.gmra.mrb[4].mxu1 %vm807_vm1, %v4867_v38  ;;  %v2681_v49 = vpop.permute.xlu0 %2680 }
 0x1a0   : > { %2605 = vmatprep.mubr.bf16.mxu1 %v4998_v30  ;;  %v2709_v57 = vsel %vm1090_vm2, %v2679_v48, %v2681_v49  ;;  %v2697_v7 = vpop.permute.xlu1 %2696  ;;  %v2710_v14 = vsel %vm1090_vm2, %v2681_v49, %v2683_v61 }
 0x1a1   : > { %v2716_v16 = vsel %vm1090_vm2, %v2695_v46, %v2697_v7  ;;  %v3666_v46 = vlaneseq }
 0x1a3   : > { %4372 = vmatmul.mubr.msk.bf16.vlgmr.msra.gmra.mrb[8].mxu0 %vm807_vm1, %v4866_v21  ;;  %v2685_v63 = vpop.permute.xlu0 %2684  ;;  %v3667_v49 = vand.u32 127, %v3666_v46 }
 0x1a4   : > { %2743 = vmatpush1.bf16.msra.mxu0 %v2704_v53  ;;  %2562 = vmatprep.mubr.bf16.mxu0 %v4998_v30  ;;  %v2711_v6 = vsel %vm1090_vm2, %v2683_v61, %v2685_v63  ;;  %v2701_v12 = vpop.permute.xlu1 %2700  ;;  %v3687_v53 = vld [vmem:[%s6328_s14] sm:$0xff]  ;;  %v5975_v61 = vstv %s4407_s26 }
 0x1a5   : > { %2744 = vmatprep.subr.bf16.mxu0 %v2713_v47  ;;  %v5960_v47 = vshrl.u32 %v3666_v46, 7  ;;  %vm3688_vm5 = vcmp.gt.f32.partialorder %v3687_v53, 0.5  ;;  %v3668_v63 = vadd.s32 128, %v3667_v49  ;;  %vm3679_vm6 = vcmp.lt.s32.totalorder %v3667_v49, %v5975_v61 }
 0x1a7   : > { %4374 = vmatmul.mubr.msk.bf16.vlgmr.msra.gmra.mrb[8].mxu1 %vm807_vm1, %v4866_v21  ;;  %v2699_v9 = vpop.permute.xlu0 %2698  ;;  %v5965_v48 = vsub.s32 0, %v5960_v47  ;;  %vm3680_vm8 = vcmp.lt.s32.totalorder %v3668_v63, %v5975_v61 }
 0x1a8   : > { %2796 = vmatpush1.bf16.msra.mxu1 %v2706_v56  ;;  %2745 = vmatpush1.bf16.msra.mxu0 %v2712_v52  ;;  %v2717_v10 = vsel %vm1090_vm2, %v2697_v7, %v2699_v9  ;;  %v2718_v18 = vsel %vm1090_vm2, %v2699_v9, %v2701_v12  ;;  %v5968_v52 = vsel %vm3688_vm5, 1, %v4998_v30  ;;  %v3700_v56 = vsub.s32 2, %v5960_v47 }
 0x1a9   : > { %2615 = vmatprep.mubr.bf16.mxu1 %v4998_v30  ;;  %2797 = vmatprep.subr.bf16.mxu1 %v2715_v55  ;;  %v3696_v55 = vsub.s32 1, %v5960_v47  ;;  %v3669_v7 = vadd.s32 256, %v3667_v49  ;;  %v3670_v9 = vadd.s32 384, %v3667_v49 }
 0x1aa   : > { %2848 = vmatprep.subr.bf16.mxu0 %v2709_v57  ;;  %v3704_v57 = vsub.s32 3, %v5960_v47 }
 0x1ab   : > { %4373 = vmatmul.mubr.msk.bf16.gmra.mrb[12].mxu0 %vm807_vm1, %v4867_v38  ;;  %v2703_v13 = vpop.permute.xlu0 %2702  ;;  %vm3681_vm10 = vcmp.lt.s32.totalorder %v3669_v7, %v5975_v61  ;;  %vm3682_vm13 = vcmp.lt.s32.totalorder %v3670_v9, %v5975_v61 }
 0x1ac   : > { %2798 = vmatpush1.bf16.msra.mxu1 %v2714_v58  ;;  %2774 = vmatprep.mubr.bf16.mxu0 %v4998_v30  ;;  %v2719_v15 = vsel %vm1090_vm2, %v2701_v12, %v2703_v13  ;;  %v3693_v58 = vrot.slane %v5968_v52, %v5965_v48  ;;  %v3671_v12 = vadd.s32 512, %v3667_v49 }
 0x1ad   : > { %2901 = vmatprep.subr.bf16.mxu1 %v2711_v6  ;;  %v3697_v6 = vrot.slane %v5968_v52, %v3696_v55 }
 0x1ae   : > { %vm3722_vm7 = vcmp.ne.s32.totalorder %v3693_v58, 0  ;;  %vm3683_vm2 = vcmp.lt.s32.totalorder %v3671_v12, %v5975_v61 }
 0x1af   : > { %4375 = vmatmul.mubr.msk.bf16.gmra.mrb[12].mxu1 %vm807_vm1, %v4867_v38  ;;  %v3297_v19 = vpop.permute.xlu0 %3296  ;;  %vm3723_vm9 = vcmp.ne.s32.totalorder %v3697_v6, 0  ;;  %vm3730_vm12 = vmand %vm3679_vm6, %vm3722_vm7 }
 0x1b0   : > { %2827 = vmatprep.mubr.bf16.mxu1 %v4998_v30  ;;  %vm3731_vm15 = vmand %vm3680_vm8, %vm3723_vm9 }
 0x1b3   : > { %4378 = vmatmul.mubr.msk.bf16.vlgmr.msra.gmra.mrb[0].mxu0 %vm807_vm1, %v4868_v8 }
 0x1b4   : > { %2849 = vmatpush1.bf16.msra.mxu0 %v2708_v11  ;;  %2784 = vmatprep.mubr.bf16.mxu0 %v4998_v30  ;;  %v3708_v11 = vsub.s32 4, %v5960_v47 }
 0x1b5   : > { %2850 = vmatprep.subr.bf16.mxu0 %v2717_v10  ;;  %v3705_v10 = vrot.slane %v5968_v52, %v3704_v57 }
 0x1b6   : > { %v3709_v13 = vrot.slane %v5968_v52, %v3708_v11 }
 0x1b7   : > { %4380 = vmatmul.mubr.msk.bf16.vlgmr.msra.gmra.mrb[0].mxu1 %vm807_vm1, %v4868_v8  ;;  %vm3725_vm14 = vcmp.ne.s32.totalorder %v3705_v10, 0 }
 0x1b8   : > { %2851 = vmatpush1.bf16.msra.mxu0 %v2716_v16  ;;  %2902 = vmatpush1.bf16.msra.mxu1 %v2710_v14  ;;  %v3738_v14 = vsel %vm3730_vm12, 1, %v4998_v30  ;;  %v3739_v16 = vsel %vm3731_vm15, 1, %v4998_v30  ;;  %vm3726_vm3 = vcmp.ne.s32.totalorder %v3709_v13, 0 }
 0x1b9   : > { %2837 = vmatprep.mubr.bf16.mxu1 %v4998_v30  ;;  %2903 = vmatprep.subr.bf16.mxu1 %v2719_v15  ;;  %v3712_v15 = vsub.s32 5, %v5960_v47 }
 0x1ba   : > { %3002 = vmatprep.subr.bf16.mxu0 %v5285_v31  ;;  %v3295_v31 = vpop.permute.xlu1 %3294 }
 0x1bb   : > { %4379 = vmatmul.mubr.msk.bf16.gmra.mrb[4].mxu0 %vm807_vm1, %v4869_v17 }
 0x1bc   : > { %2904 = vmatpush1.bf16.msra.mxu1 %v2718_v18  ;;  %2880 = vmatprep.mubr.bf16.mxu0 %v4998_v30 }
 0x1bd   : > { %3055 = vmatprep.subr.bf16.mxu1 %v5349_v60  ;;  %v3299_v60 = vpop.permute.xlu0 %3298 }
 0x1be   : > { %v3330_v23 = vsel %vm1423_vm4, %v3297_v19, %v3299_v60 }
 0x1bf   : > { %4381 = vmatmul.mubr.msk.bf16.gmra.mrb[4].mxu1 %vm807_vm1, %v4869_v17 }
 0x1c0   : > { %2933 = vmatprep.mubr.bf16.mxu1 %v4998_v30 }
 0x1c3   : > { %4382 = vmatmul.mubr.msk.bf16.vlgmr.msra.gmra.mrb[8].mxu0 %vm807_vm1, %v4868_v8 }
 0x1c4   : > { %3003 = vmatpush1.bf16.msra.mxu0 %v5291_v34  ;;  %2890 = vmatprep.mubr.bf16.mxu0 %v4998_v30  ;;  %v3293_v34 = vpop.permute.xlu1 %3292 }
 0x1c5   : > { %3004 = vmatprep.subr.bf16.mxu0 %v5301_v41  ;;  %v4870_v41 = vld [vmem:[%s6324_s8 + $0x70] sm:$0xff]  }
 0x1c7   : > { %4384 = vmatmul.mubr.msk.bf16.vlgmr.msra.gmra.mrb[8].mxu1 %vm807_vm1, %v4868_v8  ;;  %v3701_v8 = vrot.slane %v5968_v52, %v3700_v56 }
 0x1c8   : > { %3056 = vmatpush1.bf16.msra.mxu1 %v5370_v0  ;;  %2943 = vmatprep.mubr.bf16.mxu1 %v4998_v30  ;;  %v4871_v0 = vld [vmem:[%s6324_s8 + $0x78] sm:$0xff]  }
 0x1c9   : > { %3005 = vmatpush1.bf16.msra.mxu0 %v5318_v50  ;;  %3057 = vmatprep.subr.bf16.mxu1 %v5374_v2  ;;  %v3301_v50 = vpop.permute.xlu1 %3300  ;;  %vm3724_vm11 = vcmp.ne.s32.totalorder %v3701_v8, 0 }
 0x1ca   : > { %3108 = vmatprep.subr.bf16.mxu0 %v5326_v54  ;;  %v3313_v54 = vpop.permute.xlu0 %3312  ;;  %vm3732_vm0 = vmand %vm3681_vm10, %vm3724_vm11 }
 0x1cb   : > { %4383 = vmatmul.mubr.msk.bf16.gmra.mrb[12].mxu0 %vm807_vm1, %v4869_v17  ;;  %v3740_v18 = vsel %vm3732_vm0, 1, %v4998_v30 }
 0x1cc   : > { %3034 = vmatprep.mubr.bf16.mxu0 %v4998_v30  ;;  %3058 = vmatpush1.bf16.msra.mxu1 %v5386_v3  ;;  %v3329_v3 = vsel %vm1423_vm4, %v3295_v31, %v3297_v19  ;;  %v3672_v19 = vadd.s32 640, %v3667_v49 }
 0x1cd   : > { %3161 = vmatprep.subr.bf16.mxu1 %v5543_v35  ;;  %v3315_v2 = vpop.permute.xlu1 %3314 }
 0x1ce   : > { %v3311_v35 = vpop.permute.xlu0 %3310  ;;  %vm3684_vm6 = vcmp.lt.s32.totalorder %v3672_v19, %v5975_v61 }
 0x1cf   : > { %4385 = vmatmul.mubr.msk.bf16.gmra.mrb[12].mxu1 %vm807_vm1, %v4869_v17  ;;  %v3749_v17 = vrot.slane %v3738_v14, %v5965_v48 }
 0x1d0   : > { %3087 = vmatprep.mubr.bf16.mxu1 %v4998_v30 }
 0x1d1   : > { %vm6000_vm5 = vcmp.eq.s32.totalorder %v3749_v17, 1 }
 0x1d2   : > { %v3319_v20 = vpop.permute.xlu0 %3318 }
 0x1d3   : > { %4388 = vmatmul.mubr.msk.bf16.vlgmr.msra.gmra.mrb[0].mxu0 %vm807_vm1, %v4870_v41 }
 0x1d4   : > { %3109 = vmatpush1.bf16.msra.mxu0 %v5347_v59  ;;  %3044 = vmatprep.mubr.bf16.mxu0 %v4998_v30  ;;  %v3331_v59 = vsel %vm1423_vm4, %v3299_v60, %v3301_v50  ;;  %v3716_v60 = vsub.s32 6, %v5960_v47 }
 0x1d5   : > { %3110 = vmatprep.subr.bf16.mxu0 %v5357_v62  ;;  %v3317_v62 = vpop.permute.xlu1 %3316 }
 0x1d6   : > { %v3305_v21 = vpop.permute.xlu0 %3304  ;;  %v3339_v22 = vsel %vm1423_vm4, %v3317_v62, %v3319_v20  ;;  %v3338_v25 = vsel %vm1423_vm4, %v3315_v2, %v3317_v62 }
 0x1d7   : > { %4390 = vmatmul.mubr.msk.bf16.vlgmr.msra.gmra.mrb[0].mxu1 %vm807_vm1, %v4870_v41 }
 0x1d8   : > { %3162 = vmatpush1.bf16.msra.mxu1 %v5443_v4  ;;  %3097 = vmatprep.mubr.bf16.mxu1 %v4998_v30  ;;  %v3337_v4 = vsel %vm1423_vm4, %v3313_v54, %v3315_v2 }
 0x1d9   : > { %3111 = vmatpush1.bf16.msra.mxu0 %v5372_v1  ;;  %3163 = vmatprep.subr.bf16.mxu1 %v5572_v51  ;;  %v3328_v1 = vsel %vm1423_vm4, %v3293_v34, %v3295_v31  ;;  %v3303_v51 = vpop.permute.xlu1 %3302  ;;  %v3713_v34 = vrot.slane %v5968_v52, %v3712_v15 }
 0x1da   : > { %3366 = vmatprep.subr.bf16.mxu0 %v3329_v3  ;;  %v3333_v24 = vsel %vm1423_vm4, %v3303_v51, %v3305_v21  ;;  %v3309_v28 = vpop.permute.xlu0 %3308  ;;  %v3332_v38 = vsel %vm1423_vm4, %v3301_v50, %v3303_v51  ;;  %v3720_v3 = vsub.s32 7, %v5960_v47 }
 0x1db   : > { %4389 = vmatmul.mubr.msk.bf16.gmra.mrb[4].mxu0 %vm807_vm1, %v4871_v0  ;;  %vm3727_vm7 = vcmp.ne.s32.totalorder %v3713_v34, 0 }
 0x1dc   : > { %3140 = vmatprep.mubr.bf16.mxu0 %v4998_v30  ;;  %3164 = vmatpush1.bf16.msra.mxu1 %v5455_v5  ;;  %v3336_v5 = vsel %vm1423_vm4, %v3311_v35, %v3313_v54  ;;  %v3757_v54 = vrot.slane %v3740_v18, %v5965_v48  ;;  %vm3735_vm11 = vmand %vm3684_vm6, %vm3727_vm7 }
 0x1dd   : > { %3419 = vmatprep.subr.bf16.mxu1 %v3331_v59  ;;  %v3307_v26 = vpop.permute.xlu1 %3306  ;;  %v3743_v47 = vsel %vm3735_vm11, 1, %v4998_v30 }
 0x1de   : > { %v3335_v29 = vsel %vm1423_vm4, %v3307_v26, %v3309_v28  ;;  %v3323_v36 = vpop.permute.xlu0 %3322  ;;  %v3334_v42 = vsel %vm1423_vm4, %v3305_v21, %v3307_v26  ;;  %vm6018_vm9 = vcmp.eq.s32.totalorder %v3757_v54, 1  ;;  %v3674_v26 = vadd.s32 896, %v3667_v49 }
 0x1df   : > { %4391 = vmatmul.mubr.msk.bf16.gmra.mrb[4].mxu1 %vm807_vm1, %v4871_v0  ;;  %v3769_v14 = vrot.slane %v3743_v47, %v5965_v48 }
 0x1e0   : > { %3193 = vmatprep.mubr.bf16.mxu1 %v4998_v30 }
 0x1e1   : > { %v3321_v32 = vpop.permute.xlu1 %3320 }
 0x1e2   : > { %v3341_v37 = vsel %vm1423_vm4, %v3321_v32, %v3323_v36  ;;  %v3327_v40 = vpop.permute.xlu0 %3326  ;;  %v3340_v44 = vsel %vm1423_vm4, %v3319_v20, %v3321_v32  ;;  %v3673_v20 = vadd.s32 768, %v3667_v49 }
 0x1e3   : > { %4392 = vmatmul.mubr.msk.bf16.vlgmr.msra.gmra.mrb[8].mxu0 %vm807_vm1, %v4870_v41 }
 0x1e4   : > { %3367 = vmatpush1.bf16.msra.mxu0 %v3328_v1  ;;  %3150 = vmatprep.mubr.bf16.mxu0 %v4998_v30  ;;  %v3717_v1 = vrot.slane %v5968_v52, %v3716_v60  ;;  %vm3685_vm12 = vcmp.lt.s32.totalorder %v3673_v20, %v5975_v61 }
 0x1e5   : > { %3368 = vmatprep.subr.bf16.mxu0 %v3337_v4  ;;  %v3325_v39 = vpop.permute.xlu1 %3324 }
 0x1e6   : > { %v3343_v43 = vsel %vm1423_vm4, %v3325_v39, %v3327_v40  ;;  %v3342_v45 = vsel %vm1423_vm4, %v3323_v36, %v3325_v39  ;;  %vm3734_vm4 = vmand %vm3683_vm2, %vm3726_vm3  ;;  %v6006_v59 = vpop.permute.xlu0 %3621  ;;  %v3721_v36 = vrot.slane %v5968_v52, %v3720_v3  ;;  %vm6115_vm3 = vcmp.eq.s32.totalorder %v3769_v14, 1 }
 0x1e7   : > { %4394 = vmatmul.mubr.msk.bf16.vlgmr.msra.gmra.mrb[8].mxu1 %vm807_vm1, %v4870_v41  ;;  %v3753_v41 = vrot.slane %v3739_v16, %v5965_v48  ;;  %v6009_v62 = vsel %vm3734_vm4, 1, %v4998_v30 }
 0x1e8   : > { %3420 = vmatpush1.bf16.msra.mxu1 %v3330_v23  ;;  %3369 = vmatpush1.bf16.msra.mxu0 %v3336_v5  ;;  %vm3729_vm0 = vcmp.ne.s32.totalorder %v3721_v36, 0 }
 0x1e9   : > { %3203 = vmatprep.mubr.bf16.mxu1 %v4998_v30  ;;  %3421 = vmatprep.subr.bf16.mxu1 %v3339_v22  ;;  %v5996_v50 = vpop.permute.xlu1 %3616  ;;  %vm6013_vm8 = vcmp.eq.s32.totalorder %v3753_v41, 1 }
 0x1ea   : > { %3472 = vmatprep.subr.bf16.mxu0 %v3333_v24 }
 0x1eb   : > { %4393 = vmatmul.mubr.msk.bf16.gmra.mrb[12].mxu0 %vm807_vm1, %v4871_v0 }
 0x1ec   : > { %3422 = vmatpush1.bf16.msra.mxu1 %v3338_v25  ;;  %3398 = vmatprep.mubr.bf16.mxu0 %v4998_v30 }
 0x1ed   : > { %3525 = vmatprep.subr.bf16.mxu1 %v3335_v29  ;;  %v6026_v25 = vpop.permute.xlu1 %3626 }
 0x1ef   : > { %4395 = vmatmul.mubr.msk.bf16.gmra.mrb[12].mxu1 %vm807_vm1, %v4871_v0 }
 0x1f0   : > { %3451 = vmatprep.mubr.bf16.mxu1 %v4998_v30 }
 0x1f1   : > { %v6059_v8 = vpop.permute.xlu1 %3631 }
 0x1f3   : > { %4398 = vmatmul.mubr.msk.bf16.vlgmr.msra.gmra.mrb[0].mxu0 %vm807_vm1, %v4872_v33 }
 0x1f4   : > { %3473 = vmatpush1.bf16.msra.mxu0 %v3332_v38  ;;  %3408 = vmatprep.mubr.bf16.mxu0 %v4998_v30 }
 0x1f5   : > { %3474 = vmatprep.subr.bf16.mxu0 %v3341_v37 }
 0x1f7   : > { %4400 = vmatmul.mubr.msk.bf16.vlgmr.msra.gmra.mrb[0].mxu1 %vm807_vm1, %v4872_v33 }
 0x1f8   : > { %3475 = vmatpush1.bf16.msra.mxu0 %v3340_v44  ;;  %3526 = vmatpush1.bf16.msra.mxu1 %v3334_v42 }
 0x1f9   : > { %3461 = vmatprep.mubr.bf16.mxu1 %v4998_v30  ;;  %3527 = vmatprep.subr.bf16.mxu1 %v3343_v43 }
 0x1fb   : > { %4399 = vmatmul.mubr.msk.bf16.gmra.mrb[4].mxu0 %vm807_vm1, %v4873_v27 }
 0x1fc   : > { %3528 = vmatpush1.bf16.msra.mxu1 %v3342_v45  ;;  %3504 = vmatprep.mubr.bf16.mxu0 %v4998_v30 }
 0x1ff   : > { %4401 = vmatmul.mubr.msk.bf16.gmra.mrb[4].mxu1 %vm807_vm1, %v4873_v27 }
 0x200   : > { %3557 = vmatprep.mubr.bf16.mxu1 %v4998_v30 }
 0x203   : > { %4402 = vmatmul.mubr.msk.bf16.vlgmr.msra.gmra.mrb[8].mxu0 %vm807_vm1, %v4872_v33 }
 0x204   : > { %3514 = vmatprep.mubr.bf16.mxu0 %v4998_v30 }
 0x207   : > { %4404 = vmatmul.mubr.msk.bf16.vlgmr.msra.gmra.mrb[8].mxu1 %vm807_vm1, %v4872_v33  ;;  %v3765_v33 = vrot.slane %v6009_v62, %v5965_v48 }
 0x208   : > { %3567 = vmatprep.mubr.bf16.mxu1 %v4998_v30 }
 0x209   : > { %vm6093_vm2 = vcmp.eq.s32.totalorder %v3765_v33, 1 }
 0x20b   : > { %4403 = vmatmul.mubr.msk.bf16.gmra.mrb[12].mxu0 %vm807_vm1, %v4873_v27 }
 0x20f   : > { %4405 = vmatmul.mubr.msk.bf16.gmra.mrb[12].mxu1 %vm807_vm1, %v4873_v27  ;;  %vm3733_vm1 = vmand %vm3682_vm13, %vm3725_vm14  ;;  %vm3728_vm13 = vcmp.ne.s32.totalorder %v3717_v1, 0  ;;  %vm3686_vm14 = vcmp.lt.s32.totalorder %v3674_v26, %v5975_v61 }
 0x210   : > { %v3741_v31 = vsel %vm3733_vm1, 1, %v4998_v30  ;;  %vm6064_vm15 = vmand %vm3685_vm12, %vm3728_vm13 }
 0x211   : > { %v3761_v0 = vrot.slane %v3741_v31, %v5965_v48  ;;  %v3744_v54 = vsel %vm6064_vm15, 1, %v4998_v30  ;;  %vm6086_vm1 = vmand %vm3686_vm14, %vm3729_vm0 }
 0x212   : > { %v3745_v33 = vsel %vm6086_vm1, 1, %v4998_v30 }
 0x213   : > { %vm6022_vm10 = vcmp.eq.s32.totalorder %v3761_v0, 1 }
 0x2c6   : > { %v3400_v35 = vpop.f32.mrb[0].mxu0 }
 0x2c7   : > { %v3634_v4 = vadd.f32 %v5996_v50, %v3400_v35  ;;  %v3402_v51 = vpop.f32.mrb[1].mxu0 }
 0x2c8   : > { %v3635_v5 = vadd.f32 %v5996_v50, %v3402_v51  ;;  %v3404_v22 = vpop.f32.mrb[2].mxu0 }
 0x2c9   : > { %v3786_v28 = vsel %vm6000_vm5, %v3634_v4, 0.0  ;;  %v3642_v29 = vadd.f32 %v6006_v59, %v3404_v22  ;;  %v3406_v32 = vpop.f32.mrb[3].mxu0 }
 0x2ca   : > { %v3787_v37 = vsel %vm6013_vm8, %v3635_v5, 0.0  ;;  %v3643_v38 = vadd.f32 %v6006_v59, %v3406_v32  ;;  %v3453_v39 = vpop.f32.mrb[0].mxu1  ;;  %v3773_v32 = vrot.slane %v3744_v54, %v5965_v48 }
 0x2cb   : > { %v4459_v40 = vpack.c.bf16 %v3787_v37, %v3786_v28  ;;  %v3930_v42 = vadd.f32 %v3787_v37, %v3786_v28  ;;  %v3794_v43 = vsel %vm6000_vm5, %v3642_v29, 0.0  ;;  %v3636_v44 = vadd.f32 %v5996_v50, %v3453_v39  ;;  %v3455_v27 = vpop.f32.mrb[1].mxu1 }
 0x2cc   : > { %v3795_v45 = vsel %vm6013_vm8, %v3643_v38, 0.0  ;;  %v3637_v46 = vadd.f32 %v5996_v50, %v3455_v27  ;;  %v3457_v53 = vpop.f32.mrb[2].mxu1  ;;  %vm6131_vm4 = vcmp.eq.s32.totalorder %v3773_v32, 1 }
 0x2cd   : > { %3914 = vst [vmem:[%s6050_s11] sm:$0xff] %v4459_v40  ;;  %v4463_v49 = vpack.c.bf16 %v3795_v45, %v3794_v43  ;;  %v3939_v52 = vadd.f32 %v3795_v45, %v3794_v43  ;;  %v3788_v55 = vsel %vm6018_vm9, %v3636_v44, 0.0  ;;  %v3644_v56 = vadd.f32 %v6006_v59, %v3457_v53  ;;  %v3459_v57 = vpop.f32.mrb[3].mxu1 }
 0x2ce   : > { %v3931_v58 = vadd.f32 %v3930_v42, %v3788_v55  ;;  %v3789_v63 = vsel %vm6022_vm10, %v3637_v46, 0.0  ;;  %v3645_v6 = vadd.f32 %v6006_v59, %v3459_v57  ;;  %v3410_v7 = vpop.f32.mrb[4].mxu0  ;;  %v3777_v53 = vrot.slane %v3745_v33, %v5965_v48 }
 0x2cf   : > { %3918 = vst [vmem:[%s6050_s11 + $0x20] sm:$0xff] %v4463_v49  ;;  %v4460_v10 = vpack.c.bf16 %v3789_v63, %v3788_v55  ;;  %v3796_v11 = vsel %vm6018_vm9, %v3644_v56, 0.0  ;;  %v3650_v12 = vadd.f32 %v6026_v25, %v3410_v7  ;;  %v3412_v13 = vpop.f32.mrb[5].mxu0 }
 0x2d0   : > { %v3932_v15 = vadd.f32 %v3931_v58, %v3789_v63  ;;  %v3940_v16 = vadd.f32 %v3939_v52, %v3796_v11  ;;  %v3797_v17 = vsel %vm6022_vm10, %v3645_v6, 0.0  ;;  %v3651_v18 = vadd.f32 %v6026_v25, %v3412_v13  ;;  %v3414_v31 = vpop.f32.mrb[6].mxu0 }
 0x2d1   : > { %3915 = vst [vmem:[%s6050_s11 + $0x8] sm:$0xff] %v4460_v10  ;;  %v4464_v19 = vpack.c.bf16 %v3797_v17, %v3796_v11  ;;  %v3802_v34 = vsel %vm6000_vm5, %v3650_v12, 0.0  ;;  %v3658_v60 = vadd.f32 %v6059_v8, %v3414_v31  ;;  %v3416_v41 = vpop.f32.mrb[7].mxu0 }
 0x2d2   : > { %v3941_v3 = vadd.f32 %v3940_v16, %v3797_v17  ;;  %v3803_v35 = vsel %vm6013_vm8, %v3651_v18, 0.0  ;;  %v3659_v62 = vadd.f32 %v6059_v8, %v3416_v41  ;;  %v3463_v20 = vpop.f32.mrb[4].mxu1 }
 0x2d3   : > { %3919 = vst [vmem:[%s6050_s11 + $0x28] sm:$0xff] %v4464_v19  ;;  %v4467_v4 = vpack.c.bf16 %v3803_v35, %v3802_v34  ;;  %v3948_v51 = vadd.f32 %v3803_v35, %v3802_v34  ;;  %v3810_v61 = vsel %vm6000_vm5, %v3658_v60, 0.0  ;;  %v3652_v5 = vadd.f32 %v6026_v25, %v3463_v20  ;;  %v3465_v22 = vpop.f32.mrb[5].mxu1 }
 0x2d4   : > { %v3811_v26 = vsel %vm6013_vm8, %v3659_v62, 0.0  ;;  %v3653_v28 = vadd.f32 %v6026_v25, %v3465_v22  ;;  %v3467_v29 = vpop.f32.mrb[6].mxu1  ;;  %vm6142_vm5 = vcmp.eq.s32.totalorder %v3777_v53, 1 }
 0x2d5   : > { %3922 = vst [vmem:[%s6050_s11 + $0x40] sm:$0xff] %v4467_v4  ;;  %v4471_v36 = vpack.c.bf16 %v3811_v26, %v3810_v61  ;;  %v3957_v2 = vadd.f32 %v3811_v26, %v3810_v61  ;;  %v3804_v37 = vsel %vm6018_vm9, %v3652_v5, 0.0  ;;  %v3660_v38 = vadd.f32 %v6059_v8, %v3467_v29  ;;  %v3469_v21 = vpop.f32.mrb[7].mxu1 }
 0x2d6   : > { %v3949_v39 = vadd.f32 %v3948_v51, %v3804_v37  ;;  %v3805_v40 = vsel %vm6022_vm10, %v3653_v28, 0.0  ;;  %v3661_v42 = vadd.f32 %v6059_v8, %v3469_v21  ;;  %v3506_v43 = vpop.f32.mrb[8].mxu0 }
 0x2d7   : > { %3926 = vst [vmem:[%s6050_s11 + $0x60] sm:$0xff] %v4471_v36  ;;  %v4468_v30 = vpack.c.bf16 %v3805_v40, %v3804_v37  ;;  %v3812_v27 = vsel %vm6018_vm9, %v3660_v38, 0.0  ;;  %v3638_v45 = vadd.f32 %v5996_v50, %v3506_v43  ;;  %v3508_v46 = vpop.f32.mrb[9].mxu0 }
 0x2d8   : > { %v3950_v47 = vadd.f32 %v3949_v39, %v3805_v40  ;;  %v3958_v49 = vadd.f32 %v3957_v2, %v3812_v27  ;;  %v3813_v52 = vsel %vm6022_vm10, %v3661_v42, 0.0  ;;  %v3639_v55 = vadd.f32 %v5996_v50, %v3508_v46  ;;  %v3510_v56 = vpop.f32.mrb[10].mxu0 }
 0x2d9   : > { %3923 = vst [vmem:[%s6050_s11 + $0x48] sm:$0xff] %v4468_v30  ;;  %v4472_v57 = vpack.c.bf16 %v3813_v52, %v3812_v27  ;;  %v3790_v23 = vsel %vm6093_vm2, %v3638_v45, 0.0  ;;  %v3646_v58 = vadd.f32 %v6006_v59, %v3510_v56  ;;  %v3512_v63 = vpop.f32.mrb[11].mxu0 }
 0x2da   : > { %v3959_v48 = vadd.f32 %v3958_v49, %v3813_v52  ;;  %v3933_v7 = vadd.f32 %v3932_v15, %v3790_v23  ;;  %v3791_v24 = vsel %vm6115_vm3, %v3639_v55, 0.0  ;;  %v3647_v9 = vadd.f32 %v6006_v59, %v3512_v63  ;;  %v3559_v10 = vpop.f32.mrb[8].mxu1 }
 0x2db   : > { %3927 = vst [vmem:[%s6050_s11 + $0x68] sm:$0xff] %v4472_v57  ;;  %v4461_v11 = vpack.c.bf16 %v3791_v24, %v3790_v23  ;;  %v3798_v12 = vsel %vm6093_vm2, %v3646_v58, 0.0  ;;  %v3640_v13 = vadd.f32 %v5996_v50, %v3559_v10  ;;  %v3561_v14 = vpop.f32.mrb[9].mxu1 }
 0x2dc   : > { %v3934_v15 = vadd.f32 %v3933_v7, %v3791_v24  ;;  %v3942_v17 = vadd.f32 %v3941_v3, %v3798_v12  ;;  %v3799_v18 = vsel %vm6115_vm3, %v3647_v9, 0.0  ;;  %v3641_v31 = vadd.f32 %v5996_v50, %v3561_v14  ;;  %v3563_v19 = vpop.f32.mrb[10].mxu1 }
 0x2dd   : > { %3916 = vst [vmem:[%s6050_s11 + $0x10] sm:$0xff] %v4461_v11  ;;  %v4465_v34 = vpack.c.bf16 %v3799_v18, %v3798_v12  ;;  %v3792_v60 = vsel %vm6131_vm4, %v3640_v13, 0.0  ;;  %v3648_v41 = vadd.f32 %v6006_v59, %v3563_v19  ;;  %v3565_v54 = vpop.f32.mrb[11].mxu1  ;;  %v3999_v12 = vld [vmem:[%s6050_s11] sm:$0xff] (%p6349_p6)  ;;  %v4001_v13 = vld [vmem:[%s6050_s11 + $0x8] sm:$0xff] (%p6349_p6) }
 0x2de   : > { %v3943_v0 = vadd.f32 %v3942_v17, %v3799_v18  ;;  %v3935_v35 = vadd.f32 %v3934_v15, %v3792_v60  ;;  %v3793_v3 = vsel %vm6142_vm5, %v3641_v31, 0.0  ;;  %v3649_v62 = vadd.f32 %v6006_v59, %v3565_v54  ;;  %v3516_v20 = vpop.f32.mrb[12].mxu0  ;;  %v4007_v15 = vld [vmem:[%s6050_s11 + $0x20] sm:$0xff] (%p6349_p6)  ;;  %v4009_v17 = vld [vmem:[%s6050_s11 + $0x28] sm:$0xff] (%p6349_p6)  ;;  %4429 = vst [vmem:[%s4153_s4 + $0x20] sm:$0xff] (%p6349_p6), %v3999_v12  ;;  %4430 = vst [vmem:[%s4153_s4 + $0x28] sm:$0xff] (%p6349_p6), %v4001_v13 }
 0x2df   : > { %3920 = vst [vmem:[%s6050_s11 + $0x30] sm:$0xff] %v4465_v34  ;;  %v4462_v50 = vpack.c.bf16 %v3793_v3, %v3792_v60  ;;  %v3800_v4 = vsel %vm6131_vm4, %v3648_v41, 0.0  ;;  %v3654_v51 = vadd.f32 %v6026_v25, %v3516_v20  ;;  %v3518_v61 = vpop.f32.mrb[13].mxu0  ;;  %v4015_v19 = vld [vmem:[%s6050_s11 + $0x40] sm:$0xff] (%p6349_p6)  ;;  %4433 = vst [vmem:[%s4153_s4 + $0xa0] sm:$0xff] (%p6349_p6), %v4007_v15 }
 0x2e0   : > { %v3936_v5 = vadd.f32 %v3935_v35, %v3793_v3  ;;  %v3944_v22 = vadd.f32 %v3943_v0, %v3800_v4  ;;  %v3801_v26 = vsel %vm6142_vm5, %v3649_v62, 0.0  ;;  %v3655_v28 = vadd.f32 %v6026_v25, %v3518_v61  ;;  %v3520_v29 = vpop.f32.mrb[14].mxu0  ;;  %v4017_v34 = vld [vmem:[%s6050_s11 + $0x48] sm:$0xff] (%p6349_p6)  ;;  %4434 = vst [vmem:[%s4153_s4 + $0xa8] sm:$0xff] (%p6349_p6), %v4009_v17  ;;  %4437 = vst [vmem:[%s4153_s4 + $0x120] sm:$0xff] (%p6349_p6), %v4015_v19  ;;  %v4023_v54 = vld [vmem:[%s6050_s11 + $0x60] sm:$0xff] (%p6349_p6) }
 0x2e1   : > { %3917 = vst [vmem:[%s6050_s11 + $0x18] sm:$0xff] %v4462_v50  ;;  %v4466_v59 = vpack.c.bf16 %v3801_v26, %v3800_v4  ;;  %v3806_v32 = vsel %vm6093_vm2, %v3654_v51, 0.0  ;;  %v3662_v33 = vadd.f32 %v6059_v8, %v3520_v29  ;;  %v3522_v36 = vpop.f32.mrb[15].mxu0  ;;  %4438 = vst [vmem:[%s4153_s4 + $0x128] sm:$0xff] (%p6349_p6), %v4017_v34 }
 0x2e2   : > { %v3945_v2 = vadd.f32 %v3944_v22, %v3801_v26  ;;  %v3951_v37 = vadd.f32 %v3950_v47, %v3806_v32  ;;  %v3807_v38 = vsel %vm6115_vm3, %v3655_v28, 0.0  ;;  %v3663_v21 = vadd.f32 %v6059_v8, %v3522_v36  ;;  %v3569_v39 = vpop.f32.mrb[12].mxu1  ;;  %3937 = vadd.xlane.f32.xlu0 %v3936_v5  ;;  %v4025_v0 = vld [vmem:[%s6050_s11 + $0x68] sm:$0xff] (%p6349_p6)  ;;  %4441 = vst [vmem:[%s4153_s4 + $0x1a0] sm:$0xff] (%p6349_p6), %v4023_v54 }
 0x2e3   : > { %3921 = vst [vmem:[%s6050_s11 + $0x38] sm:$0xff] %v4466_v59  ;;  %v4469_v40 = vpack.c.bf16 %v3807_v38, %v3806_v32  ;;  %v3814_v42 = vsel %vm6093_vm2, %v3662_v33, 0.0  ;;  %v3656_v43 = vadd.f32 %v6026_v25, %v3569_v39  ;;  %v3571_v30 = vpop.f32.mrb[13].mxu1  ;;  %4442 = vst [vmem:[%s4153_s4 + $0x1a8] sm:$0xff] (%p6349_p6), %v4025_v0 }
 0x2e4   : > { %v3952_v27 = vadd.f32 %v3951_v37, %v3807_v38  ;;  %v3960_v45 = vadd.f32 %v3959_v48, %v3814_v42  ;;  %v3815_v46 = vsel %vm6115_vm3, %v3663_v21, 0.0  ;;  %v3657_v53 = vadd.f32 %v6026_v25, %v3571_v30  ;;  %v3573_v47 = vpop.f32.mrb[14].mxu1  ;;  %3946 = vadd.xlane.f32.xlu1 %v3945_v2  ;;  %v4003_v14 = vld [vmem:[%s6050_s11 + $0x10] sm:$0xff] (%p6349_p6) }
 0x2e5   : > { %3924 = vst [vmem:[%s6050_s11 + $0x50] sm:$0xff] %v4469_v40  ;;  %v4473_v49 = vpack.c.bf16 %v3815_v46, %v3814_v42  ;;  %v3808_v1 = vsel %vm6131_vm4, %v3656_v43, 0.0  ;;  %v3664_v52 = vadd.f32 %v6059_v8, %v3573_v47  ;;  %v3575_v55 = vpop.f32.mrb[15].mxu1  ;;  %4431 = vst [vmem:[%s4153_s4 + $0x30] sm:$0xff] (%p6349_p6), %v4003_v14 }
 0x2e6   : > { %v3961_v56 = vadd.f32 %v3960_v45, %v3815_v46  ;;  %v3953_v57 = vadd.f32 %v3952_v27, %v3808_v1  ;;  %v3809_v44 = vsel %vm6142_vm5, %v3657_v53, 0.0  ;;  %v3665_v25 = vadd.f32 %v6059_v8, %v3575_v55  ;;  %v4011_v18 = vld [vmem:[%s6050_s11 + $0x30] sm:$0xff] (%p6349_p6) }
 0x2e7   : > { %3928 = vst [vmem:[%s6050_s11 + $0x70] sm:$0xff] %v4473_v49  ;;  %v4470_v23 = vpack.c.bf16 %v3809_v44, %v3808_v1  ;;  %v3816_v58 = vsel %vm6131_vm4, %v3664_v52, 0.0  ;;  %4435 = vst [vmem:[%s4153_s4 + $0xb0] sm:$0xff] (%p6349_p6), %v4011_v18 }
 0x2e8   : > { %v3954_v63 = vadd.f32 %v3953_v57, %v3809_v44  ;;  %v3962_v48 = vadd.f32 %v3961_v56, %v3816_v58  ;;  %v3817_v7 = vsel %vm6142_vm5, %v3665_v25, 0.0  ;;  %v4005_v16 = vld [vmem:[%s6050_s11 + $0x18] sm:$0xff] (%p6349_p6) }
 0x2e9   : > { %3925 = vst [vmem:[%s6050_s11 + $0x58] sm:$0xff] %v4470_v23  ;;  %v4474_v24 = vpack.c.bf16 %v3817_v7, %v3816_v58  ;;  %4432 = vst [vmem:[%s4153_s4 + $0x38] sm:$0xff] (%p6349_p6), %v4005_v16 }
 0x2ea   : > { %v3963_v9 = vadd.f32 %v3962_v48, %v3817_v7  ;;  %3955 = vadd.xlane.f32.xlu0 %v3954_v63  ;;  %v4013_v31 = vld [vmem:[%s6050_s11 + $0x38] sm:$0xff] (%p6349_p6) }
 0x2eb   : > { %3929 = vst [vmem:[%s6050_s11 + $0x78] sm:$0xff] %v4474_v24  ;;  %4436 = vst [vmem:[%s4153_s4 + $0xb8] sm:$0xff] (%p6349_p6), %v4013_v31 }
 0x2ec   : > { %v4019_v60 = vld [vmem:[%s6050_s11 + $0x50] sm:$0xff] (%p6349_p6) }
 0x2ed   : > { %4439 = vst [vmem:[%s4153_s4 + $0x130] sm:$0xff] (%p6349_p6), %v4019_v60 }
 0x2ee   : > { %3964 = vadd.xlane.f32.xlu0 %v3963_v9  ;;  %v4027_v35 = vld [vmem:[%s6050_s11 + $0x70] sm:$0xff] (%p6349_p6) }
 0x2ef   : > { %4443 = vst [vmem:[%s4153_s4 + $0x1b0] sm:$0xff] (%p6349_p6), %v4027_v35 }
 0x2f0   : > { %v4021_v41 = vld [vmem:[%s6050_s11 + $0x58] sm:$0xff] (%p6349_p6) }
 0x2f1   : > { %4440 = vst [vmem:[%s4153_s4 + $0x138] sm:$0xff] (%p6349_p6), %v4021_v41 }
 0x2f2   : > { %v4029_v3 = vld [vmem:[%s6050_s11 + $0x78] sm:$0xff] (%p6349_p6) }
 0x2f3   : > { %4444 = vst [vmem:[%s4153_s4 + $0x1b8] sm:$0xff] (%p6349_p6), %v4029_v3 }
 0x36f   : > { %v3938_v10 = vpop.xlane.xlu0 %3937 }
 0x370   : > { %3966 = vst [vmem:[%s6192_s19] sm:$0xff] %v3938_v10 }
 0x371   : > { %v3947_v8 = vpop.xlane.xlu1 %3946 }
 0x372   : > { %3967 = vst [vmem:[%s6192_s19 + $0x8] sm:$0xff] %v3947_v8 }
 0x376   : > { %3980 = sbr.rel (!%p6349_p6) target bundleno = 893 (0x37d), region = 161 }
 0x377   : > { %v3956_v6 = vpop.xlane.xlu0 %3955 }
 0x378   : > { %3968 = vst [vmem:[%s6192_s19 + $0x10] sm:$0xff] %v3956_v6 }
 0x37b   : > { %v3965_v11 = vpop.xlane.xlu0 %3964 }
 0x37c   : > { %3969 = vst [vmem:[%s6192_s19 + $0x18] sm:$0xff] %v3965_v11 }
 0x37d PF: > { %p6353_p7 = scmp.ne.s32.totalorder %s6315_s24, 0 }
 0x37e   : > { %s6354_s6 = sld [smem:[#allocation13_spill]] (%p6353_p7)  ;;  %s6355_s15 = sld [smem:[#allocation12_spill]] (%p6353_p7)  ;;  %v4074_v62 = vld [vmem:[%s6192_s19] sm:$0xff] (%p6353_p7)  ;;  %v4076_v20 = vld [vmem:[%s6192_s19 + $0x8] sm:$0xff] (%p6353_p7) }
 0x37f   : > { %4036 = sbr.rel (!%p6353_p7) target bundleno = 906 (0x38a), region = 184  ;;  %v4078_v50 = vld [vmem:[%s6192_s19 + $0x10] sm:$0xff] (%p6353_p7)  ;;  %s6356_s9 = sld [smem:[#allocation26_spill]] (%p6353_p7) }
 0x383   : > { %v4080_v4 = vld [vmem:[%s6192_s19 + $0x18] sm:$0xff] (%p6353_p7) }
 0x384   : > { %s4445_s14 = sshll.u32 (%p6353_p7), %s6354_s6, 3 }
 0x385   : > { %s4038_s18 = sadd.s32 (%p6353_p7), %s6355_s15, %s4445_s14 }
 0x386   : > { %s4446_s13 = sshll.u32 %s4038_s18, 3 }
 0x387   : > { %s4040_s20 = scalar_lea.vmem %s6356_s9, %s4446_s13 }
 0x388   : > { %4075 = vst [vmem:[%s4040_s20] sm:$0xff] %v4074_v62  ;;  %4077 = vst [vmem:[%s4040_s20 + $0x10] sm:$0xff] %v4076_v20 }
 0x389   : > { %4079 = vst [vmem:[%s4040_s20 + $0x20] sm:$0xff] %v4078_v50  ;;  %4081 = vst [vmem:[%s4040_s20 + $0x30] sm:$0xff] %v4080_v4 }
 0x38a PF: > { %s20_s17 = sadd.s32 1, %s4995_s17   ;;  %s6358_s21 = sld [smem:[#allocation20_spill]] }
 0x38b   : > { %p6234_p1 = scmp.ge.s32.totalorder %s20_s17, 6   ;;  %s6359_s19 = sld [smem:[#allocation19_spill]] }
 0x38c   : > { %s6360_s23 = sld [smem:[#allocation18_spill]]  ;;  %s6361_s3 = sld [smem:[#allocation17_spill]] }
 0x38d   : > { %s6362_s13 = sld [smem:[#allocation14_spill]]  ;;  %s6363_s15 = sld [smem:[#allocation15_spill]] }
 0x38e   : > { %s6364_s5 = sld [smem:[#allocation16_spill]]  ;;  %s6365_s27 = smov %s4951_s28 }
 0x38f   : > { %s6367_s29 = smov %s4959_s30  ;;  %s6369_s9 = smov %s4967_s10 }
 0x390   : > { %s6366_s28 = smov %s6358_s21  ;;  %s6371_s11 = smov %s4975_s12 }
 0x391   : > { %s6368_s30 = smov %s6359_s19  ;;  %s6373_s14 = smov %s4991_s16 }
 0x392   : > { %s6370_s10 = smov %s6360_s23  ;;  %s6372_s12 = smov %s6361_s3 }
 0x393   :  { %19 = sbr.rel (!%p6234_p1) target bundleno = 14 (0xe), region = 282 }
 0x394   : > { %s6374_s16 = smov %s6364_s5 }
 0x39a   :  { %4104 = vsyncpa [#allocation7], 1 }
 0x39b   :  { %4106 = vsyncpa [#allocation7 + $0x1], 1 }

</bundles_post_ra>
